<compile_context>
chip_gen: v7x
topology: tpu7x:2x2x1
jax: 0.10.0
libtpu: 0.0.40
codegen_flags: <defaults>
</compile_context>

<pallas_src>
import jax
import jax.numpy as jnp
from jax.experimental import pallas as pl
from jax.experimental.pallas import tpu as pltpu

H1 = 256   # lstm1 hidden size per direction
H2 = 128   # lstm2 hidden size per direction


def _round_up(n, m):
    return ((n + m - 1) // m) * m


# ----------------------------- kernel ---------------------------------------

def eeg_kernel(x_ref,
               w1_ref, b1_ref,
               wl1_ref, bl1_ref,
               wl2_ref, bl2_ref,
               wd2_ref, bd2_ref,
               wo_ref, bo_ref,
               out_ref):
    wdt = wl1_ref.dtype        # bf16 by default (MXU operand dtype); f32 path kept
    x = x_ref[...]             # (tb, 14) f32

    # dense1 + ReLU (f32 accumulate, f32 bias/activation -- v5e friendly).
    h = jnp.dot(x.astype(w1_ref.dtype), w1_ref[...],
                preferred_element_type=jnp.float32) + b1_ref[...]
    h = jnp.maximum(h, 0.0)                                            # (tb, 64)

    # lstm1 (seq_len==1, zero state): dead f-gate pruned, both directions and
    # all gates fused into ONE (tb,64)x(64,1536) matmul.  Column layout
    # [i_f|i_r|g_f|g_r|o_f|o_r] (each H1 wide) so the activations act on
    # 512-wide aligned slices and h1 lands directly in [fwd, rev] order.
    g1 = jnp.dot(h.astype(wdt), wl1_ref[...],
                 preferred_element_type=jnp.float32) + bl1_ref[...]    # (tb, 1536)
    i1 = jax.nn.sigmoid(g1[:, 0:2 * H1])
    c1 = jnp.tanh(g1[:, 2 * H1:4 * H1])
    o1 = jax.nn.sigmoid(g1[:, 4 * H1:6 * H1])
    h1 = o1 * jnp.tanh(i1 * c1)                                        # (tb, 512)

    # Dropout(0.3): identity in eval mode.

    # lstm2: one full-depth (tb,512)x(512,768) matmul, same interleaved layout.
    g2 = jnp.dot(h1.astype(wdt), wl2_ref[...],
                 preferred_element_type=jnp.float32) + bl2_ref[...]    # (tb, 768)
    i2 = jax.nn.sigmoid(g2[:, 0:2 * H2])
    c2 = jnp.tanh(g2[:, 2 * H2:4 * H2])
    o2 = jax.nn.sigmoid(g2[:, 4 * H2:6 * H2])
    h2 = o2 * jnp.tanh(i2 * c2)                                        # (tb, 256)

    # dense2 + ReLU: single K=256 matmul (no split-K / concat).
    d2 = jnp.dot(h2.astype(wdt), wd2_ref[...],
                 preferred_element_type=jnp.float32) + bd2_ref[...]    # (tb, 128)
    d2 = jnp.maximum(d2, 0.0)

    # output Linear(128, 1) computed lane-dense as a (1, tb) row:
    # wo (1,128) contracted against d2 (tb,128) on their last dims.
    logits = jax.lax.dot_general(
        wo_ref[...], d2, (((1,), (1,)), ((), ())),
        preferred_element_type=jnp.float32) + bo_ref[...]              # (1, tb)
    out_ref[...] = jax.nn.sigmoid(logits).astype(out_ref.dtype)


# ------------------------- weight packing (load time) ------------------------

def _pack_bilstm(w_ih_f, b_ih_f, b_hh_f, w_ih_r, b_ih_r, b_hh_r, hidden):
    """Prune the dead f-gate (c_prev == 0), fold b_ih + b_hh, and interleave
    the two directions per gate: columns [i_f | i_r | g_f | g_r | o_f | o_r].
    PyTorch gate row order in w_ih is [i, f, g, o]."""
    def gate(w, g):
        return w[g * hidden:(g + 1) * hidden].T        # (in_features, hidden)
    bf = b_ih_f + b_hh_f
    br = b_ih_r + b_hh_r
    w = jnp.concatenate([gate(w_ih_f, 0), gate(w_ih_r, 0),
                         gate(w_ih_f, 2), gate(w_ih_r, 2),
                         gate(w_ih_f, 3), gate(w_ih_r, 3)], axis=1)
    b = jnp.concatenate([bf[0:hidden], br[0:hidden],
                         bf[2 * hidden:3 * hidden], br[2 * hidden:3 * hidden],
                         bf[3 * hidden:4 * hidden], br[3 * hidden:4 * hidden]])
    return w, b


def pack_params(p, weights_dtype=jnp.bfloat16):
    """One-time repack (layout plumbing) -- do this at model-load time, not per call."""
    packed = {}
    packed["w1"] = p["w1"].T.astype(weights_dtype)                 # (14, 64)
    packed["b1"] = p["b1"].reshape(1, -1).astype(jnp.float32)      # (1, 64)

    wl1, bl1 = _pack_bilstm(p["w_ih1_f"], p["b_ih1_f"], p["b_hh1_f"],
                            p["w_ih1_r"], p["b_ih1_r"], p["b_hh1_r"], H1)
    packed["wl1"] = wl1.astype(weights_dtype)                      # (64, 1536)
    packed["bl1"] = bl1.reshape(1, -1).astype(jnp.float32)

    wl2, bl2 = _pack_bilstm(p["w_ih2_f"], p["b_ih2_f"], p["b_hh2_f"],
                            p["w_ih2_r"], p["b_ih2_r"], p["b_hh2_r"], H2)
    packed["wl2"] = wl2.astype(weights_dtype)                      # (512, 768)
    packed["bl2"] = bl2.reshape(1, -1).astype(jnp.float32)

    packed["wd2"] = p["w2"].T.astype(weights_dtype)                # (256, 128)
    packed["bd2"] = p["b2"].reshape(1, -1).astype(jnp.float32)     # (1, 128)
    packed["wo"] = p["wo"].reshape(1, -1).astype(jnp.float32)      # (1, 128)
    packed["bo"] = p["bo"].reshape(1, 1).astype(jnp.float32)       # (1, 1)
    return packed


# ------------------------------- forward -------------------------------------

def eeg_forward(x, packed, *, block_b=512, vmem_limit_bytes=48 * 1024 * 1024,
                single_buffer_weights=True):
    """Pallas forward on packed weights.
    block_b: batch tile (v5e: 256, v6e: 512-1024, v7x: 512 recommended)."""
    B = x.shape[0]
    x = x.astype(jnp.float32)

    Bp8 = _round_up(max(B, 1), 8)
    tb = min(block_b, Bp8)
    # Prefer >= 2 grid steps so ("parallel",) can shard across v7x's 2 TCs.
    if Bp8 // tb < 2 and Bp8 >= 16:
        tb = _round_up(-(-Bp8 // 2), 8)
    Bp = _round_up(Bp8, tb)
    grid = Bp // tb
    xp = x if Bp == B else jnp.pad(x, ((0, Bp - B), (0, 0)))

    args = (xp, packed["w1"], packed["b1"], packed["wl1"], packed["bl1"],
            packed["wl2"], packed["bl2"], packed["wd2"], packed["bd2"],
            packed["wo"], packed["bo"])

    def run(single_buf):
        def resident(a):
            # Full-array block with a constant index map -> stays in VMEM.
            kwargs = {}
            if single_buf:
                # Nothing to prefetch for a constant block: single buffer.
                kwargs["pipeline_mode"] = pl.Buffered(1)
            return pl.BlockSpec(a.shape, lambda i, nd=a.ndim: (0,) * nd, **kwargs)

        in_specs = ([pl.BlockSpec((tb, 14), lambda i: (i, 0))]
                    + [resident(a) for a in args[1:]])
        # Lane-dense output: (grid, 1, tb), one (1, tb) row per grid step.
        out_specs = pl.BlockSpec((None, 1, tb), lambda i: (i, 0, 0))

        return pl.pallas_call(
            eeg_kernel,
            out_shape=jax.ShapeDtypeStruct((grid, 1, tb), jnp.float32),
            grid=(grid,),
            in_specs=in_specs,
            out_specs=out_specs,
            compiler_params=pltpu.CompilerParams(
                dimension_semantics=("parallel",),
                vmem_limit_bytes=vmem_limit_bytes),
        )(*args)

    if single_buffer_weights:
        try:
            out = run(True)
        except Exception:
            # pl.Buffered(1) not accepted on this build -> default double buffering.
            out = run(False)
    else:
        out = run(False)

    return out.reshape(Bp)[:B].reshape(B, 1)


# --------------------------- params & reference -------------------------------

def init_params(key):
    """Deterministic parameters matching the PyTorch module's shapes.
    weight_hh is omitted: with seq_len == 1 and zero initial state it never
    contributes to the forward pass."""
    def uniform(key, shape, fan_in):
        bound = 1.0 / jnp.sqrt(jnp.float32(fan_in))
        return jax.random.uniform(key, shape, jnp.float32, -bound, bound)

    keys = jax.random.split(key, 20)
    p = {}
    p["w1"] = uniform(keys[0], (64, 14), 14)                 # dense1
    p["b1"] = uniform(keys[1], (64,), 14)
    p["w_ih1_f"] = uniform(keys[2], (4 * H1, 64), H1)        # lstm1 fwd
    p["b_ih1_f"] = uniform(keys[3], (4 * H1,), H1)
    p["b_hh1_f"] = uniform(keys[4], (4 * H1,), H1)
    p["w_ih1_r"] = uniform(keys[5], (4 * H1, 64), H1)        # lstm1 rev
    p["b_ih1_r"] = uniform(keys[6], (4 * H1,), H1)
    p["b_hh1_r"] = uniform(keys[7], (4 * H1,), H1)
    p["w_ih2_f"] = uniform(keys[8], (4 * H2, 512), H2)       # lstm2 fwd
    p["b_ih2_f"] = uniform(keys[9], (4 * H2,), H2)
    p["b_hh2_f"] = uniform(keys[10], (4 * H2,), H2)
    p["w_ih2_r"] = uniform(keys[11], (4 * H2, 512), H2)      # lstm2 rev
    p["b_ih2_r"] = uniform(keys[12], (4 * H2,), H2)
    p["b_hh2_r"] = uniform(keys[13], (4 * H2,), H2)
    p["w2"] = uniform(keys[14], (128, 256), 256)             # dense2
    p["b2"] = uniform(keys[15], (128,), 256)
    p["wo"] = uniform(keys[16], (1, 128), 128)               # output
    p["bo"] = uniform(keys[17], (1,), 128)
    return p


def eeg_forward_ref(x, p):
    """Pure-JAX reference of the PyTorch forward (eval mode)."""
    def lstm_step(inp, w_ih, b_ih, b_hh, hidden):
        gates = inp @ w_ih.T + b_ih + b_hh
        i = jax.nn.sigmoid(gates[:, 0 * hidden:1 * hidden])
        g = jnp.tanh(gates[:, 2 * hidden:3 * hidden])
        o = jax.nn.sigmoid(gates[:, 3 * hidden:4 * hidden])
        return o * jnp.tanh(i * g)

    h = jax.nn.relu(x @ p["w1"].T + p["b1"])
    h1 = jnp.concatenate(
        [lstm_step(h, p["w_ih1_f"], p["b_ih1_f"], p["b_hh1_f"], H1),
         lstm_step(h, p["w_ih1_r"], p["b_ih1_r"], p["b_hh1_r"], H1)], axis=-1)
    h2 = jnp.concatenate(
        [lstm_step(h1, p["w_ih2_f"], p["b_ih2_f"], p["b_hh2_f"], H2),
         lstm_step(h1, p["w_ih2_r"], p["b_ih2_r"], p["b_hh2_r"], H2)], axis=-1)
    d2 = jax.nn.relu(h2 @ p["w2"].T + p["b2"])
    return jax.nn.sigmoid(d2 @ p["wo"].T + p["bo"])


if __name__ == "__main__":
    key = jax.random.PRNGKey(0)
    k_param, k_x = jax.random.split(key)
    params = init_params(k_param)

    # Pack once at "load time" (hoisted out of the per-call path).
    packed_f32 = pack_params(params, weights_dtype=jnp.float32)   # exactness path
    packed_bf16 = pack_params(params)                             # default fast path

    B = 8
    x = jax.random.normal(k_x, (B, 14), jnp.float32)
    ref = eeg_forward_ref(x, params)

    # f32 MXU path: bit-for-bit semantics vs the reference.
    out = jax.block_until_ready(eeg_forward(x, packed_f32))
    assert out.shape == (B, 1)
    assert jnp.allclose(out, ref, atol=1e-5, rtol=1e-5), (out, ref)

    # bf16 MXU path (default): relaxed tolerance.
    out_bf = jax.block_until_ready(eeg_forward(x, packed_bf16))
    assert out_bf.shape == (B, 1)
    assert jnp.allclose(out_bf, ref, atol=2e-2, rtol=2e-2), (out_bf, ref)

    # Multi-step grid + padding path (B not a tile multiple, grid > 1).
    B2 = 136
    x2 = jax.random.normal(jax.random.PRNGKey(1), (B2, 14), jnp.float32)
    ref2 = eeg_forward_ref(x2, params)
    out2 = jax.block_until_ready(eeg_forward(x2, packed_bf16, block_b=64))
    assert out2.shape == (B2, 1)
    assert jnp.allclose(out2, ref2, atol=2e-2, rtol=2e-2)

    # Default block_b with a mid-size batch: exercises the >=2-grid-step
    # (v7x megacore) tile-splitting logic.
    out3 = jax.block_until_ready(eeg_forward(x2, packed_bf16))
    assert out3.shape == (B2, 1)
    assert jnp.allclose(out3, ref2, atol=2e-2, rtol=2e-2)

    print("KERNEL_OK")
</pallas_src>

<mosaic_0001>
module attributes {stable_mosaic.version = 11 : i64} {
  func.func @eeg_kernel(%arg0: i32, %arg1: memref<8x14xf32, #tpu.memory_space<vmem>>, %arg2: memref<14x64xf32, #tpu.memory_space<vmem>>, %arg3: memref<1x64xf32, #tpu.memory_space<vmem>>, %arg4: memref<64x1536xf32, #tpu.memory_space<vmem>>, %arg5: memref<1x1536xf32, #tpu.memory_space<vmem>>, %arg6: memref<512x768xf32, #tpu.memory_space<vmem>>, %arg7: memref<1x768xf32, #tpu.memory_space<vmem>>, %arg8: memref<256x128xf32, #tpu.memory_space<vmem>>, %arg9: memref<1x128xf32, #tpu.memory_space<vmem>>, %arg10: memref<1x128xf32, #tpu.memory_space<vmem>>, %arg11: memref<1x1xf32, #tpu.memory_space<vmem>>, %arg12: memref<1x1x8xf32, #tpu.memory_space<vmem>>) attributes {dimension_semantics = [#tpu.dimension_semantics<parallel>], iteration_bounds = array<i64: 1>, scalar_prefetch = 0 : i64, scratch_operands = 0 : i64, tpu.core_type = #tpu.core_type<tc>, window_params = [{transform_indices = @transform_0, window_bounds = array<i64: 8, 14>}, {pipeline_mode = #tpu.pipeline_mode<synchronous>, transform_indices = @transform_1, window_bounds = array<i64: 14, 64>}, {pipeline_mode = #tpu.pipeline_mode<synchronous>, transform_indices = @transform_2, window_bounds = array<i64: 1, 64>}, {pipeline_mode = #tpu.pipeline_mode<synchronous>, transform_indices = @transform_3, window_bounds = array<i64: 64, 1536>}, {pipeline_mode = #tpu.pipeline_mode<synchronous>, transform_indices = @transform_4, window_bounds = array<i64: 1, 1536>}, {pipeline_mode = #tpu.pipeline_mode<synchronous>, transform_indices = @transform_5, window_bounds = array<i64: 512, 768>}, {pipeline_mode = #tpu.pipeline_mode<synchronous>, transform_indices = @transform_6, window_bounds = array<i64: 1, 768>}, {pipeline_mode = #tpu.pipeline_mode<synchronous>, transform_indices = @transform_7, window_bounds = array<i64: 256, 128>}, {pipeline_mode = #tpu.pipeline_mode<synchronous>, transform_indices = @transform_8, window_bounds = array<i64: 1, 128>}, {pipeline_mode = #tpu.pipeline_mode<synchronous>, transform_indices = @transform_9, window_bounds = array<i64: 1, 128>}, {pipeline_mode = #tpu.pipeline_mode<synchronous>, transform_indices = @transform_10, window_bounds = array<i64: 1, 1>}, {transform_indices = @transform_11, window_bounds = array<i64: 1, 1, 8>}]} {
    %c0 = arith.constant 0 : index
    %c0_0 = arith.constant 0 : index
    %0 = vector.load %arg1[%c0, %c0_0] : memref<8x14xf32, #tpu.memory_space<vmem>>, vector<8x14xf32>
    %c0_1 = arith.constant 0 : index
    %c0_2 = arith.constant 0 : index
    %1 = vector.load %arg2[%c0_1, %c0_2] : memref<14x64xf32, #tpu.memory_space<vmem>>, vector<14x64xf32>
    %cst = arith.constant dense<0.000000e+00> : vector<8x64xf32>
    %2 = tpu.matmul %0, %1, %cst {dimension_numbers = #tpu.dot_dimension_numbers<[1], [0], [0], [1], [0, 0, 1, 1], [], []>} : vector<8x14xf32>, vector<14x64xf32>, vector<8x64xf32> -> vector<8x64xf32>
    %c0_3 = arith.constant 0 : index
    %c0_4 = arith.constant 0 : index
    %3 = vector.load %arg3[%c0_3, %c0_4] : memref<1x64xf32, #tpu.memory_space<vmem>>, vector<1x64xf32>
    %4 = vector.broadcast %3 : vector<1x64xf32> to vector<8x64xf32>
    %5 = arith.addf %2, %4 : vector<8x64xf32>
    %cst_5 = arith.constant 0.000000e+00 : f32
    %6 = vector.broadcast %cst_5 : f32 to vector<8x64xf32>
    %7 = arith.maximumf %5, %6 : vector<8x64xf32>
    %c0_6 = arith.constant 0 : index
    %c0_7 = arith.constant 0 : index
    %8 = vector.load %arg4[%c0_6, %c0_7] : memref<64x1536xf32, #tpu.memory_space<vmem>>, vector<64x1536xf32>
    %cst_8 = arith.constant dense<0.000000e+00> : vector<8x1536xf32>
    %9 = tpu.matmul %7, %8, %cst_8 {dimension_numbers = #tpu.dot_dimension_numbers<[1], [0], [0], [1], [0, 0, 1, 1], [], []>} : vector<8x64xf32>, vector<64x1536xf32>, vector<8x1536xf32> -> vector<8x1536xf32>
    %c0_9 = arith.constant 0 : index
    %c0_10 = arith.constant 0 : index
    %10 = vector.load %arg5[%c0_9, %c0_10] : memref<1x1536xf32, #tpu.memory_space<vmem>>, vector<1x1536xf32>
    %11 = vector.broadcast %10 : vector<1x1536xf32> to vector<8x1536xf32>
    %12 = arith.addf %9, %11 : vector<8x1536xf32>
    %13 = vector.extract_strided_slice %12 {offsets = [0, 0], sizes = [8, 512], strides = [1, 1]} : vector<8x1536xf32> to vector<8x512xf32>
    %14 = arith.negf %13 : vector<8x512xf32>
    %15 = math.exp %14 : vector<8x512xf32>
    %cst_11 = arith.constant 1.000000e+00 : f32
    %16 = vector.broadcast %cst_11 : f32 to vector<8x512xf32>
    %17 = arith.addf %16, %15 : vector<8x512xf32>
    %18 = arith.divf %16, %17 : vector<8x512xf32>
    %19 = vector.extract_strided_slice %12 {offsets = [0, 512], sizes = [8, 512], strides = [1, 1]} : vector<8x1536xf32> to vector<8x512xf32>
    %20 = math.tanh %19 : vector<8x512xf32>
    %21 = vector.extract_strided_slice %12 {offsets = [0, 1024], sizes = [8, 512], strides = [1, 1]} : vector<8x1536xf32> to vector<8x512xf32>
    %22 = arith.negf %21 : vector<8x512xf32>
    %23 = math.exp %22 : vector<8x512xf32>
    %cst_12 = arith.constant 1.000000e+00 : f32
    %24 = vector.broadcast %cst_12 : f32 to vector<8x512xf32>
    %25 = arith.addf %24, %23 : vector<8x512xf32>
    %26 = arith.divf %24, %25 : vector<8x512xf32>
    %27 = arith.mulf %18, %20 : vector<8x512xf32>
    %28 = math.tanh %27 : vector<8x512xf32>
    %29 = arith.mulf %26, %28 : vector<8x512xf32>
    %c0_13 = arith.constant 0 : index
    %c0_14 = arith.constant 0 : index
    %30 = vector.load %arg6[%c0_13, %c0_14] : memref<512x768xf32, #tpu.memory_space<vmem>>, vector<512x768xf32>
    %cst_15 = arith.constant dense<0.000000e+00> : vector<8x768xf32>
    %31 = tpu.matmul %29, %30, %cst_15 {dimension_numbers = #tpu.dot_dimension_numbers<[1], [0], [0], [1], [0, 0, 1, 1], [], []>} : vector<8x512xf32>, vector<512x768xf32>, vector<8x768xf32> -> vector<8x768xf32>
    %c0_16 = arith.constant 0 : index
    %c0_17 = arith.constant 0 : index
    %32 = vector.load %arg7[%c0_16, %c0_17] : memref<1x768xf32, #tpu.memory_space<vmem>>, vector<1x768xf32>
    %33 = vector.broadcast %32 : vector<1x768xf32> to vector<8x768xf32>
    %34 = arith.addf %31, %33 : vector<8x768xf32>
    %35 = vector.extract_strided_slice %34 {offsets = [0, 0], sizes = [8, 256], strides = [1, 1]} : vector<8x768xf32> to vector<8x256xf32>
    %36 = arith.negf %35 : vector<8x256xf32>
    %37 = math.exp %36 : vector<8x256xf32>
    %cst_18 = arith.constant 1.000000e+00 : f32
    %38 = vector.broadcast %cst_18 : f32 to vector<8x256xf32>
    %39 = arith.addf %38, %37 : vector<8x256xf32>
    %40 = arith.divf %38, %39 : vector<8x256xf32>
    %41 = vector.extract_strided_slice %34 {offsets = [0, 256], sizes = [8, 256], strides = [1, 1]} : vector<8x768xf32> to vector<8x256xf32>
    %42 = math.tanh %41 : vector<8x256xf32>
    %43 = vector.extract_strided_slice %34 {offsets = [0, 512], sizes = [8, 256], strides = [1, 1]} : vector<8x768xf32> to vector<8x256xf32>
    %44 = arith.negf %43 : vector<8x256xf32>
    %45 = math.exp %44 : vector<8x256xf32>
    %cst_19 = arith.constant 1.000000e+00 : f32
    %46 = vector.broadcast %cst_19 : f32 to vector<8x256xf32>
    %47 = arith.addf %46, %45 : vector<8x256xf32>
    %48 = arith.divf %46, %47 : vector<8x256xf32>
    %49 = arith.mulf %40, %42 : vector<8x256xf32>
    %50 = math.tanh %49 : vector<8x256xf32>
    %51 = arith.mulf %48, %50 : vector<8x256xf32>
    %c0_20 = arith.constant 0 : index
    %c0_21 = arith.constant 0 : index
    %52 = vector.load %arg8[%c0_20, %c0_21] : memref<256x128xf32, #tpu.memory_space<vmem>>, vector<256x128xf32>
    %cst_22 = arith.constant dense<0.000000e+00> : vector<8x128xf32>
    %53 = tpu.matmul %51, %52, %cst_22 {dimension_numbers = #tpu.dot_dimension_numbers<[1], [0], [0], [1], [0, 0, 1, 1], [], []>} : vector<8x256xf32>, vector<256x128xf32>, vector<8x128xf32> -> vector<8x128xf32>
    %c0_23 = arith.constant 0 : index
    %c0_24 = arith.constant 0 : index
    %54 = vector.load %arg9[%c0_23, %c0_24] : memref<1x128xf32, #tpu.memory_space<vmem>>, vector<1x128xf32>
    %55 = vector.broadcast %54 : vector<1x128xf32> to vector<8x128xf32>
    %56 = arith.addf %53, %55 : vector<8x128xf32>
    %cst_25 = arith.constant 0.000000e+00 : f32
    %57 = vector.broadcast %cst_25 : f32 to vector<8x128xf32>
    %58 = arith.maximumf %56, %57 : vector<8x128xf32>
    %c0_26 = arith.constant 0 : index
    %c0_27 = arith.constant 0 : index
    %59 = vector.load %arg10[%c0_26, %c0_27] : memref<1x128xf32, #tpu.memory_space<vmem>>, vector<1x128xf32>
    %cst_28 = arith.constant dense<0.000000e+00> : vector<1x8xf32>
    %60 = tpu.matmul %59, %58, %cst_28 {dimension_numbers = #tpu.dot_dimension_numbers<[1], [1], [0], [0], [0, 0, 1, 0], [], []>} : vector<1x128xf32>, vector<8x128xf32>, vector<1x8xf32> -> vector<1x8xf32>
    %c0_29 = arith.constant 0 : index
    %c0_30 = arith.constant 0 : index
    %61 = vector.load %arg11[%c0_29, %c0_30] : memref<1x1xf32, #tpu.memory_space<vmem>>, vector<1x1xf32>
    %62 = vector.broadcast %61 : vector<1x1xf32> to vector<1x8xf32>
    %63 = arith.addf %60, %62 : vector<1x8xf32>
    %64 = arith.negf %63 : vector<1x8xf32>
    %65 = math.exp %64 : vector<1x8xf32>
    %cst_31 = arith.constant 1.000000e+00 : f32
    %66 = vector.broadcast %cst_31 : f32 to vector<1x8xf32>
    %67 = arith.addf %66, %65 : vector<1x8xf32>
    %68 = arith.divf %66, %67 : vector<1x8xf32>
    %c0_32 = arith.constant 0 : index
    %c0_33 = arith.constant 0 : index
    %c0_34 = arith.constant 0 : index
    %69 = vector.load %arg12[%c0_32, %c0_33, %c0_34] : memref<1x1x8xf32, #tpu.memory_space<vmem>>, vector<1x1x8xf32>
    %70 = vector.shape_cast %69 : vector<1x1x8xf32> to vector<1x8xf32>
    %71 = vector.shape_cast %68 : vector<1x8xf32> to vector<1x1x8xf32>
    tpu.vector_store %arg12[%c0_32, %c0_33, %c0_34], %71 {strides = array<i32>} : memref<1x1x8xf32, #tpu.memory_space<vmem>>, vector<1x1x8xf32>,
    return
  }
  func.func @transform_0(%arg0: i32) -> (i32, i32) {
    %c0_i32 = arith.constant 0 : i32
    %c0_i32_0 = arith.constant 0 : i32
    return %arg0, %c0_i32 : i32, i32
  }
  func.func @transform_1(%arg0: i32) -> (i32, i32) {
    %c0_i32 = arith.constant 0 : i32
    %c0_i32_0 = arith.constant 0 : i32
    %c0_i32_1 = arith.constant 0 : i32
    return %c0_i32, %c0_i32_0 : i32, i32
  }
  func.func @transform_2(%arg0: i32) -> (i32, i32) {
    %c0_i32 = arith.constant 0 : i32
    %c0_i32_0 = arith.constant 0 : i32
    %c0_i32_1 = arith.constant 0 : i32
    return %c0_i32, %c0_i32_0 : i32, i32
  }
  func.func @transform_3(%arg0: i32) -> (i32, i32) {
    %c0_i32 = arith.constant 0 : i32
    %c0_i32_0 = arith.constant 0 : i32
    %c0_i32_1 = arith.constant 0 : i32
    return %c0_i32, %c0_i32_0 : i32, i32
  }
  func.func @transform_4(%arg0: i32) -> (i32, i32) {
    %c0_i32 = arith.constant 0 : i32
    %c0_i32_0 = arith.constant 0 : i32
    %c0_i32_1 = arith.constant 0 : i32
    return %c0_i32, %c0_i32_0 : i32, i32
  }
  func.func @transform_5(%arg0: i32) -> (i32, i32) {
    %c0_i32 = arith.constant 0 : i32
    %c0_i32_0 = arith.constant 0 : i32
    %c0_i32_1 = arith.constant 0 : i32
    return %c0_i32, %c0_i32_0 : i32, i32
  }
  func.func @transform_6(%arg0: i32) -> (i32, i32) {
    %c0_i32 = arith.constant 0 : i32
    %c0_i32_0 = arith.constant 0 : i32
    %c0_i32_1 = arith.constant 0 : i32
    return %c0_i32, %c0_i32_0 : i32, i32
  }
  func.func @transform_7(%arg0: i32) -> (i32, i32) {
    %c0_i32 = arith.constant 0 : i32
    %c0_i32_0 = arith.constant 0 : i32
    %c0_i32_1 = arith.constant 0 : i32
    return %c0_i32, %c0_i32_0 : i32, i32
  }
  func.func @transform_8(%arg0: i32) -> (i32, i32) {
    %c0_i32 = arith.constant 0 : i32
    %c0_i32_0 = arith.constant 0 : i32
    %c0_i32_1 = arith.constant 0 : i32
    return %c0_i32, %c0_i32_0 : i32, i32
  }
  func.func @transform_9(%arg0: i32) -> (i32, i32) {
    %c0_i32 = arith.constant 0 : i32
    %c0_i32_0 = arith.constant 0 : i32
    %c0_i32_1 = arith.constant 0 : i32
    return %c0_i32, %c0_i32_0 : i32, i32
  }
  func.func @transform_10(%arg0: i32) -> (i32, i32) {
    %c0_i32 = arith.constant 0 : i32
    %c0_i32_0 = arith.constant 0 : i32
    %c0_i32_1 = arith.constant 0 : i32
    return %c0_i32, %c0_i32_0 : i32, i32
  }
  func.func @transform_11(%arg0: i32) -> (i32, i32, i32) {
    %c0_i32 = arith.constant 0 : i32
    %c0_i32_0 = arith.constant 0 : i32
    %c0_i32_1 = arith.constant 0 : i32
    return %arg0, %c0_i32, %c0_i32_0 : i32, i32, i32
  }
}

module attributes {stable_mosaic.version = 11 : i64} {
  func.func @eeg_kernel(%arg0: i32, %arg1: memref<8x14xf32, #tpu.memory_space<vmem>>, %arg2: memref<14x64xf32, #tpu.memory_space<vmem>>, %arg3: memref<1x64xf32, #tpu.memory_space<vmem>>, %arg4: memref<64x1536xf32, #tpu.memory_space<vmem>>, %arg5: memref<1x1536xf32, #tpu.memory_space<vmem>>, %arg6: memref<512x768xf32, #tpu.memory_space<vmem>>, %arg7: memref<1x768xf32, #tpu.memory_space<vmem>>, %arg8: memref<256x128xf32, #tpu.memory_space<vmem>>, %arg9: memref<1x128xf32, #tpu.memory_space<vmem>>, %arg10: memref<1x128xf32, #tpu.memory_space<vmem>>, %arg11: memref<1x1xf32, #tpu.memory_space<vmem>>, %arg12: memref<1x1x8xf32, #tpu.memory_space<vmem>>) attributes {dimension_semantics = [#tpu.dimension_semantics<parallel>], iteration_bounds = array<i64: 1>, scalar_prefetch = 0 : i64, scratch_operands = 0 : i64, tpu.core_type = #tpu.core_type<tc>, window_params = [{transform_indices = @transform_0, window_bounds = array<i64: 8, 14>}, {pipeline_mode = #tpu.pipeline_mode<synchronous>, transform_indices = @transform_1, window_bounds = array<i64: 14, 64>}, {pipeline_mode = #tpu.pipeline_mode<synchronous>, transform_indices = @transform_2, window_bounds = array<i64: 1, 64>}, {pipeline_mode = #tpu.pipeline_mode<synchronous>, transform_indices = @transform_3, window_bounds = array<i64: 64, 1536>}, {pipeline_mode = #tpu.pipeline_mode<synchronous>, transform_indices = @transform_4, window_bounds = array<i64: 1, 1536>}, {pipeline_mode = #tpu.pipeline_mode<synchronous>, transform_indices = @transform_5, window_bounds = array<i64: 512, 768>}, {pipeline_mode = #tpu.pipeline_mode<synchronous>, transform_indices = @transform_6, window_bounds = array<i64: 1, 768>}, {pipeline_mode = #tpu.pipeline_mode<synchronous>, transform_indices = @transform_7, window_bounds = array<i64: 256, 128>}, {pipeline_mode = #tpu.pipeline_mode<synchronous>, transform_indices = @transform_8, window_bounds = array<i64: 1, 128>}, {pipeline_mode = #tpu.pipeline_mode<synchronous>, transform_indices = @transform_9, window_bounds = array<i64: 1, 128>}, {pipeline_mode = #tpu.pipeline_mode<synchronous>, transform_indices = @transform_10, window_bounds = array<i64: 1, 1>}, {transform_indices = @transform_11, window_bounds = array<i64: 1, 1, 8>}]} {
    %c0 = arith.constant 0 : index
    %c0_0 = arith.constant 0 : index
    %0 = vector.load %arg1[%c0, %c0_0] : memref<8x14xf32, #tpu.memory_space<vmem>>, vector<8x14xf32>
    %c0_1 = arith.constant 0 : index
    %c0_2 = arith.constant 0 : index
    %1 = vector.load %arg2[%c0_1, %c0_2] : memref<14x64xf32, #tpu.memory_space<vmem>>, vector<14x64xf32>
    %cst = arith.constant dense<0.000000e+00> : vector<8x64xf32>
    %2 = tpu.matmul %0, %1, %cst {dimension_numbers = #tpu.dot_dimension_numbers<[1], [0], [0], [1], [0, 0, 1, 1], [], []>} : vector<8x14xf32>, vector<14x64xf32>, vector<8x64xf32> -> vector<8x64xf32>
    %c0_3 = arith.constant 0 : index
    %c0_4 = arith.constant 0 : index
    %3 = vector.load %arg3[%c0_3, %c0_4] : memref<1x64xf32, #tpu.memory_space<vmem>>, vector<1x64xf32>
    %4 = vector.broadcast %3 : vector<1x64xf32> to vector<8x64xf32>
    %5 = arith.addf %2, %4 : vector<8x64xf32>
    %cst_5 = arith.constant 0.000000e+00 : f32
    %6 = vector.broadcast %cst_5 : f32 to vector<8x64xf32>
    %7 = arith.maximumf %5, %6 : vector<8x64xf32>
    %c0_6 = arith.constant 0 : index
    %c0_7 = arith.constant 0 : index
    %8 = vector.load %arg4[%c0_6, %c0_7] : memref<64x1536xf32, #tpu.memory_space<vmem>>, vector<64x1536xf32>
    %cst_8 = arith.constant dense<0.000000e+00> : vector<8x1536xf32>
    %9 = tpu.matmul %7, %8, %cst_8 {dimension_numbers = #tpu.dot_dimension_numbers<[1], [0], [0], [1], [0, 0, 1, 1], [], []>} : vector<8x64xf32>, vector<64x1536xf32>, vector<8x1536xf32> -> vector<8x1536xf32>
    %c0_9 = arith.constant 0 : index
    %c0_10 = arith.constant 0 : index
    %10 = vector.load %arg5[%c0_9, %c0_10] : memref<1x1536xf32, #tpu.memory_space<vmem>>, vector<1x1536xf32>
    %11 = vector.broadcast %10 : vector<1x1536xf32> to vector<8x1536xf32>
    %12 = arith.addf %9, %11 : vector<8x1536xf32>
    %13 = vector.extract_strided_slice %12 {offsets = [0, 0], sizes = [8, 512], strides = [1, 1]} : vector<8x1536xf32> to vector<8x512xf32>
    %14 = arith.negf %13 : vector<8x512xf32>
    %15 = math.exp %14 : vector<8x512xf32>
    %cst_11 = arith.constant 1.000000e+00 : f32
    %16 = vector.broadcast %cst_11 : f32 to vector<8x512xf32>
    %17 = arith.addf %16, %15 : vector<8x512xf32>
    %18 = arith.divf %16, %17 : vector<8x512xf32>
    %19 = vector.extract_strided_slice %12 {offsets = [0, 512], sizes = [8, 512], strides = [1, 1]} : vector<8x1536xf32> to vector<8x512xf32>
    %20 = math.tanh %19 : vector<8x512xf32>
    %21 = vector.extract_strided_slice %12 {offsets = [0, 1024], sizes = [8, 512], strides = [1, 1]} : vector<8x1536xf32> to vector<8x512xf32>
    %22 = arith.negf %21 : vector<8x512xf32>
    %23 = math.exp %22 : vector<8x512xf32>
    %cst_12 = arith.constant 1.000000e+00 : f32
    %24 = vector.broadcast %cst_12 : f32 to vector<8x512xf32>
    %25 = arith.addf %24, %23 : vector<8x512xf32>
    %26 = arith.divf %24, %25 : vector<8x512xf32>
    %27 = arith.mulf %18, %20 : vector<8x512xf32>
    %28 = math.tanh %27 : vector<8x512xf32>
    %29 = arith.mulf %26, %28 : vector<8x512xf32>
    %c0_13 = arith.constant 0 : index
    %c0_14 = arith.constant 0 : index
    %30 = vector.load %arg6[%c0_13, %c0_14] : memref<512x768xf32, #tpu.memory_space<vmem>>, vector<512x768xf32>
    %cst_15 = arith.constant dense<0.000000e+00> : vector<8x768xf32>
    %31 = tpu.matmul %29, %30, %cst_15 {dimension_numbers = #tpu.dot_dimension_numbers<[1], [0], [0], [1], [0, 0, 1, 1], [], []>} : vector<8x512xf32>, vector<512x768xf32>, vector<8x768xf32> -> vector<8x768xf32>
    %c0_16 = arith.constant 0 : index
    %c0_17 = arith.constant 0 : index
    %32 = vector.load %arg7[%c0_16, %c0_17] : memref<1x768xf32, #tpu.memory_space<vmem>>, vector<1x768xf32>
    %33 = vector.broadcast %32 : vector<1x768xf32> to vector<8x768xf32>
    %34 = arith.addf %31, %33 : vector<8x768xf32>
    %35 = vector.extract_strided_slice %34 {offsets = [0, 0], sizes = [8, 256], strides = [1, 1]} : vector<8x768xf32> to vector<8x256xf32>
    %36 = arith.negf %35 : vector<8x256xf32>
    %37 = math.exp %36 : vector<8x256xf32>
    %cst_18 = arith.constant 1.000000e+00 : f32
    %38 = vector.broadcast %cst_18 : f32 to vector<8x256xf32>
    %39 = arith.addf %38, %37 : vector<8x256xf32>
    %40 = arith.divf %38, %39 : vector<8x256xf32>
    %41 = vector.extract_strided_slice %34 {offsets = [0, 256], sizes = [8, 256], strides = [1, 1]} : vector<8x768xf32> to vector<8x256xf32>
    %42 = math.tanh %41 : vector<8x256xf32>
    %43 = vector.extract_strided_slice %34 {offsets = [0, 512], sizes = [8, 256], strides = [1, 1]} : vector<8x768xf32> to vector<8x256xf32>
    %44 = arith.negf %43 : vector<8x256xf32>
    %45 = math.exp %44 : vector<8x256xf32>
    %cst_19 = arith.constant 1.000000e+00 : f32
    %46 = vector.broadcast %cst_19 : f32 to vector<8x256xf32>
    %47 = arith.addf %46, %45 : vector<8x256xf32>
    %48 = arith.divf %46, %47 : vector<8x256xf32>
    %49 = arith.mulf %40, %42 : vector<8x256xf32>
    %50 = math.tanh %49 : vector<8x256xf32>
    %51 = arith.mulf %48, %50 : vector<8x256xf32>
    %c0_20 = arith.constant 0 : index
    %c0_21 = arith.constant 0 : index
    %52 = vector.load %arg8[%c0_20, %c0_21] : memref<256x128xf32, #tpu.memory_space<vmem>>, vector<256x128xf32>
    %cst_22 = arith.constant dense<0.000000e+00> : vector<8x128xf32>
    %53 = tpu.matmul %51, %52, %cst_22 {dimension_numbers = #tpu.dot_dimension_numbers<[1], [0], [0], [1], [0, 0, 1, 1], [], []>} : vector<8x256xf32>, vector<256x128xf32>, vector<8x128xf32> -> vector<8x128xf32>
    %c0_23 = arith.constant 0 : index
    %c0_24 = arith.constant 0 : index
    %54 = vector.load %arg9[%c0_23, %c0_24] : memref<1x128xf32, #tpu.memory_space<vmem>>, vector<1x128xf32>
    %55 = vector.broadcast %54 : vector<1x128xf32> to vector<8x128xf32>
    %56 = arith.addf %53, %55 : vector<8x128xf32>
    %cst_25 = arith.constant 0.000000e+00 : f32
    %57 = vector.broadcast %cst_25 : f32 to vector<8x128xf32>
    %58 = arith.maximumf %56, %57 : vector<8x128xf32>
    %c0_26 = arith.constant 0 : index
    %c0_27 = arith.constant 0 : index
    %59 = vector.load %arg10[%c0_26, %c0_27] : memref<1x128xf32, #tpu.memory_space<vmem>>, vector<1x128xf32>
    %cst_28 = arith.constant dense<0.000000e+00> : vector<1x8xf32>
    %60 = tpu.matmul %59, %58, %cst_28 {dimension_numbers = #tpu.dot_dimension_numbers<[1], [1], [0], [0], [0, 0, 1, 0], [], []>} : vector<1x128xf32>, vector<8x128xf32>, vector<1x8xf32> -> vector<1x8xf32>
    %c0_29 = arith.constant 0 : index
    %c0_30 = arith.constant 0 : index
    %61 = vector.load %arg11[%c0_29, %c0_30] : memref<1x1xf32, #tpu.memory_space<vmem>>, vector<1x1xf32>
    %62 = vector.broadcast %61 : vector<1x1xf32> to vector<1x8xf32>
    %63 = arith.addf %60, %62 : vector<1x8xf32>
    %64 = arith.negf %63 : vector<1x8xf32>
    %65 = math.exp %64 : vector<1x8xf32>
    %cst_31 = arith.constant 1.000000e+00 : f32
    %66 = vector.broadcast %cst_31 : f32 to vector<1x8xf32>
    %67 = arith.addf %66, %65 : vector<1x8xf32>
    %68 = arith.divf %66, %67 : vector<1x8xf32>
    %c0_32 = arith.constant 0 : index
    %c0_33 = arith.constant 0 : index
    %c0_34 = arith.constant 0 : index
    %69 = vector.load %arg12[%c0_32, %c0_33, %c0_34] : memref<1x1x8xf32, #tpu.memory_space<vmem>>, vector<1x1x8xf32>
    %70 = vector.shape_cast %69 : vector<1x1x8xf32> to vector<1x8xf32>
    %71 = vector.shape_cast %68 : vector<1x8xf32> to vector<1x1x8xf32>
    tpu.vector_store %arg12[%c0_32, %c0_33, %c0_34], %71 {strides = array<i32>} : memref<1x1x8xf32, #tpu.memory_space<vmem>>, vector<1x1x8xf32>,
    return
  }
  func.func @transform_0(%arg0: i32) -> (i32, i32) {
    %c0_i32 = arith.constant 0 : i32
    %c0_i32_0 = arith.constant 0 : i32
    return %arg0, %c0_i32 : i32, i32
  }
  func.func @transform_1(%arg0: i32) -> (i32, i32) {
    %c0_i32 = arith.constant 0 : i32
    %c0_i32_0 = arith.constant 0 : i32
    %c0_i32_1 = arith.constant 0 : i32
    return %c0_i32, %c0_i32_0 : i32, i32
  }
  func.func @transform_2(%arg0: i32) -> (i32, i32) {
    %c0_i32 = arith.constant 0 : i32
    %c0_i32_0 = arith.constant 0 : i32
    %c0_i32_1 = arith.constant 0 : i32
    return %c0_i32, %c0_i32_0 : i32, i32
  }
  func.func @transform_3(%arg0: i32) -> (i32, i32) {
    %c0_i32 = arith.constant 0 : i32
    %c0_i32_0 = arith.constant 0 : i32
    %c0_i32_1 = arith.constant 0 : i32
    return %c0_i32, %c0_i32_0 : i32, i32
  }
  func.func @transform_4(%arg0: i32) -> (i32, i32) {
    %c0_i32 = arith.constant 0 : i32
    %c0_i32_0 = arith.constant 0 : i32
    %c0_i32_1 = arith.constant 0 : i32
    return %c0_i32, %c0_i32_0 : i32, i32
  }
  func.func @transform_5(%arg0: i32) -> (i32, i32) {
    %c0_i32 = arith.constant 0 : i32
    %c0_i32_0 = arith.constant 0 : i32
    %c0_i32_1 = arith.constant 0 : i32
    return %c0_i32, %c0_i32_0 : i32, i32
  }
  func.func @transform_6(%arg0: i32) -> (i32, i32) {
    %c0_i32 = arith.constant 0 : i32
    %c0_i32_0 = arith.constant 0 : i32
    %c0_i32_1 = arith.constant 0 : i32
    return %c0_i32, %c0_i32_0 : i32, i32
  }
  func.func @transform_7(%arg0: i32) -> (i32, i32) {
    %c0_i32 = arith.constant 0 : i32
    %c0_i32_0 = arith.constant 0 : i32
    %c0_i32_1 = arith.constant 0 : i32
    return %c0_i32, %c0_i32_0 : i32, i32
  }
  func.func @transform_8(%arg0: i32) -> (i32, i32) {
    %c0_i32 = arith.constant 0 : i32
    %c0_i32_0 = arith.constant 0 : i32
    %c0_i32_1 = arith.constant 0 : i32
    return %c0_i32, %c0_i32_0 : i32, i32
  }
  func.func @transform_9(%arg0: i32) -> (i32, i32) {
    %c0_i32 = arith.constant 0 : i32
    %c0_i32_0 = arith.constant 0 : i32
    %c0_i32_1 = arith.constant 0 : i32
    return %c0_i32, %c0_i32_0 : i32, i32
  }
  func.func @transform_10(%arg0: i32) -> (i32, i32) {
    %c0_i32 = arith.constant 0 : i32
    %c0_i32_0 = arith.constant 0 : i32
    %c0_i32_1 = arith.constant 0 : i32
    return %c0_i32, %c0_i32_0 : i32, i32
  }
  func.func @transform_11(%arg0: i32) -> (i32, i32, i32) {
    %c0_i32 = arith.constant 0 : i32
    %c0_i32_0 = arith.constant 0 : i32
    %c0_i32_1 = arith.constant 0 : i32
    return %arg0, %c0_i32, %c0_i32_0 : i32, i32, i32
  }
}

</mosaic_0001>

<bundles_post_ra>
// kernel: tpu_custom_call.1
= control target key start
LH: loop header
LB: loop body
LE: loop exit
PB: predicated region body
PF: predicated region fallthrough
CT: control target
= control target key end

     0   :  { %s3276_s0 = inlined_call_operand.hbm [shape: f32[8,14], index: 0, kind: input, shape index: {}]   ;;  %s3277_s1 = inlined_call_operand.hbm [shape: f32[14,64], index: 1, kind: input, shape index: {}]   ;;  %s3278_s2 = inlined_call_operand.hbm [shape: f32[1,64], index: 2, kind: input, shape index: {}]   ;;  %s3279_s3 = inlined_call_operand.hbm [shape: f32[64,1536], index: 3, kind: input, shape index: {}]   ;;  %s3280_s4 = inlined_call_operand.hbm [shape: f32[1,1536], index: 4, kind: input, shape index: {}]   ;;  %s3281_s5 = inlined_call_operand.hbm [shape: f32[512,768], index: 5, kind: input, shape index: {}]   ;;  %s3282_s6 = inlined_call_operand.hbm [shape: f32[1,768], index: 6, kind: input, shape index: {}]   ;;  %s3283_s7 = inlined_call_operand.hbm [shape: f32[256,128], index: 7, kind: input, shape index: {}]   ;;  %s3284_s8 = inlined_call_operand.hbm [shape: f32[1,128], index: 8, kind: input, shape index: {}]   ;;  %s3285_s9 = inlined_call_operand.hbm [shape: f32[1,128], index: 9, kind: input, shape index: {}]   ;;  %s3286_s10 = inlined_call_operand.<no memory space> [shape: f32[1,1], index: 10, kind: input, shape index: {}]   ;;  %s3287_s11 = inlined_call_operand.hbm [shape: f32[1,1,8], index: 11, kind: output, shape index: {}]  }
   0x1   :  { %v16_v0 = vstv %s3286_s10 }
   0x2   :  { %17 = vst [vmem:[#allocation2] sm:$0x1] %v16_v0 }
   0x3   :  { %18 = vsyncpa [#allocation4], 0 }
   0x4   :  { %19 = vsyncpa [#allocation7], 0 }
   0x5   :  { %20 = vsyncpa [#allocation10], 0 }
   0x6   :  { %21 = vsyncpa [#allocation13], 0 }
   0x7   :  { %22 = vsyncpa [#allocation16], 0 }
   0x8   :  { %23 = vsyncpa [#allocation19], 0 }
   0x9   :  { %24 = vsyncpa [#allocation5], 0  ;;  %s2959_s19 = smov [#allocation6]   ;;  %s2703_s23 = scalar_lea.hbm %s3277_s1, 256 }
   0xa   :  { %s40_s20 = sshll.u32 %s2959_s19, 4  ;;  %p2704_p0 = scmp.ne.s32.totalorder %s3277_s1, %s2703_s23  ;;  %s41_s20 = int_to_ptr.vmem [resolvable:$true] %s40_s20 }
   0xb   :  { %p2707_p1 = scmp.lt.u32.totalorder %s2703_s23, %s3277_s1 }
   0xd   :  { %p2709_p2 = pnand %p2707_p1, %p2704_p0 }
   0xf   :  { %2712 = shalt.err (!%p2709_p2)
}
  0x10   :  { %s2713_s27 = scalar_lea.vmem %s41_s20, 256  ;;  %p2718_p4 = scmp.lt.s32.totalorder %s41_s20, %s41_s20 }
  0x11   :  { %p2714_p3 = scmp.ne.s32.totalorder %s41_s20, %s2713_s27  ;;  %p2719_p5 = scmp.lt.s32.totalorder %s2713_s27, %s2713_s27 }
  0x13   :  { %p2720_p6 = por %p2719_p5, %p2718_p4 }
  0x15   :  { %p2721_p7 = pnand %p2720_p6, %p2714_p3 }
  0x17   :  { %2724 = shalt.err (!%p2721_p7)
}
  0x18   :  { %s2960_s28 = smov 128   ;;  %s2961_s29 = smov 8  }
  0x19   :  { %46 = dma.hbm_to_vmem [thread:$0]  %s3277_s1, 256, %s41_s20, [#allocation7], %s2960_s28, %s2960_s28, %s2961_s29  }
  0x1a   :  { %s2962_s13 = smov [#allocation9]   ;;  %s2725_s17 = scalar_lea.hbm %s3279_s3, 12288 }
  0x1b   :  { %s62_s14 = sshll.u32 %s2962_s13, 4  ;;  %p2726_p8 = scmp.ne.s32.totalorder %s3279_s3, %s2725_s17  ;;  %s63_s14 = int_to_ptr.vmem [resolvable:$true] %s62_s14 }
  0x1c   :  { %p2729_p9 = scmp.lt.u32.totalorder %s2725_s17, %s3279_s3 }
  0x1e   :  { %p2731_p10 = pnand %p2729_p9, %p2726_p8 }
  0x20   :  { %2734 = shalt.err (!%p2731_p10)
}
  0x21   :  { %s2735_s23 = scalar_lea.vmem %s63_s14, 12288  ;;  %p2740_p12 = scmp.lt.s32.totalorder %s63_s14, %s63_s14 }
  0x22   :  { %p2736_p11 = scmp.ne.s32.totalorder %s63_s14, %s2735_s23  ;;  %p2741_p13 = scmp.lt.s32.totalorder %s2735_s23, %s2735_s23 }
  0x24   :  { %p2742_p0 = por %p2741_p13, %p2740_p12 }
  0x26   :  { %p2743_p1 = pnand %p2742_p0, %p2736_p11 }
  0x28   :  { %2746 = shalt.err (!%p2743_p1)
}
  0x29   :  { %s2963_s1 = smov 1536   ;;  %s2964_s20 = smov 96  }
  0x2a   :  { %68 = dma.hbm_to_vmem [thread:$0]  %s3279_s3, 12288, %s63_s14, [#allocation10], %s2963_s1, %s2963_s1, %s2964_s20  }
  0x2b   :  { %s2965_s10 = smov [#allocation12]   ;;  %s2747_s12 = scalar_lea.hbm %s3281_s5, 49152 }
  0x2c   :  { %s84_s26 = sshll.u32 %s2965_s10, 4  ;;  %p2748_p2 = scmp.ne.s32.totalorder %s3281_s5, %s2747_s12  ;;  %s85_s26 = int_to_ptr.vmem [resolvable:$true] %s84_s26 }
  0x2d   :  { %p2751_p3 = scmp.lt.u32.totalorder %s2747_s12, %s3281_s5 }
  0x2f   :  { %p2753_p4 = pnand %p2751_p3, %p2748_p2 }
  0x31   :  { %2756 = shalt.err (!%p2753_p4)
}
  0x32   :  { %s2757_s18 = scalar_lea.vmem %s85_s26, 49152  ;;  %p2762_p6 = scmp.lt.s32.totalorder %s85_s26, %s85_s26 }
  0x33   :  { %p2758_p5 = scmp.ne.s32.totalorder %s85_s26, %s2757_s18  ;;  %p2763_p7 = scmp.lt.s32.totalorder %s2757_s18, %s2757_s18 }
  0x35   :  { %p2764_p8 = por %p2763_p7, %p2762_p6 }
  0x37   :  { %p2765_p9 = pnand %p2764_p8, %p2758_p5 }
  0x39   :  { %2768 = shalt.err (!%p2765_p9)
}
  0x3a   :  { %s2966_s3 = smov 768   ;;  %s2967_s14 = smov 48  }
  0x3b   :  { %90 = dma.hbm_to_vmem [thread:$0]  %s3281_s5, 49152, %s85_s26, [#allocation13], %s2966_s3, %s2966_s3, %s2967_s14  }
  0x3c   :  { %s2968_s22 = smov [#allocation15]   ;;  %s2969_s1 = smov [#allocation3]  }
  0x3d   :  { %s106_s23 = sshll.u32 %s2968_s22, 4  ;;  %s31_s20 = sshll.u32 %s2969_s1, 4  ;;  %s107_s23 = int_to_ptr.vmem [resolvable:$true] %s106_s23  ;;  %s32_s20 = int_to_ptr.vmem [resolvable:$true] %s31_s20 }
  0x3e   :  { %s2769_s10 = scalar_lea.hbm %s3283_s7, 4096 }
  0x3f   :  { %p2770_p10 = scmp.ne.s32.totalorder %s3283_s7, %s2769_s10  ;;  %p2773_p11 = scmp.lt.u32.totalorder %s2769_s10, %s3283_s7 }
  0x41   :  { %p2775_p12 = pnand %p2773_p11, %p2770_p10 }
  0x43   :  { %2778 = shalt.err (!%p2775_p12)
}
  0x44   :  { %s2779_s5 = scalar_lea.vmem %s107_s23, 4096  ;;  %p2784_p0 = scmp.lt.s32.totalorder %s107_s23, %s107_s23 }
  0x45   :  { %p2780_p13 = scmp.ne.s32.totalorder %s107_s23, %s2779_s5  ;;  %p2785_p1 = scmp.lt.s32.totalorder %s2779_s5, %s2779_s5 }
  0x47   :  { %p2786_p2 = por %p2785_p1, %p2784_p0 }
  0x49   :  { %p2787_p3 = pnand %p2786_p2, %p2780_p13 }
  0x4b   :  { %2790 = shalt.err (!%p2787_p3)
}
  0x4c   :  { %112 = dma.hbm_to_vmem [thread:$0]  %s3283_s7, 4096, %s107_s23, [#allocation16], %s2960_s28, %s2960_s28, %s2961_s29  }
  0x4d   :  { %s2791_s18 = scalar_lea.hbm %s3276_s0, 128 }
  0x4e   :  { %p2792_p4 = scmp.ne.s32.totalorder %s3276_s0, %s2791_s18  ;;  %p2795_p5 = scmp.lt.u32.totalorder %s2791_s18, %s3276_s0 }
  0x50   :  { %p2797_p6 = pnand %p2795_p5, %p2792_p4 }
  0x52   :  { %2800 = shalt.err (!%p2797_p6)
}
  0x53   :  { %s2801_s22 = scalar_lea.vmem %s32_s20, 128  ;;  %p2806_p8 = scmp.lt.s32.totalorder %s32_s20, %s32_s20 }
  0x54   :  { %p2802_p7 = scmp.ne.s32.totalorder %s32_s20, %s2801_s22  ;;  %p2807_p9 = scmp.lt.s32.totalorder %s2801_s22, %s2801_s22 }
  0x56   :  { %p2808_p10 = por %p2807_p9, %p2806_p8 }
  0x58   :  { %p2809_p11 = pnand %p2808_p10, %p2802_p7 }
  0x5a   :  { %2812 = shalt.err (!%p2809_p11)
}
  0x5b   :  { %34 = dma.hbm_to_vmem [thread:$0]  %s3276_s0, 128, %s32_s20, [#allocation4]  }
  0x5c   :  { %s2970_s29 = smov [#allocation8]   ;;  %s2971_s1 = smov [#allocation11]  }
  0x5d   :  { %s53_s23 = sshll.u32 %s2970_s29, 4  ;;  %s75_s24 = sshll.u32 %s2971_s1, 4  ;;  %s54_s23 = int_to_ptr.vmem [resolvable:$true] %s53_s23  ;;  %s76_s24 = int_to_ptr.vmem [resolvable:$true] %s75_s24 }
  0x5e   :  { %s2813_s27 = scalar_lea.hbm %s3278_s2, 16 }
  0x5f   :  { %p2814_p12 = scmp.ne.s32.totalorder %s3278_s2, %s2813_s27  ;;  %p2817_p13 = scmp.lt.u32.totalorder %s2813_s27, %s3278_s2 }
  0x61   :  { %p2819_p0 = pnand %p2817_p13, %p2814_p12 }
  0x63   :  { %2822 = shalt.err (!%p2819_p0)
}
  0x64   :  { %s2823_s0 = scalar_lea.vmem %s54_s23, 16  ;;  %s2827_s20 = scalar_lea.vmem %s54_s23, 32 }
  0x65   :  { %p2824_p1 = scmp.ne.s32.totalorder %s54_s23, %s2823_s0  ;;  %p2828_p2 = scmp.lt.s32.totalorder %s54_s23, %s54_s23 }
  0x66   :  { %p2829_p3 = scmp.lt.s32.totalorder %s2827_s20, %s2823_s0 }
  0x68   :  { %p2830_p4 = por %p2829_p3, %p2828_p2 }
  0x6a   :  { %p2831_p5 = pnand %p2830_p4, %p2824_p1 }
  0x6c   :  { %2834 = shalt.err (!%p2831_p5)
}
  0x6d   :  { %56 = dma.hbm_to_vmem [thread:$0]  %s3278_s2, 16, %s54_s23, [#allocation7]  }
  0x6e   :  { %s2835_s18 = scalar_lea.hbm %s3280_s4, 192 }
  0x6f   :  { %p2836_p6 = scmp.ne.s32.totalorder %s3280_s4, %s2835_s18  ;;  %p2839_p7 = scmp.lt.u32.totalorder %s2835_s18, %s3280_s4 }
  0x71   :  { %p2841_p8 = pnand %p2839_p7, %p2836_p6 }
  0x73   :  { %2844 = shalt.err (!%p2841_p8)
}
  0x74   :  { %s2845_s22 = scalar_lea.vmem %s76_s24, 192  ;;  %p2850_p10 = scmp.lt.s32.totalorder %s76_s24, %s76_s24 }
  0x75   :  { %p2846_p9 = scmp.ne.s32.totalorder %s76_s24, %s2845_s22  ;;  %p2851_p11 = scmp.lt.s32.totalorder %s2845_s22, %s2845_s22 }
  0x77   :  { %p2852_p12 = por %p2851_p11, %p2850_p10 }
  0x79   :  { %p2853_p13 = pnand %p2852_p12, %p2846_p9 }
  0x7b   :  { %2856 = shalt.err (!%p2853_p13)
}
  0x7c   :  { %78 = dma.hbm_to_vmem [thread:$0]  %s3280_s4, 192, %s76_s24, [#allocation10]  }
  0x7d   :  { %s2972_s28 = smov [#allocation14]   ;;  %s2973_s23 = smov [#allocation17]  }
  0x7e   :  { %s97_s29 = sshll.u32 %s2972_s28, 4  ;;  %s119_s1 = sshll.u32 %s2973_s23, 4  ;;  %s98_s29 = int_to_ptr.vmem [resolvable:$true] %s97_s29  ;;  %s120_s1 = int_to_ptr.vmem [resolvable:$true] %s119_s1 }
  0x7f   :  { %s2857_s27 = scalar_lea.hbm %s3282_s6, 96 }
  0x80   :  { %p2858_p0 = scmp.ne.s32.totalorder %s3282_s6, %s2857_s27  ;;  %p2861_p1 = scmp.lt.u32.totalorder %s2857_s27, %s3282_s6 }
  0x82   :  { %p2863_p2 = pnand %p2861_p1, %p2858_p0 }
  0x84   :  { %2866 = shalt.err (!%p2863_p2)
}
  0x85   :  { %s2867_s4 = scalar_lea.vmem %s98_s29, 96  ;;  %p2872_p4 = scmp.lt.s32.totalorder %s98_s29, %s98_s29 }
  0x86   :  { %p2868_p3 = scmp.ne.s32.totalorder %s98_s29, %s2867_s4  ;;  %p2873_p5 = scmp.lt.s32.totalorder %s2867_s4, %s2867_s4 }
  0x88   :  { %p2874_p6 = por %p2873_p5, %p2872_p4 }
  0x8a   :  { %p2875_p7 = pnand %p2874_p6, %p2868_p3 }
  0x8c   :  { %2878 = shalt.err (!%p2875_p7)
}
  0x8d   :  { %100 = dma.hbm_to_vmem [thread:$0]  %s3282_s6, 96, %s98_s29, [#allocation13]  }
  0x8e   :  { %s2879_s15 = scalar_lea.hbm %s3284_s8, 16 }
  0x8f   :  { %p2880_p8 = scmp.ne.s32.totalorder %s3284_s8, %s2879_s15  ;;  %p2883_p9 = scmp.lt.u32.totalorder %s2879_s15, %s3284_s8 }
  0x91   :  { %p2885_p10 = pnand %p2883_p9, %p2880_p8 }
  0x93   :  { %2888 = shalt.err (!%p2885_p10)
}
  0x94   :  { %s2889_s14 = scalar_lea.vmem %s120_s1, 16  ;;  %s2893_s19 = scalar_lea.vmem %s120_s1, 32 }
  0x95   :  { %p2890_p11 = scmp.ne.s32.totalorder %s120_s1, %s2889_s14  ;;  %p2894_p12 = scmp.lt.s32.totalorder %s120_s1, %s120_s1 }
  0x96   :  { %p2895_p13 = scmp.lt.s32.totalorder %s2893_s19, %s2889_s14 }
  0x98   :  { %p2896_p0 = por %p2895_p13, %p2894_p12 }
  0x9a   :  { %p2897_p1 = pnand %p2896_p0, %p2890_p11 }
  0x9c   :  { %2900 = shalt.err (!%p2897_p1)
}
  0x9d   :  { %122 = dma.hbm_to_vmem [thread:$0]  %s3284_s8, 16, %s120_s1, [#allocation16]  }
  0x9e   :  { %s2974_s22 = smov [#allocation18]   ;;  %s2901_s29 = scalar_lea.hbm %s3285_s9, 16 }
  0x9f   :  { %s129_s2 = sshll.u32 %s2974_s22, 4  ;;  %p2902_p2 = scmp.ne.s32.totalorder %s3285_s9, %s2901_s29  ;;  %s130_s2 = int_to_ptr.vmem [resolvable:$true] %s129_s2 }
  0xa0   :  { %p2905_p3 = scmp.lt.u32.totalorder %s2901_s29, %s3285_s9 }
  0xa2   :  { %p2907_p4 = pnand %p2905_p3, %p2902_p2 }
  0xa4   :  { %2910 = shalt.err (!%p2907_p4)
}
  0xa5   :  { %s2911_s30 = scalar_lea.vmem %s130_s2, 16  ;;  %s2915_s8 = scalar_lea.vmem %s130_s2, 32 }
  0xa6   :  { %p2912_p5 = scmp.ne.s32.totalorder %s130_s2, %s2911_s30  ;;  %p2916_p6 = scmp.lt.s32.totalorder %s130_s2, %s130_s2 }
  0xa7   :  { %p2917_p7 = scmp.lt.s32.totalorder %s2915_s8, %s2911_s30 }
  0xa9   :  { %p2918_p8 = por %p2917_p7, %p2916_p6 }
  0xab   :  { %p2919_p9 = pnand %p2918_p8, %p2912_p5 }
  0xad   :  { %2922 = shalt.err (!%p2919_p9)
}
  0xae   :  { %132 = dma.hbm_to_vmem [thread:$0]  %s3285_s9, 16, %s130_s2, [#allocation19]  }
  0xaf   :  { %2945 = dma.done.wait [#allocation4], 128  }
  0xb0   :  { %2946 = vsyncadd [#allocation4], 4294967168 }
  0xb1   :  { %2947 = dma.done.wait [#allocation7], 272  }
  0xb2   :  { %2948 = vsyncadd [#allocation7], 4294967024 }
  0xb3   :  { %2949 = dma.done.wait [#allocation10], 12480  }
  0xb4   :  { %2950 = vsyncadd [#allocation10], 4294954816 }
  0xb5   :  { %2951 = dma.done.wait [#allocation13], 49248  }
  0xb6   :  { %2952 = vsyncadd [#allocation13], 4294918048 }
  0xb7   :  { %2953 = dma.done.wait [#allocation16], 4112  }
  0xb8   :  { %2954 = vsyncadd [#allocation16], 4294963184 }
  0xb9   :  { %2955 = dma.done.wait [#allocation19], 16  }
  0xba   :  { %2956 = vsyncadd [#allocation19], 4294967280  ;;  %v2975_v1 = vmov 0.0|0.0   ;;  %vm2976_vm0 = vmmov 0   ;;  %v2977_v2 = vmov 0.0   ;;  %vm179_vm1 = vcmask 1045504  }
  0xbb   :  { %2076 = vmatprep.subr.bf16.mxu1 %v2975_v1  ;;  %2068 = vmatprep.mubr.msk.f32.mxu1 %vm2976_vm0, %v2977_v2  ;;  %v166_v3 = vld [vmem:[#allocation6] sm:$0xff]  ;;  %v167_v4 = vld [vmem:[#allocation6 + $0x8] sm:$0x3f]  ;;  %vm2978_vm2 = vmmov 1   ;;  %v165_v6 = vld [vmem:[#allocation3] sm:$0xff]  ;;  %vm175_vm4 = vcmask 113664  }
  0xbc   :  { %695 = vmatprep.mubr.f32.mxu0 %v2977_v2  ;;  %vm2078_vm3 = vmpackc.low %vm179_vm1, %vm2978_vm2  ;;  %v2077_v5 = vpack.c.bf16 %v167_v4, %v166_v3  ;;  %v255_v7 = vld [vmem:[#allocation9 + $0x8] sm:$0xff]  ;;  %v261_v9 = vld [vmem:[#allocation9 + $0x38] sm:$0xff]  ;;  %vm414_vm5 = vcmask 523264   ;;  %s2980_s9 = smov [#allocation20]   ;;  %vm1979_vm6 = vcmask 57344  }
  0xbd   :  { %v267_v8 = vld [vmem:[#allocation9 + $0x68] sm:$0xff]  ;;  %v273_v11 = vld [vmem:[#allocation9 + $0x98] sm:$0xff]  ;;  %v254_v12 = vld [vmem:[#allocation9] sm:$0xff]  ;;  %s1987_s13 = sshll.u32 %s2980_s9, 4  ;;  %s1988_s13 = int_to_ptr.vmem [resolvable:$true] %s1987_s13 }
  0xbe   :  { %v2080_v10 = vpack.c.bf16 %v267_v8, %v255_v7  ;;  %v266_v13 = vld [vmem:[#allocation9 + $0x60] sm:$0xff]  ;;  %2079 = vmatpush3.bf16.msk.msra.mxu1 %vm2078_vm3, %v2077_v5  ;;  %v2128_v14 = vpack.c.bf16 %v273_v11, %v261_v9  ;;  %v260_v16 = vld [vmem:[#allocation9 + $0x30] sm:$0xff]  ;;  %v279_v18 = vld [vmem:[#allocation9 + $0xc8] sm:$0xff]  ;;  %s2923_s5 = scalar_lea.vmem %s1988_s13, 16  ;;  %s2927_s4 = scalar_lea.vmem %s1988_s13, 32 }
  0xbf   :  { %v2082_v15 = vpack.c.bf16 %v266_v13, %v254_v12  ;;  %v272_v17 = vld [vmem:[#allocation9 + $0x90] sm:$0xff]  ;;  %v291_v20 = vld [vmem:[#allocation9 + $0x128] sm:$0xff]  ;;  %v285_v21 = vld [vmem:[#allocation9 + $0xf8] sm:$0xff]  ;;  %p2924_p10 = scmp.ne.s32.totalorder %s1988_s13, %s2923_s5  ;;  %p2928_p11 = scmp.lt.s32.totalorder %s1988_s13, %s1988_s13 }
  0xc0   :  { %2081 = vmatprep.subr.bf16.mxu1 %v2080_v10  ;;  %v2130_v19 = vpack.c.bf16 %v272_v17, %v260_v16  ;;  %v297_v22 = vld [vmem:[#allocation9 + $0x158] sm:$0xff]  ;;  %2129 = vmatprep.subr.bf16.mxu0 %v2128_v14  ;;  %v2084_v23 = vpack.c.bf16 %v291_v20, %v279_v18  ;;  %v278_v25 = vld [vmem:[#allocation9 + $0xc0] sm:$0xff]  ;;  %v284_v27 = vld [vmem:[#allocation9 + $0xf0] sm:$0xff]  ;;  %p2929_p12 = scmp.lt.s32.totalorder %s2927_s4, %s2923_s5 }
  0xc1   :  { %v2132_v24 = vpack.c.bf16 %v297_v22, %v285_v21  ;;  %v290_v26 = vld [vmem:[#allocation9 + $0x120] sm:$0xff]  ;;  %2069 = vmatmul.mubr.msk.f32.vlgmr.msra.gmra.mrb[0].mxu1 %vm175_vm4, %v165_v6  ;;  %v296_v28 = vld [vmem:[#allocation9 + $0x150] sm:$0xff]  ;;  %v303_v29 = vld [vmem:[#allocation9 + $0x188] sm:$0xff] }
  0xc2   :  { %2131 = vmatpush1.bf16.msra.mxu0 %v2130_v19  ;;  %v315_v30 = vld [vmem:[#allocation9 + $0x1e8] sm:$0xff]  ;;  %2083 = vmatpush1.bf16.msra.mxu1 %v2082_v15  ;;  %v2086_v31 = vpack.c.bf16 %v290_v26, %v278_v25  ;;  %v2134_v32 = vpack.c.bf16 %v296_v28, %v284_v27  ;;  %v309_v33 = vld [vmem:[#allocation9 + $0x1b8] sm:$0xff]  ;;  %v302_v35 = vld [vmem:[#allocation9 + $0x180] sm:$0xff]  ;;  %p2930_p13 = por %p2929_p12, %p2928_p11 }
  0xc3   :  { %2133 = vmatprep.subr.bf16.mxu0 %v2132_v24  ;;  %v321_v34 = vld [vmem:[#allocation9 + $0x218] sm:$0xff]  ;;  %2085 = vmatprep.subr.bf16.mxu1 %v2084_v23  ;;  %v2088_v36 = vpack.c.bf16 %v315_v30, %v303_v29  ;;  %v314_v38 = vld [vmem:[#allocation9 + $0x1e0] sm:$0xff]  ;;  %v308_v39 = vld [vmem:[#allocation9 + $0x1b0] sm:$0xff] }
  0xc4   :  { %v2136_v37 = vpack.c.bf16 %v321_v34, %v309_v33  ;;  %v320_v40 = vld [vmem:[#allocation9 + $0x210] sm:$0xff]  ;;  %482 = vmatprep.mubr.f32.mxu1 %v2977_v2  ;;  %v2090_v42 = vpack.c.bf16 %v314_v38, %v302_v35  ;;  %v327_v43 = vld [vmem:[#allocation9 + $0x248] sm:$0xff]  ;;  %v333_v45 = vld [vmem:[#allocation9 + $0x278] sm:$0xff]  ;;  %p2931_p0 = pnand %p2930_p13, %p2924_p10 }
  0xc5   :  { %v2138_v41 = vpack.c.bf16 %v320_v40, %v308_v39  ;;  %v339_v44 = vld [vmem:[#allocation9 + $0x2a8] sm:$0xff]  ;;  %v345_v47 = vld [vmem:[#allocation9 + $0x2d8] sm:$0xff]  ;;  %v326_v48 = vld [vmem:[#allocation9 + $0x240] sm:$0xff] }
  0xc6   :  { %2135 = vmatpush1.bf16.msra.mxu0 %v2134_v32  ;;  %2087 = vmatpush1.bf16.msra.mxu1 %v2086_v31  ;;  %v2092_v46 = vpack.c.bf16 %v339_v44, %v327_v43  ;;  %v338_v49 = vld [vmem:[#allocation9 + $0x2a0] sm:$0xff]  ;;  %v2140_v50 = vpack.c.bf16 %v345_v47, %v333_v45  ;;  %v332_v52 = vld [vmem:[#allocation9 + $0x270] sm:$0xff]  ;;  %v257_v55 = vld [vmem:[#allocation9 + $0x18] sm:$0xff] }
  0xc7   :  { %2137 = vmatprep.subr.bf16.mxu0 %v2136_v37  ;;  %2089 = vmatprep.subr.bf16.mxu1 %v2088_v36  ;;  %v2094_v51 = vpack.c.bf16 %v338_v49, %v326_v48  ;;  %v344_v53 = vld [vmem:[#allocation9 + $0x2d0] sm:$0xff]  ;;  %v269_v56 = vld [vmem:[#allocation9 + $0x78] sm:$0xff]  ;;  %v259_v43 = vld [vmem:[#allocation9 + $0x28] sm:$0xff] }
  0xc8   :  { %v2142_v54 = vpack.c.bf16 %v344_v53, %v332_v52  ;;  %v265_v57 = vld [vmem:[#allocation9 + $0x58] sm:$0xff]  ;;  %v2096_v58 = vpack.c.bf16 %v269_v56, %v257_v55  ;;  %v256_v62 = vld [vmem:[#allocation9 + $0x10] sm:$0xff]  ;;  %v271_v44 = vld [vmem:[#allocation9 + $0x88] sm:$0xff] }
  0xc9   :  { %v277_v59 = vld [vmem:[#allocation9 + $0xb8] sm:$0xff]  ;;  %v268_v63 = vld [vmem:[#allocation9 + $0x70] sm:$0xff]  ;;  %v2112_v47 = vpack.c.bf16 %v271_v44, %v259_v43  ;;  %v258_v48 = vld [vmem:[#allocation9 + $0x20] sm:$0xff] }
  0xca   :  { %2139 = vmatpush1.bf16.msra.mxu0 %v2138_v41  ;;  %2091 = vmatpush1.bf16.msra.mxu1 %v2090_v42  ;;  %v2160_v60 = vpack.c.bf16 %v277_v59, %v265_v57  ;;  %v2001_v61 = vld [vmem:[#allocation8] ss:$0 sm:$0xff]  ;;  %v264_v0 = vld [vmem:[#allocation9 + $0x50] sm:$0xff]  ;;  %v2098_v10 = vpack.c.bf16 %v268_v63, %v256_v62  ;;  %v270_v49 = vld [vmem:[#allocation9 + $0x80] sm:$0xff] }
  0xcb   :  { %2093 = vmatprep.subr.bf16.mxu1 %v2092_v46  ;;  %2141 = vmatprep.subr.bf16.mxu0 %v2140_v50  ;;  %v276_v1 = vld [vmem:[#allocation9 + $0xb0] sm:$0xff]  ;;  %v281_v3 = vld [vmem:[#allocation9 + $0xd8] sm:$0xff]  ;;  %v283_v50 = vld [vmem:[#allocation9 + $0xe8] sm:$0xff]  ;;  %v2114_v52 = vpack.c.bf16 %v270_v49, %v258_v48 }
  0xcc   :  { %v293_v5 = vld [vmem:[#allocation9 + $0x138] sm:$0xff]  ;;  %v2162_v11 = vpack.c.bf16 %v276_v1, %v264_v0  ;;  %v280_v12 = vld [vmem:[#allocation9 + $0xd0] sm:$0xff]  ;;  %v294_v55 = vld [vmem:[#allocation9 + $0x140] sm:$0xff] }
  0xcd   :  { %v289_v6 = vld [vmem:[#allocation9 + $0x118] sm:$0xff]  ;;  %v292_v13 = vld [vmem:[#allocation9 + $0x130] sm:$0xff]  ;;  %v2100_v15 = vpack.c.bf16 %v293_v5, %v281_v3  ;;  %v307_v56 = vld [vmem:[#allocation9 + $0x1a8] sm:$0xff] }
  0xce   :  { %2095 = vmatpush1.bf16.msra.mxu1 %v2094_v51  ;;  %2143 = vmatpush1.bf16.msra.mxu0 %v2142_v54  ;;  %v301_v7 = vld [vmem:[#allocation9 + $0x178] sm:$0xff]  ;;  %v288_v17 = vld [vmem:[#allocation9 + $0x110] sm:$0xff]  ;;  %v2102_v23 = vpack.c.bf16 %v292_v13, %v280_v12  ;;  %v295_v51 = vld [vmem:[#allocation9 + $0x148] sm:$0xff] }
  0xcf   :  { %2097 = vmatprep.subr.bf16.mxu1 %v2096_v58  ;;  %2161 = vmatprep.subr.bf16.mxu0 %v2160_v60  ;;  %v2164_v16 = vpack.c.bf16 %v301_v7, %v289_v6  ;;  %v300_v18 = vld [vmem:[#allocation9 + $0x170] sm:$0xff]  ;;  %v305_v19 = vld [vmem:[#allocation9 + $0x198] sm:$0xff]  ;;  %v2116_v53 = vpack.c.bf16 %v295_v51, %v283_v50  ;;  %v282_v54 = vld [vmem:[#allocation9 + $0xe0] sm:$0xff] }
  0xd0   :  { %v317_v20 = vld [vmem:[#allocation9 + $0x1f8] sm:$0xff]  ;;  %v2166_v24 = vpack.c.bf16 %v300_v18, %v288_v17  ;;  %v304_v25 = vld [vmem:[#allocation9 + $0x190] sm:$0xff]  ;;  %v319_v57 = vld [vmem:[#allocation9 + $0x208] sm:$0xff]  ;;  %v2118_v58 = vpack.c.bf16 %v294_v55, %v282_v54 }
  0xd1   :  { %v313_v21 = vld [vmem:[#allocation9 + $0x1d8] sm:$0xff]  ;;  %v316_v26 = vld [vmem:[#allocation9 + $0x1f0] sm:$0xff]  ;;  %v2104_v27 = vpack.c.bf16 %v317_v20, %v305_v19  ;;  %v2120_v59 = vpack.c.bf16 %v319_v57, %v307_v56  ;;  %v306_v60 = vld [vmem:[#allocation9 + $0x1a0] sm:$0xff] }
  0xd2   :  { %v325_v22 = vld [vmem:[#allocation9 + $0x238] sm:$0xff]  ;;  %v312_v29 = vld [vmem:[#allocation9 + $0x1d0] sm:$0xff]  ;;  %v2106_v35 = vpack.c.bf16 %v316_v26, %v304_v25  ;;  %v331_v62 = vld [vmem:[#allocation9 + $0x268] sm:$0xff] }
  0xd3   :  { %v2168_v28 = vpack.c.bf16 %v325_v22, %v313_v21  ;;  %v324_v30 = vld [vmem:[#allocation9 + $0x230] sm:$0xff]  ;;  %v329_v31 = vld [vmem:[#allocation9 + $0x258] sm:$0xff]  ;;  %v343_v63 = vld [vmem:[#allocation9 + $0x2c8] sm:$0xff] }
  0xd4   :  { %v341_v32 = vld [vmem:[#allocation9 + $0x2b8] sm:$0xff]  ;;  %v2170_v36 = vpack.c.bf16 %v324_v30, %v312_v29  ;;  %v328_v37 = vld [vmem:[#allocation9 + $0x250] sm:$0xff]  ;;  %v2124_v1 = vpack.c.bf16 %v343_v63, %v331_v62  ;;  %v330_v3 = vld [vmem:[#allocation9 + $0x260] sm:$0xff] }
  0xd5   :  { %v337_v33 = vld [vmem:[#allocation9 + $0x298] sm:$0xff]  ;;  %v2108_v38 = vpack.c.bf16 %v341_v32, %v329_v31  ;;  %v340_v40 = vld [vmem:[#allocation9 + $0x2b0] sm:$0xff]  ;;  %v263_v5 = vld [vmem:[#allocation9 + $0x48] sm:$0xff] }
  0xd6   :  { %v349_v34 = vld [vmem:[#allocation9 + $0x2f8] sm:$0xff]  ;;  %v336_v41 = vld [vmem:[#allocation9 + $0x290] sm:$0xff]  ;;  %v2110_v45 = vpack.c.bf16 %v340_v40, %v328_v37  ;;  %v275_v6 = vld [vmem:[#allocation9 + $0xa8] sm:$0xff] }
  0xd7   :  { %v2172_v39 = vpack.c.bf16 %v349_v34, %v337_v33  ;;  %v348_v42 = vld [vmem:[#allocation9 + $0x2f0] sm:$0xff]  ;;  %v299_v12 = vld [vmem:[#allocation9 + $0x168] sm:$0xff]  ;;  %v298_v17 = vld [vmem:[#allocation9 + $0x160] sm:$0xff] }
  0xd8   :  { %v2174_v46 = vpack.c.bf16 %v348_v42, %v336_v41  ;;  %v311_v18 = vld [vmem:[#allocation9 + $0x1c8] sm:$0xff]  ;;  %v310_v22 = vld [vmem:[#allocation9 + $0x1c0] sm:$0xff]  ;;  %v1101_v30 = vld [vmem:[#allocation12 + $0x608] sm:$0xff] }
  0xd9   :  { %v323_v19 = vld [vmem:[#allocation9 + $0x228] sm:$0xff]  ;;  %v346_v29 = vld [vmem:[#allocation9 + $0x2e0] sm:$0xff]  ;;  %v1113_v37 = vld [vmem:[#allocation12 + $0x668] sm:$0xff] }
  0xda   :  { %v2152_v21 = vpack.c.bf16 %v323_v19, %v311_v18  ;;  %v347_v25 = vld [vmem:[#allocation9 + $0x2e8] sm:$0xff]  ;;  %v1118_v41 = vld [vmem:[#allocation12 + $0x690] sm:$0xff]  ;;  %v1125_v43 = vld [vmem:[#allocation12 + $0x6c8] sm:$0xff] }
  0xdb   :  { %v1107_v31 = vld [vmem:[#allocation12 + $0x638] sm:$0xff]  ;;  %v1100_v34 = vld [vmem:[#allocation12 + $0x600] sm:$0xff]  ;;  %v1137_v49 = vld [vmem:[#allocation12 + $0x728] sm:$0xff] }
  0xdc   :  { %v2240_v33 = vpack.c.bf16 %v1107_v31, %v1101_v30  ;;  %v1112_v40 = vld [vmem:[#allocation12 + $0x660] sm:$0xff]  ;;  %v1131_v44 = vld [vmem:[#allocation12 + $0x6f8] sm:$0xff]  ;;  %v1149_v54 = vld [vmem:[#allocation12 + $0x788] sm:$0xff] }
  0xdd   :  { %v2246_v42 = vpack.c.bf16 %v1118_v41, %v1112_v40  ;;  %v1143_v50 = vld [vmem:[#allocation12 + $0x758] sm:$0xff]  ;;  %v1136_v51 = vld [vmem:[#allocation12 + $0x720] sm:$0xff]  ;;  %v1178_v19 = vld [vmem:[#allocation12 + $0x870] sm:$0xff] }
  0xde   :  { %v1155_v55 = vld [vmem:[#allocation12 + $0x7b8] sm:$0xff]  ;;  %v1148_v57 = vld [vmem:[#allocation12 + $0x780] sm:$0xff]  ;;  %v1190_v31 = vld [vmem:[#allocation12 + $0x8d0] sm:$0xff] }
  0xdf   :  { %v2256_v56 = vpack.c.bf16 %v1155_v55, %v1149_v54  ;;  %v908_v63 = vld [vmem:[#allocation12] sm:$0xff]  ;;  %v1203_v41 = vld [vmem:[#allocation12 + $0x938] sm:$0xff]  ;;  %v1214_v54 = vld [vmem:[#allocation12 + $0x990] sm:$0xff] }
  0xe0   :  { %v1172_v18 = vld [vmem:[#allocation12 + $0x840] sm:$0xff] }
  0xe1   :  { %v1184_v30 = vld [vmem:[#allocation12 + $0x8a0] sm:$0xff] }
 0x194   :  { %v249_v4 = vpop.f32.mrb[0].mxu1 }
 0x195   :  { %v250_v8 = vadd.f32 %v2001_v61, %v249_v4  ;;  %v2070_v9 = vpop.f32.mrb[1].mxu1  ;;  %v318_v61 = vld [vmem:[#allocation9 + $0x200] sm:$0xff] }
 0x196   :  { %v2122_v0 = vpack.c.bf16 %v318_v61, %v306_v60  ;;  %v342_v4 = vld [vmem:[#allocation9 + $0x2c0] sm:$0xff]  ;;  %v909_v60 = vld [vmem:[#allocation12 + $0x8] sm:$0xff] }
 0x197   :  { %v3175_v14 = vmax.f32 %v250_v8, 0.0  ;;  %v2126_v7 = vpack.c.bf16 %v342_v4, %v330_v3  ;;  %v2144_v8 = vpack.c.bf16 %v275_v6, %v263_v5  ;;  %v262_v9 = vld [vmem:[#allocation9 + $0x40] sm:$0xff]  ;;  %v1160_v5 = vld [vmem:[#allocation12 + $0x7e0] sm:$0xff] }
 0x198   :  { %v915_v61 = vld [vmem:[#allocation12 + $0x38] sm:$0xff]  ;;  %v1166_v6 = vld [vmem:[#allocation12 + $0x810] sm:$0xff] }
 0x199   :  { %2004 = vmatmul.mubr.msk.f32.vlgmr.msra.gmra.mrb[2].mxu1 %vm414_vm5, %v3175_v14  ;;  %2007 = vmatmul.mubr.msk.f32.vlgmr.msra.gmra.mrb[0].mxu0 %vm414_vm5, %v3175_v14  ;;  %v2176_v62 = vpack.c.bf16 %v915_v61, %v909_v60  ;;  %v1167_v4 = vld [vmem:[#allocation12 + $0x818] sm:$0xff]  ;;  %v968_v60 = vld [vmem:[#allocation12 + $0x1e0] sm:$0xff]  ;;  %v974_v61 = vld [vmem:[#allocation12 + $0x210] sm:$0xff] }
 0x19a   :  { %2099 = vmatpush1.bf16.msra.mxu1 %v2098_v10  ;;  %2163 = vmatpush1.bf16.msra.mxu0 %v2162_v11  ;;  %v274_v10 = vld [vmem:[#allocation9 + $0xa0] sm:$0xff]  ;;  %v287_v11 = vld [vmem:[#allocation9 + $0x108] sm:$0xff] }
 0x19b   :  { %2101 = vmatprep.subr.bf16.mxu1 %v2100_v15  ;;  %2165 = vmatprep.subr.bf16.mxu0 %v2164_v16  ;;  %v2146_v13 = vpack.c.bf16 %v274_v10, %v262_v9  ;;  %v2148_v15 = vpack.c.bf16 %v299_v12, %v287_v11  ;;  %v286_v16 = vld [vmem:[#allocation9 + $0x100] sm:$0xff]  ;;  %v921_v9 = vld [vmem:[#allocation12 + $0x68] sm:$0xff]  ;;  %v920_v12 = vld [vmem:[#allocation12 + $0x60] sm:$0xff] }
 0x19c   :  { %553 = vmatprep.mubr.f32.mxu1 %v2977_v2  ;;  %837 = vmatprep.mubr.f32.mxu0 %v2977_v2  ;;  %v2150_v20 = vpack.c.bf16 %v298_v17, %v286_v16  ;;  %v927_v10 = vld [vmem:[#allocation12 + $0x98] sm:$0xff] }
 0x19d   :  { %v2180_v11 = vpack.c.bf16 %v927_v10, %v921_v9  ;;  %v1179_v17 = vld [vmem:[#allocation12 + $0x878] sm:$0xff]  ;;  %v980_v9 = vld [vmem:[#allocation12 + $0x240] sm:$0xff]  ;;  %v986_v10 = vld [vmem:[#allocation12 + $0x270] sm:$0xff] }
 0x19e   :  { %2103 = vmatpush1.bf16.msra.mxu1 %v2102_v23  ;;  %2167 = vmatpush1.bf16.msra.mxu0 %v2166_v24  ;;  %v322_v23 = vld [vmem:[#allocation9 + $0x220] sm:$0xff]  ;;  %v335_v24 = vld [vmem:[#allocation9 + $0x288] sm:$0xff] }
 0x19f   :  { %2105 = vmatprep.subr.bf16.mxu1 %v2104_v27  ;;  %2169 = vmatprep.subr.bf16.mxu0 %v2168_v28  ;;  %v2154_v26 = vpack.c.bf16 %v322_v23, %v310_v22  ;;  %v2156_v27 = vpack.c.bf16 %v347_v25, %v335_v24  ;;  %v334_v28 = vld [vmem:[#allocation9 + $0x280] sm:$0xff]  ;;  %v933_v22 = vld [vmem:[#allocation12 + $0xc8] sm:$0xff]  ;;  %v932_v25 = vld [vmem:[#allocation12 + $0xc0] sm:$0xff] }
 0x1a0   :  { %v2158_v32 = vpack.c.bf16 %v346_v29, %v334_v28  ;;  %v939_v23 = vld [vmem:[#allocation12 + $0xf8] sm:$0xff] }
 0x1a1   :  { %v2184_v24 = vpack.c.bf16 %v939_v23, %v933_v22  ;;  %v1191_v29 = vld [vmem:[#allocation12 + $0x8d8] sm:$0xff]  ;;  %v992_v22 = vld [vmem:[#allocation12 + $0x2a0] sm:$0xff]  ;;  %v998_v23 = vld [vmem:[#allocation12 + $0x2d0] sm:$0xff] }
 0x1a2   :  { %2107 = vmatpush1.bf16.msra.mxu1 %v2106_v35  ;;  %2171 = vmatpush1.bf16.msra.mxu0 %v2170_v36  ;;  %v1106_v35 = vld [vmem:[#allocation12 + $0x630] sm:$0xff] }
 0x1a3   :  { %2109 = vmatprep.subr.bf16.mxu1 %v2108_v38  ;;  %2173 = vmatprep.subr.bf16.mxu0 %v2172_v39  ;;  %v2242_v36 = vpack.c.bf16 %v1106_v35, %v1100_v34  ;;  %v1119_v38 = vld [vmem:[#allocation12 + $0x698] sm:$0xff]  ;;  %v945_v34 = vld [vmem:[#allocation12 + $0x128] sm:$0xff] }
 0x1a4   :  { %v2244_v39 = vpack.c.bf16 %v1119_v38, %v1113_v37  ;;  %v951_v35 = vld [vmem:[#allocation12 + $0x158] sm:$0xff]  ;;  %v944_v37 = vld [vmem:[#allocation12 + $0x120] sm:$0xff]  ;;  %v950_v38 = vld [vmem:[#allocation12 + $0x150] sm:$0xff] }
 0x1a5   :  { %v2190_v40 = vpack.c.bf16 %v950_v38, %v944_v37  ;;  %v1263_v38 = vld [vmem:[#allocation12 + $0xb18] sm:$0xff] }
 0x1a6   :  { %2111 = vmatpush1.bf16.msra.mxu1 %v2110_v45  ;;  %2175 = vmatpush1.bf16.msra.mxu0 %v2174_v46  ;;  %v2248_v45 = vpack.c.bf16 %v1131_v44, %v1125_v43  ;;  %v1124_v46 = vld [vmem:[#allocation12 + $0x6c0] sm:$0xff]  ;;  %v1202_v43 = vld [vmem:[#allocation12 + $0x930] sm:$0xff] }
 0x1a7   :  { %2113 = vmatprep.subr.bf16.mxu1 %v2112_v47  ;;  %v1130_v47 = vld [vmem:[#allocation12 + $0x6f0] sm:$0xff]  ;;  %2177 = vmatprep.subr.bf16.mxu0 %v2176_v62  ;;  %v1221_v62 = vld [vmem:[#allocation12 + $0x9c8] sm:$0xff] }
 0x1a8   :  { %v2250_v48 = vpack.c.bf16 %v1130_v47, %v1124_v46  ;;  %v957_v46 = vld [vmem:[#allocation12 + $0x188] sm:$0xff]  ;;  %v963_v47 = vld [vmem:[#allocation12 + $0x1b8] sm:$0xff] }
 0x1a9   :  { %2005 = vmatmul.mubr.msk.f32.vlgmr.msra.gmra.mrb[4].mxu1 %vm414_vm5, %v3175_v14  ;;  %2009 = vmatmul.mubr.msk.f32.vlgmr.msra.gmra.mrb[2].mxu0 %vm414_vm5, %v3175_v14 }
 0x1aa   :  { %2115 = vmatpush1.bf16.msra.mxu1 %v2114_v52  ;;  %624 = vmatprep.mubr.f32.mxu1 %v2977_v2  ;;  %v1142_v52 = vld [vmem:[#allocation12 + $0x750] sm:$0xff] }
 0x1ab   :  { %2117 = vmatprep.subr.bf16.mxu1 %v2116_v53  ;;  %v2254_v53 = vpack.c.bf16 %v1142_v52, %v1136_v51  ;;  %v1215_v52 = vld [vmem:[#allocation12 + $0x998] sm:$0xff] }
 0x1ae   :  { %2119 = vmatpush1.bf16.msra.mxu1 %v2118_v58  ;;  %v1154_v58 = vld [vmem:[#allocation12 + $0x7b0] sm:$0xff] }
 0x1af   :  { %2121 = vmatprep.subr.bf16.mxu1 %v2120_v59  ;;  %v2258_v59 = vpack.c.bf16 %v1154_v58, %v1148_v57  ;;  %v969_v57 = vld [vmem:[#allocation12 + $0x1e8] sm:$0xff]  ;;  %v975_v58 = vld [vmem:[#allocation12 + $0x218] sm:$0xff] }
 0x1b2   :  { %2123 = vmatpush1.bf16.msra.mxu1 %v2122_v0  ;;  %v914_v0 = vld [vmem:[#allocation12 + $0x30] sm:$0xff] }
 0x1b3   :  { %2125 = vmatprep.subr.bf16.mxu1 %v2124_v1  ;;  %v1161_v1 = vld [vmem:[#allocation12 + $0x7e8] sm:$0xff]  ;;  %v2178_v3 = vpack.c.bf16 %v914_v0, %v908_v63  ;;  %v2198_v63 = vpack.c.bf16 %v974_v61, %v968_v60  ;;  %v1227_v0 = vld [vmem:[#allocation12 + $0x9f8] sm:$0xff] }
 0x1b4   :  { %v1287_v61 = vld [vmem:[#allocation12 + $0xbd8] sm:$0xff] }
 0x1b5   :  { %2179 = vmatpush1.bf16.msra.mxu0 %v2178_v3  ;;  %v1226_v3 = vld [vmem:[#allocation12 + $0x9f0] sm:$0xff] }
 0x1b6   :  { %2127 = vmatpush1.bf16.msra.mxu1 %v2126_v7  ;;  %v2260_v7 = vpack.c.bf16 %v1167_v4, %v1161_v1  ;;  %2181 = vmatprep.subr.bf16.mxu0 %v2180_v11  ;;  %v1220_v1 = vld [vmem:[#allocation12 + $0x9c0] sm:$0xff]  ;;  %v2280_v4 = vpack.c.bf16 %v1227_v0, %v1221_v62  ;;  %v1233_v11 = vld [vmem:[#allocation12 + $0xa28] sm:$0xff] }
 0x1b7   :  { %2145 = vmatprep.subr.bf16.mxu1 %v2144_v8  ;;  %v2262_v8 = vpack.c.bf16 %v1166_v6, %v1160_v5  ;;  %v2282_v5 = vpack.c.bf16 %v1226_v3, %v1220_v1  ;;  %v981_v6 = vld [vmem:[#allocation12 + $0x248] sm:$0xff]  ;;  %v1280_v62 = vld [vmem:[#allocation12 + $0xba0] sm:$0xff] }
 0x1b8   :  { %v1041_v3 = vld [vmem:[#allocation12 + $0x428] sm:$0xff] }
 0x1b9   :  { %2006 = vmatmul.mubr.msk.f32.vlgmr.msra.gmra.mrb[6].mxu1 %vm414_vm5, %v3175_v14 }
 0x1ba   :  { %2147 = vmatpush1.bf16.msra.mxu1 %v2146_v13  ;;  %766 = vmatprep.mubr.f32.mxu1 %v2977_v2  ;;  %v926_v13 = vld [vmem:[#allocation12 + $0x90] sm:$0xff] }
 0x1bb   :  { %2149 = vmatprep.subr.bf16.mxu1 %v2148_v15  ;;  %v1173_v15 = vld [vmem:[#allocation12 + $0x848] sm:$0xff]  ;;  %v2182_v16 = vpack.c.bf16 %v926_v13, %v920_v12  ;;  %v2202_v12 = vpack.c.bf16 %v986_v10, %v980_v9  ;;  %v1239_v13 = vld [vmem:[#allocation12 + $0xa58] sm:$0xff] }
 0x1bc   :  { %v919_v10 = vld [vmem:[#allocation12 + $0x58] sm:$0xff] }
 0x1bd   :  { %2183 = vmatpush1.bf16.msra.mxu0 %v2182_v16  ;;  %v1238_v16 = vld [vmem:[#allocation12 + $0xa50] sm:$0xff] }
 0x1be   :  { %2151 = vmatpush1.bf16.msra.mxu1 %v2150_v20  ;;  %v2264_v20 = vpack.c.bf16 %v1179_v17, %v1173_v15  ;;  %2185 = vmatprep.subr.bf16.mxu0 %v2184_v24  ;;  %v1232_v15 = vld [vmem:[#allocation12 + $0xa20] sm:$0xff]  ;;  %v2284_v17 = vpack.c.bf16 %v1239_v13, %v1233_v11  ;;  %v1245_v24 = vld [vmem:[#allocation12 + $0xa88] sm:$0xff]  ;;  %v1059_v13 = vld [vmem:[#allocation12 + $0x4b8] sm:$0xff] }
 0x1bf   :  { %2153 = vmatprep.subr.bf16.mxu1 %v2152_v21  ;;  %v2266_v21 = vpack.c.bf16 %v1178_v19, %v1172_v18  ;;  %v2286_v18 = vpack.c.bf16 %v1238_v16, %v1232_v15  ;;  %v993_v19 = vld [vmem:[#allocation12 + $0x2a8] sm:$0xff]  ;;  %v1052_v16 = vld [vmem:[#allocation12 + $0x480] sm:$0xff] }
 0x1c2   :  { %2155 = vmatpush1.bf16.msra.mxu1 %v2154_v26  ;;  %v938_v26 = vld [vmem:[#allocation12 + $0xf0] sm:$0xff] }
 0x1c3   :  { %2157 = vmatprep.subr.bf16.mxu1 %v2156_v27  ;;  %v1185_v27 = vld [vmem:[#allocation12 + $0x8a8] sm:$0xff]  ;;  %v2186_v28 = vpack.c.bf16 %v938_v26, %v932_v25  ;;  %v2206_v25 = vpack.c.bf16 %v998_v23, %v992_v22  ;;  %v1251_v26 = vld [vmem:[#allocation12 + $0xab8] sm:$0xff]  ;;  %v1070_v23 = vld [vmem:[#allocation12 + $0x510] sm:$0xff] }
 0x1c5   :  { %2187 = vmatpush1.bf16.msra.mxu0 %v2186_v28  ;;  %v1250_v28 = vld [vmem:[#allocation12 + $0xab0] sm:$0xff] }
 0x1c6   :  { %2159 = vmatpush1.bf16.msra.mxu1 %v2158_v32  ;;  %v2268_v32 = vpack.c.bf16 %v1191_v29, %v1185_v27  ;;  %v1244_v27 = vld [vmem:[#allocation12 + $0xa80] sm:$0xff]  ;;  %v2288_v29 = vpack.c.bf16 %v1251_v26, %v1245_v24  ;;  %v1083_v26 = vld [vmem:[#allocation12 + $0x578] sm:$0xff] }
 0x1c7   :  { %2241 = vmatprep.subr.bf16.mxu1 %v2240_v33  ;;  %v2270_v33 = vpack.c.bf16 %v1190_v31, %v1184_v30  ;;  %v2290_v30 = vpack.c.bf16 %v1250_v28, %v1244_v27  ;;  %v1005_v31 = vld [vmem:[#allocation12 + $0x308] sm:$0xff]  ;;  %v1076_v27 = vld [vmem:[#allocation12 + $0x540] sm:$0xff] }
 0x1c9   :  { %2008 = vmatmul.mubr.msk.f32.vlgmr.msra.gmra.mrb[8].mxu1 %vm414_vm5, %v3175_v14  ;;  %v2252_v14 = vpack.c.bf16 %v1143_v50, %v1137_v49  ;;  %v956_v49 = vld [vmem:[#allocation12 + $0x180] sm:$0xff]  ;;  %v962_v50 = vld [vmem:[#allocation12 + $0x1b0] sm:$0xff] }
 0x1ca   :  { %2243 = vmatpush1.bf16.msra.mxu1 %v2242_v36  ;;  %v2188_v36 = vpack.c.bf16 %v951_v35, %v945_v34  ;;  %v2194_v51 = vpack.c.bf16 %v962_v50, %v956_v49  ;;  %v1004_v34 = vld [vmem:[#allocation12 + $0x300] sm:$0xff]  ;;  %v1010_v35 = vld [vmem:[#allocation12 + $0x330] sm:$0xff]  ;;  %v1275_v50 = vld [vmem:[#allocation12 + $0xb78] sm:$0xff] }
 0x1cb   :  { %2245 = vmatprep.subr.bf16.mxu1 %v2244_v39  ;;  %v1197_v39 = vld [vmem:[#allocation12 + $0x908] sm:$0xff]  ;;  %v2210_v37 = vpack.c.bf16 %v1010_v35, %v1004_v34  ;;  %v1094_v35 = vld [vmem:[#allocation12 + $0x5d0] sm:$0xff] }
 0x1cc   :  { %2189 = vmatprep.subr.bf16.mxu0 %v2188_v36  ;;  %v2272_v44 = vpack.c.bf16 %v1203_v41, %v1197_v39  ;;  %v1257_v36 = vld [vmem:[#allocation12 + $0xae8] sm:$0xff]  ;;  %v1256_v39 = vld [vmem:[#allocation12 + $0xae0] sm:$0xff] }
 0x1cd   :  { %2191 = vmatpush1.bf16.msra.mxu0 %v2190_v40  ;;  %v1262_v40 = vld [vmem:[#allocation12 + $0xb10] sm:$0xff]  ;;  %v2292_v41 = vpack.c.bf16 %v1263_v38, %v1257_v36  ;;  %v917_v38 = vld [vmem:[#allocation12 + $0x48] sm:$0xff] }
 0x1ce   :  { %2247 = vmatpush1.bf16.msra.mxu1 %v2246_v42  ;;  %v1196_v42 = vld [vmem:[#allocation12 + $0x900] sm:$0xff] }
 0x1cf   :  { %2249 = vmatprep.subr.bf16.mxu1 %v2248_v45  ;;  %v2274_v45 = vpack.c.bf16 %v1202_v43, %v1196_v42  ;;  %v2294_v42 = vpack.c.bf16 %v1262_v40, %v1256_v39  ;;  %v1017_v43 = vld [vmem:[#allocation12 + $0x368] sm:$0xff]  ;;  %v354_v40 = vlaneseq }
 0x1d2   :  { %2251 = vmatpush1.bf16.msra.mxu1 %v2250_v48  ;;  %v2192_v48 = vpack.c.bf16 %v963_v47, %v957_v46  ;;  %v1016_v46 = vld [vmem:[#allocation12 + $0x360] sm:$0xff]  ;;  %v1022_v47 = vld [vmem:[#allocation12 + $0x390] sm:$0xff] }
 0x1d3   :  { %2253 = vmatprep.subr.bf16.mxu1 %v2252_v14  ;;  %v1209_v14 = vld [vmem:[#allocation12 + $0x968] sm:$0xff]  ;;  %v2214_v49 = vpack.c.bf16 %v1022_v47, %v1016_v46  ;;  %v350_v47 = vld [vmem:[#allocation11] sm:$0xff] }
 0x1d4   :  { %2193 = vmatprep.subr.bf16.mxu0 %v2192_v48  ;;  %v2276_v55 = vpack.c.bf16 %v1215_v52, %v1209_v14  ;;  %v1269_v48 = vld [vmem:[#allocation12 + $0xb48] sm:$0xff]  ;;  %v1268_v14 = vld [vmem:[#allocation12 + $0xb40] sm:$0xff] }
 0x1d5   :  { %2195 = vmatpush1.bf16.msra.mxu0 %v2194_v51  ;;  %v1274_v51 = vld [vmem:[#allocation12 + $0xb70] sm:$0xff]  ;;  %v2296_v52 = vpack.c.bf16 %v1275_v50, %v1269_v48 }
 0x1d6   :  { %2255 = vmatpush1.bf16.msra.mxu1 %v2254_v53  ;;  %v1208_v53 = vld [vmem:[#allocation12 + $0x960] sm:$0xff] }
 0x1d7   :  { %2257 = vmatprep.subr.bf16.mxu1 %v2256_v56  ;;  %v2278_v56 = vpack.c.bf16 %v1214_v54, %v1208_v53  ;;  %v2298_v53 = vpack.c.bf16 %v1274_v51, %v1268_v14  ;;  %v1029_v54 = vld [vmem:[#allocation12 + $0x3c8] sm:$0xff] }
 0x1da   :  { %2259 = vmatpush1.bf16.msra.mxu1 %v2258_v59  ;;  %v2196_v59 = vpack.c.bf16 %v975_v58, %v969_v57  ;;  %v1028_v57 = vld [vmem:[#allocation12 + $0x3c0] sm:$0xff]  ;;  %v1034_v58 = vld [vmem:[#allocation12 + $0x3f0] sm:$0xff] }
 0x1db   :  { %2261 = vmatprep.subr.bf16.mxu1 %v2260_v7  ;;  %v987_v7 = vld [vmem:[#allocation12 + $0x278] sm:$0xff]  ;;  %v2218_v60 = vpack.c.bf16 %v1034_v58, %v1028_v57 }
 0x1dc   :  { %2197 = vmatprep.subr.bf16.mxu0 %v2196_v59  ;;  %v1281_v59 = vld [vmem:[#allocation12 + $0xba8] sm:$0xff] }
 0x1dd   :  { %2199 = vmatpush1.bf16.msra.mxu0 %v2198_v63  ;;  %v1286_v63 = vld [vmem:[#allocation12 + $0xbd0] sm:$0xff]  ;;  %v2300_v0 = vpack.c.bf16 %v1287_v61, %v1281_v59 }
 0x1de   :  { %2263 = vmatpush1.bf16.msra.mxu1 %v2262_v8  ;;  %v2200_v8 = vpack.c.bf16 %v987_v7, %v981_v6  ;;  %v2302_v1 = vpack.c.bf16 %v1286_v63, %v1280_v62  ;;  %v1040_v6 = vld [vmem:[#allocation12 + $0x420] sm:$0xff]  ;;  %v1046_v7 = vld [vmem:[#allocation12 + $0x450] sm:$0xff] }
 0x1df   :  { %2265 = vmatprep.subr.bf16.mxu1 %v2264_v20  ;;  %v999_v20 = vld [vmem:[#allocation12 + $0x2d8] sm:$0xff]  ;;  %v2222_v9 = vpack.c.bf16 %v1046_v7, %v1040_v6 }
 0x1e0   :  { %2201 = vmatprep.subr.bf16.mxu0 %v2200_v8  ;;  %v913_v8 = vld [vmem:[#allocation12 + $0x28] sm:$0xff] }
 0x1e1   :  { %2203 = vmatpush1.bf16.msra.mxu0 %v2202_v12  ;;  %v2432_v11 = vpack.c.bf16 %v919_v10, %v913_v8  ;;  %v1053_v12 = vld [vmem:[#allocation12 + $0x488] sm:$0xff] }
 0x1e2   :  { %2267 = vmatpush1.bf16.msra.mxu1 %v2266_v21  ;;  %v2204_v21 = vpack.c.bf16 %v999_v20, %v993_v19  ;;  %v2224_v15 = vpack.c.bf16 %v1059_v13, %v1053_v12  ;;  %v1065_v19 = vld [vmem:[#allocation12 + $0x4e8] sm:$0xff]  ;;  %v1071_v20 = vld [vmem:[#allocation12 + $0x518] sm:$0xff] }
 0x1e3   :  { %2269 = vmatprep.subr.bf16.mxu1 %v2268_v32  ;;  %v1011_v32 = vld [vmem:[#allocation12 + $0x338] sm:$0xff]  ;;  %v2228_v22 = vpack.c.bf16 %v1071_v20, %v1065_v19 }
 0x1e4   :  { %2205 = vmatprep.subr.bf16.mxu0 %v2204_v21  ;;  %v1064_v21 = vld [vmem:[#allocation12 + $0x4e0] sm:$0xff] }
 0x1e5   :  { %2207 = vmatpush1.bf16.msra.mxu0 %v2206_v25  ;;  %v2230_v24 = vpack.c.bf16 %v1070_v23, %v1064_v21  ;;  %v1077_v25 = vld [vmem:[#allocation12 + $0x548] sm:$0xff] }
 0x1e6   :  { %2271 = vmatpush1.bf16.msra.mxu1 %v2270_v33  ;;  %v2208_v33 = vpack.c.bf16 %v1011_v32, %v1005_v31  ;;  %v2232_v28 = vpack.c.bf16 %v1083_v26, %v1077_v25  ;;  %v1089_v31 = vld [vmem:[#allocation12 + $0x5a8] sm:$0xff]  ;;  %v1095_v32 = vld [vmem:[#allocation12 + $0x5d8] sm:$0xff] }
 0x1e7   :  { %2273 = vmatprep.subr.bf16.mxu1 %v2272_v44  ;;  %v1023_v44 = vld [vmem:[#allocation12 + $0x398] sm:$0xff]  ;;  %v2236_v34 = vpack.c.bf16 %v1095_v32, %v1089_v31 }
 0x1e8   :  { %2209 = vmatprep.subr.bf16.mxu0 %v2208_v33  ;;  %v1088_v33 = vld [vmem:[#allocation12 + $0x5a0] sm:$0xff] }
 0x1e9   :  { %2211 = vmatpush1.bf16.msra.mxu0 %v2210_v37  ;;  %v2238_v36 = vpack.c.bf16 %v1094_v35, %v1088_v33  ;;  %v911_v37 = vld [vmem:[#allocation12 + $0x18] sm:$0xff] }
 0x1ea   :  { %2275 = vmatpush1.bf16.msra.mxu1 %v2274_v45  ;;  %v2212_v45 = vpack.c.bf16 %v1023_v44, %v1017_v43  ;;  %v2304_v39 = vpack.c.bf16 %v917_v38, %v911_v37 }
 0x1eb   :  { %2277 = vmatprep.subr.bf16.mxu1 %v2276_v55  ;;  %v1035_v55 = vld [vmem:[#allocation12 + $0x3f8] sm:$0xff] }
 0x1ec   :  { %2213 = vmatprep.subr.bf16.mxu0 %v2212_v45 }
 0x1ed   :  { %2215 = vmatpush1.bf16.msra.mxu0 %v2214_v49 }
 0x1ee   :  { %2279 = vmatpush1.bf16.msra.mxu1 %v2278_v56  ;;  %v2216_v56 = vpack.c.bf16 %v1035_v55, %v1029_v54 }
 0x1ef   :  { %2281 = vmatprep.subr.bf16.mxu1 %v2280_v4  ;;  %v1047_v4 = vld [vmem:[#allocation12 + $0x458] sm:$0xff] }
 0x1f0   :  { %2217 = vmatprep.subr.bf16.mxu0 %v2216_v56  ;;  %v3210_v56 = vld [vmem:[#allocation11 + $0x8] sm:$0xf] }
 0x1f1   :  { %2219 = vmatpush1.bf16.msra.mxu0 %v2218_v60 }
 0x1f2   :  { %2283 = vmatpush1.bf16.msra.mxu1 %v2282_v5  ;;  %v2220_v5 = vpack.c.bf16 %v1047_v4, %v1041_v3 }
 0x1f3   :  { %2285 = vmatprep.subr.bf16.mxu1 %v2284_v17  ;;  %v1058_v17 = vld [vmem:[#allocation12 + $0x4b0] sm:$0xff] }
 0x1f4   :  { %2221 = vmatprep.subr.bf16.mxu0 %v2220_v5 }
 0x1f5   :  { %2223 = vmatpush1.bf16.msra.mxu0 %v2222_v9 }
 0x1f6   :  { %2287 = vmatpush1.bf16.msra.mxu1 %v2286_v18  ;;  %v2226_v18 = vpack.c.bf16 %v1058_v17, %v1052_v16  ;;  %2225 = vmatprep.subr.bf16.mxu0 %v2224_v15 }
 0x1f7   :  { %2289 = vmatprep.subr.bf16.mxu1 %v2288_v29  ;;  %v1082_v29 = vld [vmem:[#allocation12 + $0x570] sm:$0xff] }
 0x1f9   :  { %2227 = vmatpush1.bf16.msra.mxu0 %v2226_v18 }
 0x1fa   :  { %2291 = vmatpush1.bf16.msra.mxu1 %v2290_v30  ;;  %2229 = vmatprep.subr.bf16.mxu0 %v2228_v22  ;;  %v2234_v30 = vpack.c.bf16 %v1082_v29, %v1076_v27 }
 0x1fb   :  { %2293 = vmatprep.subr.bf16.mxu1 %v2292_v41  ;;  %v3193_v41 = vshrl.u32 %v354_v40, 7 }
 0x1fd   :  { %2231 = vmatpush1.bf16.msra.mxu0 %v2230_v24  ;;  %v3196_v46 = vsub.s32 0, %v3193_v41  ;;  %v3199_v48 = vsub.s32 1, %v3193_v41  ;;  %v3204_v14 = vsub.s32 2, %v3193_v41  ;;  %v380_v5 = vsub.s32 6, %v3193_v41 }
 0x1fe   :  { %2295 = vmatpush1.bf16.msra.mxu1 %v2294_v42  ;;  %2233 = vmatprep.subr.bf16.mxu0 %v2232_v28  ;;  %v384_v7 = vsub.s32 7, %v3193_v41  ;;  %v372_v13 = vsub.s32 4, %v3193_v41  ;;  %v376_v16 = vsub.s32 5, %v3193_v41 }
 0x1ff   :  { %2297 = vmatprep.subr.bf16.mxu1 %v2296_v52  ;;  %v357_v49 = vrot.slane %v350_v47, %v3196_v46  ;;  %v361_v50 = vrot.slane %v350_v47, %v3199_v48  ;;  %v3207_v52 = vsub.s32 3, %v3193_v41  ;;  %v365_v54 = vrot.slane %v350_v47, %v3204_v14 }
 0x200   :  { %v397_v62 = vrot.slane %v3210_v56, %v3204_v14  ;;  %v381_v10 = vrot.slane %v350_v47, %v380_v5  ;;  %v373_v21 = vrot.slane %v350_v47, %v372_v13  ;;  %v377_v24 = vrot.slane %v350_v47, %v376_v16  ;;  %v931_v5 = vld [vmem:[#allocation12 + $0xb8] sm:$0xff] }
 0x201   :  { %2235 = vmatpush1.bf16.msra.mxu0 %v2234_v30  ;;  %v369_v57 = vrot.slane %v350_v47, %v3207_v52  ;;  %v401_v4 = vrot.slane %v3210_v56, %v3207_v52 }
 0x202   :  { %2299 = vmatpush1.bf16.msra.mxu1 %v2298_v53  ;;  %2237 = vmatprep.subr.bf16.mxu0 %v2236_v34 }
 0x203   :  { %2301 = vmatprep.subr.bf16.mxu1 %v2300_v0 }
 0x205   :  { %2239 = vmatpush1.bf16.msra.mxu0 %v2238_v36 }
 0x206   :  { %2303 = vmatpush1.bf16.msra.mxu1 %v2302_v1  ;;  %2305 = vmatprep.subr.bf16.mxu0 %v2304_v39 }
 0x207   :  { %2433 = vmatprep.subr.bf16.mxu1 %v2432_v11  ;;  %v385_v11 = vrot.slane %v350_v47, %v384_v7 }
 0x26c   :  { %v484_v42 = vpop.f32.mrb[2].mxu1  ;;  %v697_v43 = vpop.f32.mrb[0].mxu0 }
 0x26d   :  { %v486_v44 = vpop.f32.mrb[3].mxu1  ;;  %v699_v45 = vpop.f32.mrb[1].mxu0  ;;  %v485_v51 = vadd.f32 %v484_v42, %v357_v49  ;;  %v698_v18 = vadd.f32 %v697_v43, %v381_v10  ;;  %v389_v43 = vrot.slane %v3210_v56, %v3196_v46  ;;  %v924_v10 = vld [vmem:[#allocation12 + $0x80] sm:$0xff] }
 0x26e   :  { %v487_v53 = vadd.f32 %v486_v44, %v361_v50  ;;  %v700_v19 = vadd.f32 %v699_v45, %v385_v11  ;;  %v393_v45 = vrot.slane %v3210_v56, %v3199_v48  ;;  %v912_v56 = vld [vmem:[#allocation12 + $0x20] sm:$0xff]  ;;  %v930_v11 = vld [vmem:[#allocation12 + $0xb0] sm:$0xff] }
 0x26f   :  { %v2010_v55 = vmul.f32 -1.442695, %v485_v51 }
 0x270   :  { %v2011_v58 = vmul.f32 -1.442695, %v487_v53 }
 0x271   :  { %2627 = vpow2.f32 %v2010_v55 }
 0x272   :  { %2629 = vpow2.f32 %v2011_v58 }
 0x27b   :  { %v2628_v17 = vpop.eup %2627 }
 0x27c   :  { %v555_v59 = vpop.f32.mrb[4].mxu1  ;;  %v839_v60 = vpop.f32.mrb[2].mxu0  ;;  %v856_v23 = vadd.f32 1.0, %v2628_v17 }
 0x27d   :  { %v556_v61 = vadd.f32 %v555_v59, %v365_v54  ;;  %v557_v63 = vpop.f32.mrb[5].mxu1  ;;  %v841_v0 = vpop.f32.mrb[3].mxu0  ;;  %v840_v8 = vadd.f32 %v839_v60, %v397_v62 }
 0x27e   :  { %v558_v1 = vadd.f32 %v557_v63, %v369_v57  ;;  %v842_v9 = vadd.f32 %v841_v0, %v401_v4  ;;  %v2630_v20 = vpop.eup %2629  ;;  %v918_v0 = vld [vmem:[#allocation12 + $0x50] sm:$0xff]  ;;  %v925_v4 = vld [vmem:[#allocation12 + $0x88] sm:$0xff] }
 0x27f   :  { %v2012_v3 = vmul.f32 -1.442695, %v556_v61  ;;  %v2016_v12 = vmul.f32 -1.442695, %v840_v8  ;;  %v857_v28 = vadd.f32 1.0, %v2630_v20  ;;  %v2434_v8 = vpack.c.bf16 %v918_v0, %v912_v56  ;;  %v935_v0 = vld [vmem:[#allocation12 + $0xd8] sm:$0xff] }
 0x280   :  { %v2013_v6 = vmul.f32 -1.442695, %v558_v1  ;;  %v2017_v15 = vmul.f32 -1.442695, %v842_v9  ;;  %v2436_v9 = vpack.c.bf16 %v931_v5, %v925_v4  ;;  %v2438_v20 = vpack.c.bf16 %v930_v11, %v924_v10  ;;  %v984_v5 = vld [vmem:[#allocation12 + $0x260] sm:$0xff]  ;;  %v1003_v10 = vld [vmem:[#allocation12 + $0x2f8] sm:$0xff] }
 0x281   :  { %2631 = vpow2.f32 %v2012_v3 }
 0x282   :  { %2633 = vpow2.f32 %v2013_v6 }
 0x283   :  { %2635 = vpow2.f32 %v2016_v12  ;;  %v937_v12 = vld [vmem:[#allocation12 + $0xe8] sm:$0xff] }
 0x284   :  { %2637 = vpow2.f32 %v2017_v15  ;;  %v943_v15 = vld [vmem:[#allocation12 + $0x118] sm:$0xff] }
 0x285   :  { %2639 = vtanh.f32 %v698_v18 }
 0x286   :  { %2641 = vtanh.f32 %v700_v19 }
 0x28b   :  { %v2632_v22 = vpop.eup %2631 }
 0x28c   :  { %v858_v25 = vadd.f32 1.0, %v2632_v22  ;;  %v626_v26 = vpop.f32.mrb[6].mxu1  ;;  %v2634_v27 = vpop.eup %2633  ;;  %v2440_v22 = vpack.c.bf16 %v943_v15, %v937_v12  ;;  %v934_v12 = vld [vmem:[#allocation12 + $0xd0] sm:$0xff]  ;;  %v940_v15 = vld [vmem:[#allocation12 + $0x100] sm:$0xff] }
 0x28d   :  { %v628_v29 = vpop.f32.mrb[7].mxu1  ;;  %v859_v30 = vadd.f32 1.0, %v2634_v27  ;;  %v627_v31 = vadd.f32 %v626_v26, %v373_v21  ;;  %v2636_v33 = vpop.eup %2635  ;;  %v955_v26 = vld [vmem:[#allocation12 + $0x178] sm:$0xff] }
 0x28e   :  { %2643 = vrcp.f32 %v858_v25  ;;  %v629_v32 = vadd.f32 %v628_v29, %v377_v24  ;;  %v2638_v34 = vpop.eup %2637  ;;  %v886_v36 = vadd.f32 1.0, %v2636_v33  ;;  %v942_v24 = vld [vmem:[#allocation12 + $0x110] sm:$0xff]  ;;  %v949_v25 = vld [vmem:[#allocation12 + $0x148] sm:$0xff]  ;;  %v948_v29 = vld [vmem:[#allocation12 + $0x140] sm:$0xff] }
 0x28f   :  { %2645 = vrcp.f32 %v856_v23  ;;  %v2640_v35 = vpop.eup %2639  ;;  %v887_v39 = vadd.f32 1.0, %v2638_v34  ;;  %v936_v23 = vld [vmem:[#allocation12 + $0xe0] sm:$0xff] }
 0x290   :  { %2647 = vrcp.f32 %v859_v30  ;;  %v2642_v37 = vpop.eup %2641  ;;  %v2442_v27 = vpack.c.bf16 %v942_v24, %v936_v23  ;;  %v954_v30 = vld [vmem:[#allocation12 + $0x170] sm:$0xff]  ;;  %v2314_v23 = vpack.c.bf16 %v940_v15, %v934_v12  ;;  %v1009_v24 = vld [vmem:[#allocation12 + $0x328] sm:$0xff]  ;;  %v1044_v15 = vld [vmem:[#allocation12 + $0x440] sm:$0xff] }
 0x291   :  { %2649 = vrcp.f32 %v857_v28  ;;  %v2444_v28 = vpack.c.bf16 %v955_v26, %v949_v25  ;;  %v2446_v33 = vpack.c.bf16 %v954_v30, %v948_v29  ;;  %v1015_v25 = vld [vmem:[#allocation12 + $0x358] sm:$0xff] }
 0x292   :  { %2651 = vtanh.f32 %v627_v31  ;;  %v961_v31 = vld [vmem:[#allocation12 + $0x1a8] sm:$0xff]  ;;  %v959_v30 = vld [vmem:[#allocation12 + $0x198] sm:$0xff] }
 0x293   :  { %2653 = vtanh.f32 %v629_v32  ;;  %v967_v32 = vld [vmem:[#allocation12 + $0x1d8] sm:$0xff] }
 0x294   :  { %2655 = vrcp.f32 %v886_v36  ;;  %v2448_v34 = vpack.c.bf16 %v967_v32, %v961_v31  ;;  %v966_v36 = vld [vmem:[#allocation12 + $0x1d0] sm:$0xff]  ;;  %v965_v31 = vld [vmem:[#allocation12 + $0x1c8] sm:$0xff]  ;;  %v2464_v32 = vpack.c.bf16 %v1015_v25, %v1009_v24  ;;  %v1007_v25 = vld [vmem:[#allocation12 + $0x318] sm:$0xff] }
 0x298   :  { %v2644_v38 = vpop.eup %2643 }
 0x299   :  { %v2646_v40 = vpop.eup %2645  ;;  %v898_v42 = vmul.f32 %v2644_v38, %v2640_v35  ;;  %v960_v35 = vld [vmem:[#allocation12 + $0x1a0] sm:$0xff]  ;;  %v910_v38 = vld [vmem:[#allocation12 + $0x10] sm:$0xff] }
 0x29a   :  { %v2648_v44 = vpop.eup %2647 }
 0x29b   :  { %v2650_v47 = vpop.eup %2649  ;;  %2657 = vtanh.f32 %v898_v42  ;;  %v899_v49 = vmul.f32 %v2648_v44, %v2642_v37  ;;  %v973_v42 = vld [vmem:[#allocation12 + $0x208] sm:$0xff] }
 0x29c   :  { %v2652_v50 = vpop.eup %2651  ;;  %2659 = vrcp.f32 %v887_v39  ;;  %v768_v51 = vpop.f32.mrb[8].mxu1 }
 0x29d   :  { %v2654_v53 = vpop.eup %2653  ;;  %v896_v54 = vmul.f32 %v2652_v50, %v2646_v40  ;;  %v769_v55 = vadd.f32 %v768_v51, %v389_v43  ;;  %v770_v57 = vpop.f32.mrb[9].mxu1  ;;  %2661 = vtanh.f32 %v899_v49  ;;  %v916_v40 = vld [vmem:[#allocation12 + $0x40] sm:$0xff]  ;;  %v979_v43 = vld [vmem:[#allocation12 + $0x238] sm:$0xff]  ;;  %v929_v49 = vld [vmem:[#allocation12 + $0xa8] sm:$0xff] }
 0x29e   :  { %v897_v58 = vmul.f32 %v2654_v53, %v2650_v47  ;;  %v771_v59 = vadd.f32 %v770_v57, %v393_v45  ;;  %v2656_v62 = vpop.eup %2655  ;;  %v2450_v45 = vpack.c.bf16 %v966_v36, %v960_v35  ;;  %v923_v47 = vld [vmem:[#allocation12 + $0x78] sm:$0xff]  ;;  %v972_v53 = vld [vmem:[#allocation12 + $0x200] sm:$0xff]  ;;  %v2306_v57 = vpack.c.bf16 %v916_v40, %v910_v38  ;;  %v1021_v36 = vld [vmem:[#allocation12 + $0x388] sm:$0xff] }
 0x29f   :  { %v2014_v60 = vmul.f32 -1.442695, %v769_v55  ;;  %v2320_v38 = vpack.c.bf16 %v965_v31, %v959_v30  ;;  %v964_v40 = vld [vmem:[#allocation12 + $0x1c0] sm:$0xff]  ;;  %v1069_v31 = vld [vmem:[#allocation12 + $0x508] sm:$0xff] }
 0x2a0   :  { %v2015_v61 = vmul.f32 -1.442695, %v771_v59  ;;  %v985_v59 = vld [vmem:[#allocation12 + $0x268] sm:$0xff] }
 0x2a1   :  { %2663 = vpow2.f32 %v2014_v60  ;;  %v991_v60 = vld [vmem:[#allocation12 + $0x298] sm:$0xff] }
 0x2a2   :  { %2665 = vpow2.f32 %v2015_v61  ;;  %v2308_v61 = vpack.c.bf16 %v929_v49, %v923_v47  ;;  %v2456_v4 = vpack.c.bf16 %v991_v60, %v985_v59  ;;  %v1020_v47 = vld [vmem:[#allocation12 + $0x380] sm:$0xff]  ;;  %v1026_v49 = vld [vmem:[#allocation12 + $0x3b0] sm:$0xff]  ;;  %v983_v60 = vld [vmem:[#allocation12 + $0x258] sm:$0xff] }
 0x2a3   :  { %2667 = vtanh.f32 %v896_v54  ;;  %v978_v54 = vld [vmem:[#allocation12 + $0x230] sm:$0xff]  ;;  %v2470_v59 = vpack.c.bf16 %v1026_v49, %v1020_v47 }
 0x2a4   :  { %2669 = vtanh.f32 %v897_v58  ;;  %v2452_v58 = vpack.c.bf16 %v979_v43, %v973_v42  ;;  %v2454_v56 = vpack.c.bf16 %v978_v54, %v972_v53  ;;  %v971_v43 = vld [vmem:[#allocation12 + $0x1f8] sm:$0xff]  ;;  %v1033_v53 = vld [vmem:[#allocation12 + $0x3e8] sm:$0xff]  ;;  %v1018_v49 = vld [vmem:[#allocation12 + $0x370] sm:$0xff] }
 0x2a5   :  { %v2658_v63 = vpop.eup %2657  ;;  %v1039_v54 = vld [vmem:[#allocation12 + $0x418] sm:$0xff] }
 0x2a6   :  { %v2660_v1 = vpop.eup %2659  ;;  %v3229_v3 = vmul.f32 %v2658_v63, %v2656_v62  ;;  %v922_v62 = vld [vmem:[#allocation12 + $0x70] sm:$0xff]  ;;  %v928_v63 = vld [vmem:[#allocation12 + $0xa0] sm:$0xff] }
 0x2a7   :  { %v2662_v6 = vpop.eup %2661 }
 0x2a8   :  { %v3231_v7 = vmul.f32 %v2662_v6, %v2660_v1  ;;  %v941_v1 = vld [vmem:[#allocation12 + $0x108] sm:$0xff]  ;;  %v990_v6 = vld [vmem:[#allocation12 + $0x290] sm:$0xff] }
 0x2a9   :  { %v2312_v11 = vpack.c.bf16 %v941_v1, %v935_v0  ;;  %v1045_v1 = vld [vmem:[#allocation12 + $0x448] sm:$0xff] }
 0x2aa   :  { %1459 = vmatprep.mubr.f32.mxu1 %v3231_v7 }
 0x2ab   :  { %v2664_v17 = vpop.eup %2663  ;;  %1460 = vmatmul.mubr.f32.vlgmr.msra.gmra.mrb[10].mxu1 %v3229_v3 }
 0x2ac   :  { %v2666_v18 = vpop.eup %2665  ;;  %v884_v19 = vadd.f32 1.0, %v2664_v17  ;;  %2435 = vmatpush1.bf16.msra.mxu1 %v2434_v8  ;;  %v2310_v8 = vpack.c.bf16 %v928_v63, %v922_v62  ;;  %v2458_v17 = vpack.c.bf16 %v990_v6, %v984_v5  ;;  %v2472_v62 = vpack.c.bf16 %v1039_v54, %v1033_v53  ;;  %v1032_v63 = vld [vmem:[#allocation12 + $0x3e0] sm:$0xff]  ;;  %v982_v6 = vld [vmem:[#allocation12 + $0x250] sm:$0xff]  ;;  %v1031_v54 = vld [vmem:[#allocation12 + $0x3d8] sm:$0xff] }
 0x2ad   :  { %v885_v21 = vadd.f32 1.0, %v2666_v18  ;;  %2437 = vmatprep.subr.bf16.mxu1 %v2436_v9  ;;  %v2668_v37 = vpop.eup %2667  ;;  %v997_v9 = vld [vmem:[#allocation12 + $0x2c8] sm:$0xff]  ;;  %v947_v18 = vld [vmem:[#allocation12 + $0x138] sm:$0xff] }
 0x2ae   :  { %2671 = vrcp.f32 %v884_v19  ;;  %v2670_v39 = vpop.eup %2669  ;;  %v953_v19 = vld [vmem:[#allocation12 + $0x168] sm:$0xff] }
 0x2af   :  { %2673 = vrcp.f32 %v885_v21  ;;  %v996_v21 = vld [vmem:[#allocation12 + $0x2c0] sm:$0xff]  ;;  %v2316_v26 = vpack.c.bf16 %v953_v19, %v947_v18  ;;  %v1057_v19 = vld [vmem:[#allocation12 + $0x4a8] sm:$0xff] }
 0x2b0   :  { %2439 = vmatpush1.bf16.msra.mxu1 %v2438_v20  ;;  %v2460_v20 = vpack.c.bf16 %v1003_v10, %v997_v9  ;;  %v995_v10 = vld [vmem:[#allocation12 + $0x2b8] sm:$0xff] }
 0x2b1   :  { %2441 = vmatprep.subr.bf16.mxu1 %v2440_v22  ;;  %v1002_v22 = vld [vmem:[#allocation12 + $0x2f0] sm:$0xff] }
 0x2b2   :  { %v2462_v29 = vpack.c.bf16 %v1002_v22, %v996_v21  ;;  %v994_v22 = vld [vmem:[#allocation12 + $0x2b0] sm:$0xff] }
 0x2b4   :  { %2443 = vmatpush1.bf16.msra.mxu1 %v2442_v27  ;;  %v946_v27 = vld [vmem:[#allocation12 + $0x130] sm:$0xff] }
 0x2b5   :  { %2445 = vmatprep.subr.bf16.mxu1 %v2444_v28  ;;  %v952_v28 = vld [vmem:[#allocation12 + $0x160] sm:$0xff] }
 0x2b6   :  { %v2318_v35 = vpack.c.bf16 %v952_v28, %v946_v27  ;;  %v1056_v28 = vld [vmem:[#allocation12 + $0x4a0] sm:$0xff] }
 0x2b8   :  { %v2672_v44 = vpop.eup %2671  ;;  %2447 = vmatpush1.bf16.msra.mxu1 %v2446_v33  ;;  %v1008_v33 = vld [vmem:[#allocation12 + $0x320] sm:$0xff] }
 0x2b9   :  { %v2674_v50 = vpop.eup %2673  ;;  %2449 = vmatprep.subr.bf16.mxu1 %v2448_v34  ;;  %v3235_v51 = vmul.f32 %v2672_v44, %v2668_v37  ;;  %v1014_v34 = vld [vmem:[#allocation12 + $0x350] sm:$0xff]  ;;  %v1027_v37 = vld [vmem:[#allocation12 + $0x3b8] sm:$0xff]  ;;  %v977_v44 = vld [vmem:[#allocation12 + $0x228] sm:$0xff] }
 0x2ba   :  { %v905_v55 = vmul.f32 %v2674_v50, %v2670_v39  ;;  %v958_v39 = vld [vmem:[#allocation12 + $0x190] sm:$0xff]  ;;  %v2466_v42 = vpack.c.bf16 %v1014_v34, %v1008_v33 }
 0x2bb   :  { %v2322_v50 = vpack.c.bf16 %v964_v40, %v958_v39  ;;  %v1006_v34 = vld [vmem:[#allocation12 + $0x310] sm:$0xff]  ;;  %v1068_v40 = vld [vmem:[#allocation12 + $0x500] sm:$0xff] }
 0x2bc   :  { %2451 = vmatpush1.bf16.msra.mxu1 %v2450_v45  ;;  %1388 = vmatprep.mubr.f32.mxu0 %v905_v55  ;;  %v2468_v45 = vpack.c.bf16 %v1027_v37, %v1021_v36  ;;  %v1019_v37 = vld [vmem:[#allocation12 + $0x378] sm:$0xff] }
 0x2bd   :  { %1672 = vmatprep.mubr.f32.mxu1 %v905_v55  ;;  %1389 = vmatmul.mubr.f32.vlgmr.msra.gmra.mrb[4].mxu0 %v3235_v51 }
 0x2be   :  { %2307 = vmatpush1.bf16.msra.mxu0 %v2306_v57  ;;  %2453 = vmatprep.subr.bf16.mxu1 %v2452_v58  ;;  %v970_v57 = vld [vmem:[#allocation12 + $0x1f0] sm:$0xff]  ;;  %v976_v58 = vld [vmem:[#allocation12 + $0x220] sm:$0xff] }
 0x2bf   :  { %1530 = vmatprep.mubr.f32.mxu0 %v905_v55  ;;  %2309 = vmatprep.subr.bf16.mxu0 %v2308_v61  ;;  %v2324_v55 = vpack.c.bf16 %v977_v44, %v971_v43  ;;  %v989_v61 = vld [vmem:[#allocation12 + $0x288] sm:$0xff]  ;;  %v2326_v0 = vpack.c.bf16 %v976_v58, %v970_v57  ;;  %v1080_v58 = vld [vmem:[#allocation12 + $0x560] sm:$0xff] }
 0x2c0   :  { %2455 = vmatpush1.bf16.msra.mxu1 %v2454_v56  ;;  %v1038_v56 = vld [vmem:[#allocation12 + $0x410] sm:$0xff]  ;;  %v2328_v5 = vpack.c.bf16 %v989_v61, %v983_v60  ;;  %v1081_v44 = vld [vmem:[#allocation12 + $0x568] sm:$0xff] }
 0x2c1   :  { %2457 = vmatprep.subr.bf16.mxu1 %v2456_v4  ;;  %v1051_v4 = vld [vmem:[#allocation12 + $0x478] sm:$0xff]  ;;  %v2474_v9 = vpack.c.bf16 %v1038_v56, %v1032_v63  ;;  %v1093_v61 = vld [vmem:[#allocation12 + $0x5c8] sm:$0xff]  ;;  %v1030_v56 = vld [vmem:[#allocation12 + $0x3d0] sm:$0xff] }
 0x2c2   :  { %2311 = vmatpush1.bf16.msra.mxu0 %v2310_v8  ;;  %v988_v8 = vld [vmem:[#allocation12 + $0x280] sm:$0xff]  ;;  %v2476_v12 = vpack.c.bf16 %v1051_v4, %v1045_v1  ;;  %v1043_v4 = vld [vmem:[#allocation12 + $0x438] sm:$0xff] }
 0x2c3   :  { %2313 = vmatprep.subr.bf16.mxu0 %v2312_v11  ;;  %v1001_v11 = vld [vmem:[#allocation12 + $0x2e8] sm:$0xff]  ;;  %v2330_v18 = vpack.c.bf16 %v988_v8, %v982_v6  ;;  %v1092_v8 = vld [vmem:[#allocation12 + $0x5c0] sm:$0xff] }
 0x2c4   :  { %2459 = vmatpush1.bf16.msra.mxu1 %v2458_v17  ;;  %v1050_v17 = vld [vmem:[#allocation12 + $0x470] sm:$0xff]  ;;  %v2332_v21 = vpack.c.bf16 %v1001_v11, %v995_v10  ;;  %v1105_v11 = vld [vmem:[#allocation12 + $0x628] sm:$0xff] }
 0x2c5   :  { %2461 = vmatprep.subr.bf16.mxu1 %v2460_v20  ;;  %v1063_v20 = vld [vmem:[#allocation12 + $0x4d8] sm:$0xff]  ;;  %v2478_v24 = vpack.c.bf16 %v1050_v17, %v1044_v15  ;;  %v1042_v17 = vld [vmem:[#allocation12 + $0x430] sm:$0xff] }
 0x2c6   :  { %2315 = vmatpush1.bf16.msra.mxu0 %v2314_v23  ;;  %v1000_v23 = vld [vmem:[#allocation12 + $0x2e0] sm:$0xff]  ;;  %v2480_v27 = vpack.c.bf16 %v1063_v20, %v1057_v19  ;;  %v1055_v20 = vld [vmem:[#allocation12 + $0x498] sm:$0xff] }
 0x2c7   :  { %2317 = vmatprep.subr.bf16.mxu0 %v2316_v26  ;;  %v1013_v26 = vld [vmem:[#allocation12 + $0x348] sm:$0xff]  ;;  %v2334_v30 = vpack.c.bf16 %v1000_v23, %v994_v22  ;;  %v1104_v23 = vld [vmem:[#allocation12 + $0x620] sm:$0xff] }
 0x2c8   :  { %2463 = vmatpush1.bf16.msra.mxu1 %v2462_v29  ;;  %v1062_v29 = vld [vmem:[#allocation12 + $0x4d0] sm:$0xff]  ;;  %v2336_v33 = vpack.c.bf16 %v1013_v26, %v1007_v25  ;;  %v1117_v26 = vld [vmem:[#allocation12 + $0x688] sm:$0xff] }
 0x2c9   :  { %2465 = vmatprep.subr.bf16.mxu1 %v2464_v32  ;;  %v1075_v32 = vld [vmem:[#allocation12 + $0x538] sm:$0xff]  ;;  %v2482_v36 = vpack.c.bf16 %v1062_v29, %v1056_v28  ;;  %v1054_v29 = vld [vmem:[#allocation12 + $0x490] sm:$0xff] }
 0x2ca   :  { %2319 = vmatpush1.bf16.msra.mxu0 %v2318_v35  ;;  %v1012_v35 = vld [vmem:[#allocation12 + $0x340] sm:$0xff]  ;;  %v2484_v39 = vpack.c.bf16 %v1075_v32, %v1069_v31  ;;  %v1067_v32 = vld [vmem:[#allocation12 + $0x4f8] sm:$0xff] }
 0x2cb   :  { %2321 = vmatprep.subr.bf16.mxu0 %v2320_v38  ;;  %v1025_v38 = vld [vmem:[#allocation12 + $0x3a8] sm:$0xff]  ;;  %v2338_v43 = vpack.c.bf16 %v1012_v35, %v1006_v34  ;;  %v1116_v35 = vld [vmem:[#allocation12 + $0x680] sm:$0xff] }
 0x2cc   :  { %2467 = vmatpush1.bf16.msra.mxu1 %v2466_v42  ;;  %v1074_v42 = vld [vmem:[#allocation12 + $0x530] sm:$0xff]  ;;  %v2340_v47 = vpack.c.bf16 %v1025_v38, %v1019_v37  ;;  %v1129_v38 = vld [vmem:[#allocation12 + $0x6e8] sm:$0xff] }
 0x2cd   :  { %2469 = vmatprep.subr.bf16.mxu1 %v2468_v45  ;;  %v1087_v45 = vld [vmem:[#allocation12 + $0x598] sm:$0xff]  ;;  %v2486_v53 = vpack.c.bf16 %v1074_v42, %v1068_v40  ;;  %v1066_v42 = vld [vmem:[#allocation12 + $0x4f0] sm:$0xff] }
 0x2ce   :  { %2323 = vmatpush1.bf16.msra.mxu0 %v2322_v50  ;;  %v1024_v50 = vld [vmem:[#allocation12 + $0x3a0] sm:$0xff]  ;;  %v2488_v57 = vpack.c.bf16 %v1087_v45, %v1081_v44  ;;  %v1079_v45 = vld [vmem:[#allocation12 + $0x558] sm:$0xff] }
 0x2cf   :  { %2325 = vmatprep.subr.bf16.mxu0 %v2324_v55  ;;  %v1037_v55 = vld [vmem:[#allocation12 + $0x408] sm:$0xff]  ;;  %v2342_v60 = vpack.c.bf16 %v1024_v50, %v1018_v49  ;;  %v1128_v50 = vld [vmem:[#allocation12 + $0x6e0] sm:$0xff] }
 0x2d0   :  { %2471 = vmatpush1.bf16.msra.mxu1 %v2470_v59  ;;  %v1086_v59 = vld [vmem:[#allocation12 + $0x590] sm:$0xff]  ;;  %v2344_v63 = vpack.c.bf16 %v1037_v55, %v1031_v54  ;;  %v1141_v55 = vld [vmem:[#allocation12 + $0x748] sm:$0xff] }
 0x2d1   :  { %2473 = vmatprep.subr.bf16.mxu1 %v2472_v62  ;;  %v1099_v62 = vld [vmem:[#allocation12 + $0x5f8] sm:$0xff]  ;;  %v2490_v1 = vpack.c.bf16 %v1086_v59, %v1080_v58  ;;  %v1078_v59 = vld [vmem:[#allocation12 + $0x550] sm:$0xff] }
 0x2d2   :  { %2327 = vmatpush1.bf16.msra.mxu0 %v2326_v0  ;;  %v1036_v0 = vld [vmem:[#allocation12 + $0x400] sm:$0xff]  ;;  %v2492_v6 = vpack.c.bf16 %v1099_v62, %v1093_v61  ;;  %v1091_v62 = vld [vmem:[#allocation12 + $0x5b8] sm:$0xff] }
 0x2d3   :  { %2329 = vmatprep.subr.bf16.mxu0 %v2328_v5  ;;  %v1049_v5 = vld [vmem:[#allocation12 + $0x468] sm:$0xff]  ;;  %v2346_v10 = vpack.c.bf16 %v1036_v0, %v1030_v56  ;;  %v1140_v0 = vld [vmem:[#allocation12 + $0x740] sm:$0xff] }
 0x2d4   :  { %2475 = vmatpush1.bf16.msra.mxu1 %v2474_v9  ;;  %v1098_v9 = vld [vmem:[#allocation12 + $0x5f0] sm:$0xff]  ;;  %v2348_v15 = vpack.c.bf16 %v1049_v5, %v1043_v4  ;;  %v1153_v5 = vld [vmem:[#allocation12 + $0x7a8] sm:$0xff] }
 0x2d5   :  { %2477 = vmatprep.subr.bf16.mxu1 %v2476_v12  ;;  %v1111_v12 = vld [vmem:[#allocation12 + $0x658] sm:$0xff]  ;;  %v2494_v19 = vpack.c.bf16 %v1098_v9, %v1092_v8  ;;  %v1090_v9 = vld [vmem:[#allocation12 + $0x5b0] sm:$0xff] }
 0x2d6   :  { %2331 = vmatpush1.bf16.msra.mxu0 %v2330_v18  ;;  %v1048_v18 = vld [vmem:[#allocation12 + $0x460] sm:$0xff]  ;;  %v2496_v22 = vpack.c.bf16 %v1111_v12, %v1105_v11  ;;  %v1103_v12 = vld [vmem:[#allocation12 + $0x618] sm:$0xff] }
 0x2d7   :  { %2333 = vmatprep.subr.bf16.mxu0 %v2332_v21  ;;  %v1061_v21 = vld [vmem:[#allocation12 + $0x4c8] sm:$0xff]  ;;  %v2350_v25 = vpack.c.bf16 %v1048_v18, %v1042_v17  ;;  %v1152_v18 = vld [vmem:[#allocation12 + $0x7a0] sm:$0xff] }
 0x2d8   :  { %2479 = vmatpush1.bf16.msra.mxu1 %v2478_v24  ;;  %v1110_v24 = vld [vmem:[#allocation12 + $0x650] sm:$0xff]  ;;  %v2352_v28 = vpack.c.bf16 %v1061_v21, %v1055_v20  ;;  %v1165_v21 = vld [vmem:[#allocation12 + $0x808] sm:$0xff] }
 0x2d9   :  { %2481 = vmatprep.subr.bf16.mxu1 %v2480_v27  ;;  %v1123_v27 = vld [vmem:[#allocation12 + $0x6b8] sm:$0xff]  ;;  %v2498_v31 = vpack.c.bf16 %v1110_v24, %v1104_v23  ;;  %v1102_v24 = vld [vmem:[#allocation12 + $0x610] sm:$0xff] }
 0x2da   :  { %2335 = vmatpush1.bf16.msra.mxu0 %v2334_v30  ;;  %v1060_v30 = vld [vmem:[#allocation12 + $0x4c0] sm:$0xff]  ;;  %v2500_v34 = vpack.c.bf16 %v1123_v27, %v1117_v26  ;;  %v1115_v27 = vld [vmem:[#allocation12 + $0x678] sm:$0xff] }
 0x2db   :  { %2337 = vmatprep.subr.bf16.mxu0 %v2336_v33  ;;  %v1073_v33 = vld [vmem:[#allocation12 + $0x528] sm:$0xff]  ;;  %v2354_v37 = vpack.c.bf16 %v1060_v30, %v1054_v29  ;;  %v1164_v30 = vld [vmem:[#allocation12 + $0x800] sm:$0xff] }
 0x2dc   :  { %2483 = vmatpush1.bf16.msra.mxu1 %v2482_v36  ;;  %v1122_v36 = vld [vmem:[#allocation12 + $0x6b0] sm:$0xff]  ;;  %v2356_v40 = vpack.c.bf16 %v1073_v33, %v1067_v32  ;;  %v1177_v33 = vld [vmem:[#allocation12 + $0x868] sm:$0xff] }
 0x2dd   :  { %2485 = vmatprep.subr.bf16.mxu1 %v2484_v39  ;;  %v1135_v39 = vld [vmem:[#allocation12 + $0x718] sm:$0xff]  ;;  %v2502_v44 = vpack.c.bf16 %v1122_v36, %v1116_v35  ;;  %v1114_v36 = vld [vmem:[#allocation12 + $0x670] sm:$0xff] }
 0x2de   :  { %2339 = vmatpush1.bf16.msra.mxu0 %v2338_v43  ;;  %v1072_v43 = vld [vmem:[#allocation12 + $0x520] sm:$0xff]  ;;  %v2504_v49 = vpack.c.bf16 %v1135_v39, %v1129_v38  ;;  %v1127_v39 = vld [vmem:[#allocation12 + $0x6d8] sm:$0xff] }
 0x2df   :  { %2341 = vmatprep.subr.bf16.mxu0 %v2340_v47  ;;  %v1085_v47 = vld [vmem:[#allocation12 + $0x588] sm:$0xff]  ;;  %v2358_v54 = vpack.c.bf16 %v1072_v43, %v1066_v42  ;;  %v1176_v43 = vld [vmem:[#allocation12 + $0x860] sm:$0xff] }
 0x2e0   :  { %2487 = vmatpush1.bf16.msra.mxu1 %v2486_v53  ;;  %v1134_v53 = vld [vmem:[#allocation12 + $0x710] sm:$0xff]  ;;  %v2360_v58 = vpack.c.bf16 %v1085_v47, %v1079_v45  ;;  %v1189_v47 = vld [vmem:[#allocation12 + $0x8c8] sm:$0xff] }
 0x2e1   :  { %2489 = vmatprep.subr.bf16.mxu1 %v2488_v57  ;;  %v1147_v57 = vld [vmem:[#allocation12 + $0x778] sm:$0xff]  ;;  %v2506_v61 = vpack.c.bf16 %v1134_v53, %v1128_v50  ;;  %v1126_v53 = vld [vmem:[#allocation12 + $0x6d0] sm:$0xff] }
 0x2e2   :  { %2343 = vmatpush1.bf16.msra.mxu0 %v2342_v60  ;;  %v1084_v60 = vld [vmem:[#allocation12 + $0x580] sm:$0xff]  ;;  %v2508_v56 = vpack.c.bf16 %v1147_v57, %v1141_v55  ;;  %v1139_v57 = vld [vmem:[#allocation12 + $0x738] sm:$0xff] }
 0x2e3   :  { %2345 = vmatprep.subr.bf16.mxu0 %v2344_v63  ;;  %v1097_v63 = vld [vmem:[#allocation12 + $0x5e8] sm:$0xff]  ;;  %v2362_v4 = vpack.c.bf16 %v1084_v60, %v1078_v59  ;;  %v1188_v59 = vld [vmem:[#allocation12 + $0x8c0] sm:$0xff]  ;;  %v1194_v60 = vld [vmem:[#allocation12 + $0x8f0] sm:$0xff] }
 0x2e4   :  { %2491 = vmatpush1.bf16.msra.mxu1 %v2490_v1  ;;  %v1146_v1 = vld [vmem:[#allocation12 + $0x770] sm:$0xff]  ;;  %v2364_v8 = vpack.c.bf16 %v1097_v63, %v1091_v62  ;;  %v1201_v62 = vld [vmem:[#allocation12 + $0x928] sm:$0xff]  ;;  %v1207_v63 = vld [vmem:[#allocation12 + $0x958] sm:$0xff] }
 0x2e5   :  { %2493 = vmatprep.subr.bf16.mxu1 %v2492_v6  ;;  %v1159_v6 = vld [vmem:[#allocation12 + $0x7d8] sm:$0xff]  ;;  %v2510_v11 = vpack.c.bf16 %v1146_v1, %v1140_v0  ;;  %v1144_v0 = vld [vmem:[#allocation12 + $0x760] sm:$0xff]  ;;  %v2526_v1 = vpack.c.bf16 %v1194_v60, %v1188_v59 }
 0x2e6   :  { %2347 = vmatpush1.bf16.msra.mxu0 %v2346_v10  ;;  %v1096_v10 = vld [vmem:[#allocation12 + $0x5e0] sm:$0xff]  ;;  %v2512_v17 = vpack.c.bf16 %v1159_v6, %v1153_v5  ;;  %v1157_v5 = vld [vmem:[#allocation12 + $0x7c8] sm:$0xff]  ;;  %v2528_v6 = vpack.c.bf16 %v1207_v63, %v1201_v62 }
 0x2e7   :  { %2349 = vmatprep.subr.bf16.mxu0 %v2348_v15  ;;  %v1109_v15 = vld [vmem:[#allocation12 + $0x648] sm:$0xff]  ;;  %v2366_v20 = vpack.c.bf16 %v1096_v10, %v1090_v9  ;;  %v1206_v9 = vld [vmem:[#allocation12 + $0x950] sm:$0xff]  ;;  %v1192_v59 = vld [vmem:[#allocation12 + $0x8e0] sm:$0xff] }
 0x2e8   :  { %2495 = vmatpush1.bf16.msra.mxu1 %v2494_v19  ;;  %v1158_v19 = vld [vmem:[#allocation12 + $0x7d0] sm:$0xff]  ;;  %v2368_v23 = vpack.c.bf16 %v1109_v15, %v1103_v12  ;;  %v1219_v12 = vld [vmem:[#allocation12 + $0x9b8] sm:$0xff]  ;;  %v1205_v62 = vld [vmem:[#allocation12 + $0x948] sm:$0xff] }
 0x2e9   :  { %2497 = vmatprep.subr.bf16.mxu1 %v2496_v22  ;;  %v1171_v22 = vld [vmem:[#allocation12 + $0x838] sm:$0xff]  ;;  %v2514_v26 = vpack.c.bf16 %v1158_v19, %v1152_v18  ;;  %v1156_v18 = vld [vmem:[#allocation12 + $0x7c0] sm:$0xff] }
 0x2ea   :  { %2351 = vmatpush1.bf16.msra.mxu0 %v2350_v25  ;;  %v1108_v25 = vld [vmem:[#allocation12 + $0x640] sm:$0xff]  ;;  %v2516_v29 = vpack.c.bf16 %v1171_v22, %v1165_v21  ;;  %v1169_v21 = vld [vmem:[#allocation12 + $0x828] sm:$0xff] }
 0x2eb   :  { %1673 = vmatmul.mubr.f32.vlgmr.msra.gmra.mrb[12].mxu1 %v3235_v51  ;;  %2353 = vmatprep.subr.bf16.mxu0 %v2352_v28  ;;  %v1121_v28 = vld [vmem:[#allocation12 + $0x6a8] sm:$0xff]  ;;  %v2370_v32 = vpack.c.bf16 %v1108_v25, %v1102_v24  ;;  %v1218_v24 = vld [vmem:[#allocation12 + $0x9b0] sm:$0xff] }
 0x2ec   :  { %2499 = vmatpush1.bf16.msra.mxu1 %v2498_v31  ;;  %1743 = vmatprep.mubr.f32.mxu1 %v3231_v7  ;;  %v1170_v31 = vld [vmem:[#allocation12 + $0x830] sm:$0xff]  ;;  %v2372_v35 = vpack.c.bf16 %v1121_v28, %v1115_v27  ;;  %v1231_v27 = vld [vmem:[#allocation12 + $0xa18] sm:$0xff] }
 0x2ed   :  { %2501 = vmatprep.subr.bf16.mxu1 %v2500_v34  ;;  %v1183_v34 = vld [vmem:[#allocation12 + $0x898] sm:$0xff]  ;;  %v2518_v38 = vpack.c.bf16 %v1170_v31, %v1164_v30  ;;  %v1168_v30 = vld [vmem:[#allocation12 + $0x820] sm:$0xff] }
 0x2ee   :  { %2355 = vmatpush1.bf16.msra.mxu0 %v2354_v37  ;;  %v1120_v37 = vld [vmem:[#allocation12 + $0x6a0] sm:$0xff]  ;;  %v2520_v42 = vpack.c.bf16 %v1183_v34, %v1177_v33  ;;  %v1181_v33 = vld [vmem:[#allocation12 + $0x888] sm:$0xff] }
 0x2ef   :  { %2357 = vmatprep.subr.bf16.mxu0 %v2356_v40  ;;  %v1133_v40 = vld [vmem:[#allocation12 + $0x708] sm:$0xff]  ;;  %v2374_v45 = vpack.c.bf16 %v1120_v37, %v1114_v36  ;;  %v1230_v36 = vld [vmem:[#allocation12 + $0xa10] sm:$0xff] }
 0x2f0   :  { %2503 = vmatpush1.bf16.msra.mxu1 %v2502_v44  ;;  %v1182_v44 = vld [vmem:[#allocation12 + $0x890] sm:$0xff]  ;;  %v2376_v50 = vpack.c.bf16 %v1133_v40, %v1127_v39  ;;  %v1243_v39 = vld [vmem:[#allocation12 + $0xa78] sm:$0xff] }
 0x2f1   :  { %2505 = vmatprep.subr.bf16.mxu1 %v2504_v49  ;;  %v1195_v49 = vld [vmem:[#allocation12 + $0x8f8] sm:$0xff]  ;;  %v2522_v55 = vpack.c.bf16 %v1182_v44, %v1176_v43  ;;  %v1180_v43 = vld [vmem:[#allocation12 + $0x880] sm:$0xff] }
 0x2f2   :  { %2359 = vmatpush1.bf16.msra.mxu0 %v2358_v54  ;;  %v1132_v54 = vld [vmem:[#allocation12 + $0x700] sm:$0xff] }
 0x2f3   :  { %2361 = vmatprep.subr.bf16.mxu0 %v2360_v58  ;;  %v1145_v58 = vld [vmem:[#allocation12 + $0x768] sm:$0xff] }
 0x2f4   :  { %2507 = vmatpush1.bf16.msra.mxu1 %v2506_v61  ;;  %v2378_v61 = vpack.c.bf16 %v1132_v54, %v1126_v53  ;;  %v1242_v53 = vld [vmem:[#allocation12 + $0xa70] sm:$0xff] }
 0x2f5   :  { %2509 = vmatprep.subr.bf16.mxu1 %v2508_v56  ;;  %v1138_v56 = vld [vmem:[#allocation12 + $0x730] sm:$0xff] }
 0x2f6   :  { %2363 = vmatpush1.bf16.msra.mxu0 %v2362_v4  ;;  %v1151_v4 = vld [vmem:[#allocation12 + $0x798] sm:$0xff]  ;;  %v2382_v10 = vpack.c.bf16 %v1144_v0, %v1138_v56  ;;  %v1254_v56 = vld [vmem:[#allocation12 + $0xad0] sm:$0xff] }
 0x2f7   :  { %2365 = vmatprep.subr.bf16.mxu0 %v2364_v8  ;;  %v1200_v8 = vld [vmem:[#allocation12 + $0x920] sm:$0xff]  ;;  %v2384_v15 = vpack.c.bf16 %v1157_v5, %v1151_v4  ;;  %v1267_v4 = vld [vmem:[#allocation12 + $0xb38] sm:$0xff] }
 0x2f8   :  { %2511 = vmatpush1.bf16.msra.mxu1 %v2510_v11  ;;  %v1213_v11 = vld [vmem:[#allocation12 + $0x988] sm:$0xff]  ;;  %v2530_v19 = vpack.c.bf16 %v1206_v9, %v1200_v8  ;;  %v1204_v8 = vld [vmem:[#allocation12 + $0x940] sm:$0xff] }
 0x2f9   :  { %2513 = vmatprep.subr.bf16.mxu1 %v2512_v17  ;;  %v1150_v17 = vld [vmem:[#allocation12 + $0x790] sm:$0xff]  ;;  %v2532_v22 = vpack.c.bf16 %v1219_v12, %v1213_v11  ;;  %v1217_v11 = vld [vmem:[#allocation12 + $0x9a8] sm:$0xff] }
 0x2fa   :  { %2367 = vmatpush1.bf16.msra.mxu0 %v2366_v20  ;;  %v1163_v20 = vld [vmem:[#allocation12 + $0x7f8] sm:$0xff]  ;;  %v2386_v25 = vpack.c.bf16 %v1156_v18, %v1150_v17  ;;  %v1266_v17 = vld [vmem:[#allocation12 + $0xb30] sm:$0xff] }
 0x2fb   :  { %2369 = vmatprep.subr.bf16.mxu0 %v2368_v23  ;;  %v1212_v23 = vld [vmem:[#allocation12 + $0x980] sm:$0xff]  ;;  %v2388_v28 = vpack.c.bf16 %v1169_v21, %v1163_v20  ;;  %v1279_v20 = vld [vmem:[#allocation12 + $0xb98] sm:$0xff] }
 0x2fc   :  { %2515 = vmatpush1.bf16.msra.mxu1 %v2514_v26  ;;  %v1225_v26 = vld [vmem:[#allocation12 + $0x9e8] sm:$0xff]  ;;  %v2534_v31 = vpack.c.bf16 %v1218_v24, %v1212_v23  ;;  %v1216_v23 = vld [vmem:[#allocation12 + $0x9a0] sm:$0xff] }
 0x2fd   :  { %1531 = vmatmul.mubr.f32.vlgmr.msra.gmra.mrb[6].mxu0 %v3235_v51  ;;  %2517 = vmatprep.subr.bf16.mxu1 %v2516_v29  ;;  %v2524_v51 = vpack.c.bf16 %v1195_v49, %v1189_v47  ;;  %v1162_v29 = vld [vmem:[#allocation12 + $0x7f0] sm:$0xff]  ;;  %v2536_v34 = vpack.c.bf16 %v1231_v27, %v1225_v26  ;;  %v1193_v47 = vld [vmem:[#allocation12 + $0x8e8] sm:$0xff] }
 0x2fe   :  { %2371 = vmatpush1.bf16.msra.mxu0 %v2370_v32  ;;  %1601 = vmatprep.mubr.f32.mxu0 %v3231_v7  ;;  %v2380_v7 = vpack.c.bf16 %v1145_v58, %v1139_v57  ;;  %v1175_v32 = vld [vmem:[#allocation12 + $0x858] sm:$0xff]  ;;  %v2390_v37 = vpack.c.bf16 %v1168_v30, %v1162_v29  ;;  %v1229_v26 = vld [vmem:[#allocation12 + $0xa08] sm:$0xff]  ;;  %v1278_v29 = vld [vmem:[#allocation12 + $0xb90] sm:$0xff] }
 0x2ff   :  { %2373 = vmatprep.subr.bf16.mxu0 %v2372_v35  ;;  %v1224_v35 = vld [vmem:[#allocation12 + $0x9e0] sm:$0xff]  ;;  %v2392_v40 = vpack.c.bf16 %v1181_v33, %v1175_v32  ;;  %v1255_v57 = vld [vmem:[#allocation12 + $0xad8] sm:$0xff] }
 0x300   :  { %2519 = vmatpush1.bf16.msra.mxu1 %v2518_v38  ;;  %v1237_v38 = vld [vmem:[#allocation12 + $0xa48] sm:$0xff]  ;;  %v2538_v44 = vpack.c.bf16 %v1230_v36, %v1224_v35  ;;  %v1291_v32 = vld [vmem:[#allocation12 + $0xbf8] sm:$0xff]  ;;  %v1228_v35 = vld [vmem:[#allocation12 + $0xa00] sm:$0xff] }
 0x301   :  { %2521 = vmatprep.subr.bf16.mxu1 %v2520_v42  ;;  %v1174_v42 = vld [vmem:[#allocation12 + $0x850] sm:$0xff]  ;;  %v2540_v49 = vpack.c.bf16 %v1243_v39, %v1237_v38  ;;  %v1241_v38 = vld [vmem:[#allocation12 + $0xa68] sm:$0xff] }
 0x302   :  { %2375 = vmatpush1.bf16.msra.mxu0 %v2374_v45  ;;  %v1187_v45 = vld [vmem:[#allocation12 + $0x8b8] sm:$0xff]  ;;  %v2394_v54 = vpack.c.bf16 %v1180_v43, %v1174_v42  ;;  %v1290_v42 = vld [vmem:[#allocation12 + $0xbf0] sm:$0xff] }
 0x303   :  { %2377 = vmatprep.subr.bf16.mxu0 %v2376_v50  ;;  %v1236_v50 = vld [vmem:[#allocation12 + $0xa40] sm:$0xff]  ;;  %v2396_v58 = vpack.c.bf16 %v1193_v47, %v1187_v45  ;;  %v1234_v45 = vld [vmem:[#allocation12 + $0xa30] sm:$0xff] }
 0x304   :  { %2523 = vmatpush1.bf16.msra.mxu1 %v2522_v55  ;;  %v1249_v55 = vld [vmem:[#allocation12 + $0xaa8] sm:$0xff]  ;;  %v2542_v60 = vpack.c.bf16 %v1242_v53, %v1236_v50  ;;  %v1240_v47 = vld [vmem:[#allocation12 + $0xa60] sm:$0xff]  ;;  %v1247_v50 = vld [vmem:[#allocation12 + $0xa98] sm:$0xff] }
 0x305   :  { %2525 = vmatprep.subr.bf16.mxu1 %v2524_v51  ;;  %v1186_v51 = vld [vmem:[#allocation12 + $0x8b0] sm:$0xff]  ;;  %v2544_v63 = vpack.c.bf16 %v1255_v57, %v1249_v55  ;;  %v1253_v53 = vld [vmem:[#allocation12 + $0xac8] sm:$0xff] }
 0x306   :  { %2379 = vmatpush1.bf16.msra.mxu0 %v2378_v61  ;;  %v1199_v61 = vld [vmem:[#allocation12 + $0x918] sm:$0xff]  ;;  %v2398_v0 = vpack.c.bf16 %v1192_v59, %v1186_v51  ;;  %v2416_v55 = vpack.c.bf16 %v1253_v53, %v1247_v50  ;;  %v1246_v57 = vld [vmem:[#allocation12 + $0xa90] sm:$0xff]  ;;  %v1265_v59 = vld [vmem:[#allocation12 + $0xb28] sm:$0xff] }
 0x307   :  { %2381 = vmatprep.subr.bf16.mxu0 %v2380_v7  ;;  %v1248_v7 = vld [vmem:[#allocation12 + $0xaa0] sm:$0xff]  ;;  %v2400_v5 = vpack.c.bf16 %v1205_v62, %v1199_v61  ;;  %v1259_v51 = vld [vmem:[#allocation12 + $0xaf8] sm:$0xff]  ;;  %v1258_v62 = vld [vmem:[#allocation12 + $0xaf0] sm:$0xff] }
 0x308   :  { %2527 = vmatpush1.bf16.msra.mxu1 %v2526_v1  ;;  %v1261_v1 = vld [vmem:[#allocation12 + $0xb08] sm:$0xff]  ;;  %v2546_v9 = vpack.c.bf16 %v1254_v56, %v1248_v7  ;;  %v2420_v61 = vpack.c.bf16 %v1265_v59, %v1259_v51  ;;  %v1271_v7 = vld [vmem:[#allocation12 + $0xb58] sm:$0xff] }
 0x309   :  { %2529 = vmatprep.subr.bf16.mxu1 %v2528_v6  ;;  %v1198_v6 = vld [vmem:[#allocation12 + $0x910] sm:$0xff]  ;;  %v2548_v12 = vpack.c.bf16 %v1267_v4, %v1261_v1  ;;  %v1277_v56 = vld [vmem:[#allocation12 + $0xb88] sm:$0xff]  ;;  %v1789_v53 = vld [vmem:[#allocation15 + $0x38] sm:$0xff] }
 0x30a   :  { %2383 = vmatpush1.bf16.msra.mxu0 %v2382_v10  ;;  %v1211_v10 = vld [vmem:[#allocation12 + $0x978] sm:$0xff]  ;;  %v2402_v18 = vpack.c.bf16 %v1204_v8, %v1198_v6  ;;  %v2424_v1 = vpack.c.bf16 %v1277_v56, %v1271_v7  ;;  %v1270_v4 = vld [vmem:[#allocation12 + $0xb50] sm:$0xff]  ;;  %v1289_v8 = vld [vmem:[#allocation12 + $0xbe8] sm:$0xff] }
 0x30b   :  { %2385 = vmatprep.subr.bf16.mxu0 %v2384_v15  ;;  %v1260_v15 = vld [vmem:[#allocation12 + $0xb00] sm:$0xff]  ;;  %v2404_v21 = vpack.c.bf16 %v1217_v11, %v1211_v10  ;;  %v1283_v6 = vld [vmem:[#allocation12 + $0xbb8] sm:$0xff]  ;;  %v1282_v11 = vld [vmem:[#allocation12 + $0xbb0] sm:$0xff] }
 0x30c   :  { %2531 = vmatpush1.bf16.msra.mxu1 %v2530_v19  ;;  %v1273_v19 = vld [vmem:[#allocation12 + $0xb68] sm:$0xff]  ;;  %v2550_v24 = vpack.c.bf16 %v1266_v17, %v1260_v15  ;;  %v2428_v10 = vpack.c.bf16 %v1289_v8, %v1283_v6  ;;  %v1788_v50 = vld [vmem:[#allocation15 + $0x30] sm:$0xff]  ;;  %v1793_v56 = vld [vmem:[#allocation15 + $0x58] sm:$0xff] }
 0x30d   :  { %2533 = vmatprep.subr.bf16.mxu1 %v2532_v22  ;;  %v1210_v22 = vld [vmem:[#allocation12 + $0x970] sm:$0xff]  ;;  %v2552_v27 = vpack.c.bf16 %v1279_v20, %v1273_v19  ;;  %v3244_v19 = vld [vmem:[#allocation14] sm:$0x3f]  ;;  %v1790_v51 = vld [vmem:[#allocation15 + $0x40] sm:$0xff] }
 0x30e   :  { %2387 = vmatpush1.bf16.msra.mxu0 %v2386_v25  ;;  %v1223_v25 = vld [vmem:[#allocation12 + $0x9d8] sm:$0xff]  ;;  %v2406_v30 = vpack.c.bf16 %v1216_v23, %v1210_v22  ;;  %v1297_v20 = vrot.slane %v3244_v19, %v3196_v46  ;;  %v1798_v22 = vld [vmem:[#allocation15 + $0x80] sm:$0xff]  ;;  %v1799_v23 = vld [vmem:[#allocation15 + $0x88] sm:$0xff] }
 0x30f   :  { %2389 = vmatprep.subr.bf16.mxu0 %v2388_v28  ;;  %v1272_v28 = vld [vmem:[#allocation12 + $0xb60] sm:$0xff]  ;;  %v2408_v33 = vpack.c.bf16 %v1229_v26, %v1223_v25  ;;  %v1783_v26 = vld [vmem:[#allocation15 + $0x8] sm:$0xff] }
 0x310   :  { %2535 = vmatpush1.bf16.msra.mxu1 %v2534_v31  ;;  %v1285_v31 = vld [vmem:[#allocation12 + $0xbc8] sm:$0xff]  ;;  %v2554_v36 = vpack.c.bf16 %v1278_v29, %v1272_v28 }
 0x311   :  { %2537 = vmatprep.subr.bf16.mxu1 %v2536_v34  ;;  %v1222_v34 = vld [vmem:[#allocation12 + $0x9d0] sm:$0xff]  ;;  %v2556_v39 = vpack.c.bf16 %v1291_v32, %v1285_v31  ;;  %v1782_v25 = vld [vmem:[#allocation15] sm:$0xff]  ;;  %v1801_v32 = vld [vmem:[#allocation15 + $0x98] sm:$0xff] }
 0x312   :  { %2391 = vmatpush1.bf16.msra.mxu0 %v2390_v37  ;;  %v1235_v37 = vld [vmem:[#allocation12 + $0xa38] sm:$0xff]  ;;  %v2410_v43 = vpack.c.bf16 %v1228_v35, %v1222_v34  ;;  %v2562_v28 = vpack.c.bf16 %v1783_v26, %v1782_v25  ;;  %v1791_v59 = vld [vmem:[#allocation15 + $0x48] sm:$0xff]  ;;  %v1794_v6 = vld [vmem:[#allocation15 + $0x60] sm:$0xff]  ;;  %v1317_v25 = vrot.slane %v3244_v19, %v376_v16 }
 0x313   :  { %2393 = vmatprep.subr.bf16.mxu0 %v2392_v40  ;;  %v1284_v40 = vld [vmem:[#allocation12 + $0xbc0] sm:$0xff]  ;;  %v1800_v31 = vld [vmem:[#allocation15 + $0x90] sm:$0xff]  ;;  %v1795_v8 = vld [vmem:[#allocation15 + $0x68] sm:$0xff] }
 0x314   :  { %2539 = vmatpush1.bf16.msra.mxu1 %v2538_v44  ;;  %v2412_v44 = vpack.c.bf16 %v1241_v38, %v1235_v37  ;;  %v2564_v34 = vpack.c.bf16 %v1801_v32, %v1800_v31  ;;  %v1784_v35 = vld [vmem:[#allocation15 + $0x10] sm:$0xff]  ;;  %v1802_v38 = vld [vmem:[#allocation15 + $0xa0] sm:$0xff]  ;;  %v1305_v32 = vrot.slane %v3244_v19, %v3204_v14 }
 0x315   :  { %2541 = vmatprep.subr.bf16.mxu1 %v2540_v49  ;;  %v2558_v49 = vpack.c.bf16 %v1290_v42, %v1284_v40  ;;  %v1786_v42 = vld [vmem:[#allocation15 + $0x20] sm:$0xff] }
 0x316   :  { %2395 = vmatpush1.bf16.msra.mxu0 %v2394_v54  ;;  %v2414_v54 = vpack.c.bf16 %v1240_v47, %v1234_v45  ;;  %v1804_v45 = vld [vmem:[#allocation15 + $0xb0] sm:$0xff]  ;;  %v1805_v47 = vld [vmem:[#allocation15 + $0xb8] sm:$0xff] }
 0x317   :  { %2397 = vmatprep.subr.bf16.mxu0 %v2396_v58  ;;  %v1252_v58 = vld [vmem:[#allocation12 + $0xac0] sm:$0xff] }
 0x318   :  { %2543 = vmatpush1.bf16.msra.mxu1 %v2542_v60  ;;  %v2418_v60 = vpack.c.bf16 %v1252_v58, %v1246_v57  ;;  %v1807_v57 = vld [vmem:[#allocation15 + $0xc8] sm:$0xff] }
 0x319   :  { %2545 = vmatprep.subr.bf16.mxu1 %v2544_v63  ;;  %v1264_v63 = vld [vmem:[#allocation12 + $0xb20] sm:$0xff] }
 0x31a   :  { %2399 = vmatpush1.bf16.msra.mxu0 %v2398_v0  ;;  %v2422_v0 = vpack.c.bf16 %v1264_v63, %v1258_v62  ;;  %v1809_v62 = vld [vmem:[#allocation15 + $0xd8] sm:$0xff]  ;;  %v1792_v63 = vld [vmem:[#allocation15 + $0x50] sm:$0xff] }
 0x31b   :  { %2401 = vmatprep.subr.bf16.mxu0 %v2400_v5  ;;  %v1276_v5 = vld [vmem:[#allocation12 + $0xb80] sm:$0xff] }
 0x31c   :  { %2547 = vmatpush1.bf16.msra.mxu1 %v2546_v9  ;;  %v2426_v9 = vpack.c.bf16 %v1276_v5, %v1270_v4  ;;  %v2582_v4 = vpack.c.bf16 %v1793_v56, %v1792_v63 }
 0x31d   :  { %2549 = vmatprep.subr.bf16.mxu1 %v2548_v12  ;;  %v1288_v12 = vld [vmem:[#allocation12 + $0xbe0] sm:$0xff] }
 0x31e   :  { %2403 = vmatpush1.bf16.msra.mxu0 %v2402_v18  ;;  %v2430_v15 = vpack.c.bf16 %v1288_v12, %v1282_v11  ;;  %v2586_v11 = vpack.c.bf16 %v1795_v8, %v1794_v6 }
 0x31f   :  { %2405 = vmatprep.subr.bf16.mxu0 %v2404_v21  ;;  %v1301_v21 = vrot.slane %v3244_v19, %v3199_v48 }
 0x320   :  { %2551 = vmatpush1.bf16.msra.mxu1 %v2550_v24  ;;  %v2560_v24 = vpack.c.bf16 %v1799_v23, %v1798_v22 }
 0x321   :  { %2553 = vmatprep.subr.bf16.mxu1 %v2552_v27 }
 0x322   :  { %2407 = vmatpush1.bf16.msra.mxu0 %v2406_v30 }
 0x323   :  { %2409 = vmatprep.subr.bf16.mxu0 %v2408_v33 }
 0x324   :  { %2555 = vmatpush1.bf16.msra.mxu1 %v2554_v36  ;;  %v1785_v36 = vld [vmem:[#allocation15 + $0x18] sm:$0xff] }
 0x325   :  { %2557 = vmatprep.subr.bf16.mxu1 %v2556_v39  ;;  %v2566_v48 = vpack.c.bf16 %v1785_v36, %v1784_v35  ;;  %v1803_v39 = vld [vmem:[#allocation15 + $0xa8] sm:$0xff] }
 0x326   :  { %2411 = vmatpush1.bf16.msra.mxu0 %v2410_v43  ;;  %v2568_v40 = vpack.c.bf16 %v1803_v39, %v1802_v38  ;;  %v1787_v43 = vld [vmem:[#allocation15 + $0x28] sm:$0xff] }
 0x327   :  { %2413 = vmatprep.subr.bf16.mxu0 %v2412_v44  ;;  %v2570_v44 = vpack.c.bf16 %v1787_v43, %v1786_v42 }
 0x328   :  { %2559 = vmatpush1.bf16.msra.mxu1 %v2558_v49  ;;  %v2572_v49 = vpack.c.bf16 %v1805_v47, %v1804_v45 }
 0x32a   :  { %2415 = vmatpush1.bf16.msra.mxu0 %v2414_v54  ;;  %v2574_v54 = vpack.c.bf16 %v1789_v53, %v1788_v50  ;;  %v1893_v53 = vld [vmem:[#allocation2] sm:$0x1] }
 0x32b   :  { %1744 = vmatmul.mubr.f32.vlgmr.msra.gmra.mrb[12].mxu1 %v3229_v3  ;;  %2417 = vmatprep.subr.bf16.mxu0 %v2416_v55  ;;  %v1806_v55 = vld [vmem:[#allocation15 + $0xc0] sm:$0xff] }
 0x32c   :  { %v2576_v58 = vpack.c.bf16 %v1807_v57, %v1806_v55  ;;  %v2022_v57 = vld [vmem:[#allocation17] ss:$0 sm:$0xff] }
 0x32e   :  { %2419 = vmatpush1.bf16.msra.mxu0 %v2418_v60  ;;  %v2578_v60 = vpack.c.bf16 %v1791_v59, %v1790_v51 }
 0x32f   :  { %2421 = vmatprep.subr.bf16.mxu0 %v2420_v61  ;;  %v1808_v61 = vld [vmem:[#allocation15 + $0xd0] sm:$0xff] }
 0x330   :  { %v2580_v7 = vpack.c.bf16 %v1809_v62, %v1808_v61  ;;  %v1892_v61 = vld [vmem:[#allocation18] sm:$0x1] }
 0x332   :  { %2423 = vmatpush1.bf16.msra.mxu0 %v2422_v0  ;;  %v1810_v0 = vld [vmem:[#allocation15 + $0xe0] sm:$0xff] }
 0x333   :  { %2425 = vmatprep.subr.bf16.mxu0 %v2424_v1  ;;  %v1811_v1 = vld [vmem:[#allocation15 + $0xe8] sm:$0xff] }
 0x334   :  { %v2584_v5 = vpack.c.bf16 %v1811_v1, %v1810_v0 }
 0x336   :  { %2427 = vmatpush1.bf16.msra.mxu0 %v2426_v9  ;;  %v1812_v9 = vld [vmem:[#allocation15 + $0xf0] sm:$0xff] }
 0x337   :  { %2429 = vmatprep.subr.bf16.mxu0 %v2428_v10  ;;  %v1813_v10 = vld [vmem:[#allocation15 + $0xf8] sm:$0xff] }
 0x338   :  { %v2588_v12 = vpack.c.bf16 %v1813_v10, %v1812_v9 }
 0x33a   :  { %2431 = vmatpush1.bf16.msra.mxu0 %v2430_v15  ;;  %v1796_v15 = vld [vmem:[#allocation15 + $0x70] sm:$0xff] }
 0x33b   :  { %2561 = vmatprep.subr.bf16.mxu0 %v2560_v24  ;;  %v1313_v24 = vrot.slane %v3244_v19, %v372_v13  ;;  %v1309_v13 = vrot.slane %v3244_v19, %v3207_v52 }
 0x33d   :  { %1602 = vmatmul.mubr.f32.vlgmr.msra.gmra.mrb[6].mxu0 %v3229_v3 }
 0x33e   :  { %2563 = vmatpush3.bf16.msra.mxu0 %v2562_v28 }
 0x33f   :  { %2565 = vmatprep.subr.bf16.mxu0 %v2564_v34 }
 0x342   :  { %2567 = vmatpush3.bf16.msra.mxu0 %v2566_v48 }
 0x343   :  { %2569 = vmatprep.subr.bf16.mxu0 %v2568_v40 }
 0x346   :  { %2571 = vmatpush3.bf16.msra.mxu0 %v2570_v44 }
 0x347   :  { %2573 = vmatprep.subr.bf16.mxu0 %v2572_v49 }
 0x34a   :  { %2575 = vmatpush3.bf16.msra.mxu0 %v2574_v54  ;;  %v2979_v54 = vmov 0  }
 0x34b   :  { %2577 = vmatprep.subr.bf16.mxu0 %v2576_v58  ;;  %2626 = vset.pattern.permute.xlu0 %v2979_v54 }
 0x34c   :  { %1896 = vperm.xlu0 %2626, %v1893_v53  }
 0x34e   :  { %2579 = vmatpush3.bf16.msra.mxu0 %v2578_v60 }
 0x34f   :  { %2581 = vmatprep.subr.bf16.mxu0 %v2580_v7 }
 0x352   :  { %2583 = vmatpush3.bf16.msra.mxu0 %v2582_v4 }
 0x353   :  { %2585 = vmatprep.subr.bf16.mxu0 %v2584_v5 }
 0x356   :  { %2587 = vmatpush3.bf16.msra.mxu0 %v2586_v11 }
 0x357   :  { %2589 = vmatprep.subr.bf16.mxu0 %v2588_v12 }
 0x37e   :  { %v1461_v17 = vpop.f32.mrb[10].mxu1 }
 0x37f   :  { %v1463_v18 = vpop.f32.mrb[11].mxu1 }
 0x390   :  { %v1390_v27 = vpop.f32.mrb[4].mxu0 }
 0x391   :  { %v1391_v29 = vadd.f32 %v1390_v27, %v1297_v20  ;;  %v1392_v30 = vpop.f32.mrb[5].mxu0 }
 0x392   :  { %v1393_v3 = vadd.f32 %v1392_v30, %v1301_v21 }
 0x393   :  { %v1462_v33 = vadd.f32 %v1461_v17, %v1391_v29  ;;  %v1797_v17 = vld [vmem:[#allocation15 + $0x78] sm:$0xff] }
 0x394   :  { %v1464_v37 = vadd.f32 %v1463_v18, %v1393_v3  ;;  %v2590_v18 = vpack.c.bf16 %v1797_v17, %v1796_v15 }
 0x395   :  { %v2018_v20 = vmul.f32 -1.442695, %v1462_v33 }
 0x396   :  { %2591 = vmatpush3.bf16.msra.mxu0 %v2590_v18  ;;  %v2019_v21 = vmul.f32 -1.442695, %v1464_v37 }
 0x397   :  { %2071 = vmatprep.subr.mxu0 %v2977_v2  ;;  %2675 = vpow2.f32 %v2018_v20 }
 0x398   :  { %2677 = vpow2.f32 %v2019_v21 }
 0x3a1   :  { %v2676_v29 = vpop.eup %2675 }
 0x3a2   :  { %v2678_v3 = vpop.eup %2677  ;;  %v1756_v31 = vadd.f32 1.0, %v2676_v29 }
 0x3a3   :  { %v1757_v33 = vadd.f32 1.0, %v2678_v3 }
 0x3cb   :  { %v1897_v62 = vpop.permute.xlu0 %1896 }
 0x3cc   :  { %v1902_v63 = vrot.slane %v1897_v62, %v3196_v46 }
 0x3fe   :  { %v1745_v22 = vpop.f32.mrb[12].mxu1 }
 0x3ff   :  { %v1747_v23 = vpop.f32.mrb[13].mxu1  ;;  %v2598_v26 = vadd.f32 %v1745_v22, %v1313_v24 }
 0x400   :  { %v2599_v27 = vadd.f32 %v1747_v23, %v1317_v25 }
 0x401   :  { %v2020_v28 = vmul.f32 -1.442695, %v2598_v26 }
 0x402   :  { %v2021_v30 = vmul.f32 -1.442695, %v2599_v27 }
 0x403   :  { %2679 = vpow2.f32 %v2020_v28 }
 0x404   :  { %2681 = vpow2.f32 %v2021_v30 }
 0x405   :  { %2683 = vrcp.f32 %v1756_v31 }
 0x406   :  { %2685 = vrcp.f32 %v1757_v33 }
 0x40d   :  { %v2680_v36 = vpop.eup %2679 }
 0x40e   :  { %v2682_v37 = vpop.eup %2681  ;;  %v1770_v48 = vadd.f32 1.0, %v2680_v36 }
 0x40f   :  { %v2684_v38 = vpop.eup %2683  ;;  %v1771_v39 = vadd.f32 1.0, %v2682_v37 }
 0x410   :  { %v1603_v34 = vpop.f32.mrb[6].mxu0  ;;  %v2686_v40 = vpop.eup %2685 }
 0x411   :  { %v2596_v41 = vadd.f32 %v1603_v34, %v1305_v32  ;;  %v1605_v16 = vpop.f32.mrb[7].mxu0 }
 0x412   :  { %v2597_v35 = vadd.f32 %v1605_v16, %v1309_v13 }
 0x413   :  { %2687 = vtanh.f32 %v2596_v41 }
 0x414   :  { %2689 = vtanh.f32 %v2597_v35 }
 0x415   :  { %2691 = vrcp.f32 %v1770_v48 }
 0x416   :  { %2693 = vrcp.f32 %v1771_v39 }
 0x41d   :  { %v2688_v14 = vpop.eup %2687 }
 0x41e   :  { %v2690_v42 = vpop.eup %2689  ;;  %v1776_v43 = vmul.f32 %v2688_v14, %v2684_v38 }
 0x41f   :  { %v1777_v52 = vmul.f32 %v2690_v42, %v2686_v40  ;;  %v2692_v19 = vpop.eup %2691 }
 0x420   :  { %2695 = vtanh.f32 %v1776_v43  ;;  %v2694_v44 = vpop.eup %2693 }
 0x421   :  { %2697 = vtanh.f32 %v1777_v52 }
 0x42a   :  { %v2696_v45 = vpop.eup %2695 }
 0x42b   :  { %v2698_v47 = vpop.eup %2697  ;;  %v1780_v49 = vmul.f32 %v2696_v45, %v2692_v19 }
 0x42c   :  { %v1781_v50 = vmul.f32 %v2698_v47, %v2694_v44 }
 0x42e   :  { %1885 = vmatprep.mubr.f32.mxu0 %v1781_v50 }
 0x42f   :  { %1886 = vmatmul.mubr.f32.vlgmr.msra.gmra.mrb[8].mxu0 %v1780_v49 }
 0x430   :  { %2073 = vmatprep.mubr.msk.f32.mxu0 %vm2976_vm0, %v2977_v2 }
 0x502   :  { %v2059_v55 = vpop.f32.mrb[8].mxu0 }
 0x503   :  { %v2060_v58 = vpop.f32.mrb[9].mxu0 }
 0x504   :  { %v2061_v51 = vadd.f32 %v2060_v58, %v2059_v55 }
 0x506   :  { %v1888_v59 = vadd.f32 %v2061_v51, %v2022_v57 }
 0x508   :  { %v1891_v60 = vmax.f32 %v1888_v59, 0.0 }
 0x50a   :  { %2072 = vmatpush3.xpose.msra.mxu0 %v1891_v60 }
 0x50d   :  { %2074 = vmatmul.mubr.f32.vlgmr.msra.gmra.mrb[10].mxu0 %v1892_v61 }
 0x5e0   :  { %v1969_v7 = vpop.f32.mrb[10].mxu0 }
 0x5e1   :  { %v1970_v56 = vadd.f32 %v1969_v7, %v1902_v63  ;;  %v2075_v0 = vpop.f32.mrb[11].mxu0 }
 0x5e3   :  { %v2023_v2 = vmul.f32 -1.442695, %v1970_v56 }
 0x5e5   :  { %2699 = vpow2.f32 %v2023_v2 }
 0x5ef   :  { %v2700_v1 = vpop.eup %2699 }
 0x5f0   :  { %v1976_v4 = vadd.f32 1.0, %v2700_v1 }
 0x5f2   :  { %2701 = vrcp.f32 %v1976_v4 }
 0x5fc   :  { %v2702_v5 = vpop.eup %2701 }
 0x5fd   :  { %1980 = vst.msk [vmem:[#allocation20] sm:$0x1] %vm1979_vm6, %v2702_v5 }
 0x5fe   :  { %2934 = shalt.err (!%p2931_p0)
}
 0x5ff   :  { %s2935_s20 = scalar_lea.hbm %s3287_s11, 16 }
 0x600   :  { %p2936_p1 = scmp.ne.s32.totalorder %s3287_s11, %s2935_s20  ;;  %p2939_p2 = scmp.lt.u32.totalorder %s2935_s20, %s3287_s11 }
 0x602   :  { %p2941_p3 = pnand %p2939_p2, %p2936_p1 }
 0x604   :  { %2944 = shalt.err (!%p2941_p3)
}
 0x605   :  { %1990 = dma.vmem_to_hbm [thread:$0]  %s1988_s13, 16, %s3287_s11, [#allocation5]  }
 0x606   :  { %2957 = dma.done.wait [#allocation5], 16  }
 0x607   :  { %2958 = vsyncadd [#allocation5], 4294967280 }
 0x608   :  { %1994 = vsyncpa [#allocation4], 1 }
 0x609   :  { %1995 = vsyncpa [#allocation7], 1 }
 0x60a   :  { %1996 = vsyncpa [#allocation10], 1 }
 0x60b   :  { %1997 = vsyncpa [#allocation13], 1 }
 0x60c   :  { %1998 = vsyncpa [#allocation16], 1 }
 0x60d   :  { %1999 = vsyncpa [#allocation19], 1 }
 0x60e   :  { %2000 = vsyncpa [#allocation5], 1 }

// kernel: tpu_custom_call.1
= control target key start
LH: loop header
LB: loop body
LE: loop exit
PB: predicated region body
PF: predicated region fallthrough
CT: control target
= control target key end

     0   :  { %s3276_s0 = inlined_call_operand.hbm [shape: f32[8,14], index: 0, kind: input, shape index: {}]   ;;  %s3277_s1 = inlined_call_operand.hbm [shape: f32[14,64], index: 1, kind: input, shape index: {}]   ;;  %s3278_s2 = inlined_call_operand.hbm [shape: f32[1,64], index: 2, kind: input, shape index: {}]   ;;  %s3279_s3 = inlined_call_operand.hbm [shape: f32[64,1536], index: 3, kind: input, shape index: {}]   ;;  %s3280_s4 = inlined_call_operand.hbm [shape: f32[1,1536], index: 4, kind: input, shape index: {}]   ;;  %s3281_s5 = inlined_call_operand.hbm [shape: f32[512,768], index: 5, kind: input, shape index: {}]   ;;  %s3282_s6 = inlined_call_operand.hbm [shape: f32[1,768], index: 6, kind: input, shape index: {}]   ;;  %s3283_s7 = inlined_call_operand.hbm [shape: f32[256,128], index: 7, kind: input, shape index: {}]   ;;  %s3284_s8 = inlined_call_operand.hbm [shape: f32[1,128], index: 8, kind: input, shape index: {}]   ;;  %s3285_s9 = inlined_call_operand.hbm [shape: f32[1,128], index: 9, kind: input, shape index: {}]   ;;  %s3286_s10 = inlined_call_operand.<no memory space> [shape: f32[1,1], index: 10, kind: input, shape index: {}]   ;;  %s3287_s11 = inlined_call_operand.hbm [shape: f32[1,1,8], index: 11, kind: output, shape index: {}]  }
   0x1   :  { %v16_v0 = vstv %s3286_s10 }
   0x2   :  { %17 = vst [vmem:[#allocation2] sm:$0x1] %v16_v0 }
   0x3   :  { %18 = vsyncpa [#allocation4], 0 }
   0x4   :  { %19 = vsyncpa [#allocation7], 0 }
   0x5   :  { %20 = vsyncpa [#allocation10], 0 }
   0x6   :  { %21 = vsyncpa [#allocation13], 0 }
   0x7   :  { %22 = vsyncpa [#allocation16], 0 }
   0x8   :  { %23 = vsyncpa [#allocation19], 0 }
   0x9   :  { %24 = vsyncpa [#allocation5], 0  ;;  %s2959_s19 = smov [#allocation6]   ;;  %s2703_s23 = scalar_lea.hbm %s3277_s1, 256 }
   0xa   :  { %s40_s20 = sshll.u32 %s2959_s19, 4  ;;  %p2704_p0 = scmp.ne.s32.totalorder %s3277_s1, %s2703_s23  ;;  %s41_s20 = int_to_ptr.vmem [resolvable:$true] %s40_s20 }
   0xb   :  { %p2707_p1 = scmp.lt.u32.totalorder %s2703_s23, %s3277_s1 }
   0xd   :  { %p2709_p2 = pnand %p2707_p1, %p2704_p0 }
   0xf   :  { %2712 = shalt.err (!%p2709_p2)
}
  0x10   :  { %s2713_s27 = scalar_lea.vmem %s41_s20, 256  ;;  %p2718_p4 = scmp.lt.s32.totalorder %s41_s20, %s41_s20 }
  0x11   :  { %p2714_p3 = scmp.ne.s32.totalorder %s41_s20, %s2713_s27  ;;  %p2719_p5 = scmp.lt.s32.totalorder %s2713_s27, %s2713_s27 }
  0x13   :  { %p2720_p6 = por %p2719_p5, %p2718_p4 }
  0x15   :  { %p2721_p7 = pnand %p2720_p6, %p2714_p3 }
  0x17   :  { %2724 = shalt.err (!%p2721_p7)
}
  0x18   :  { %s2960_s28 = smov 128   ;;  %s2961_s29 = smov 8  }
  0x19   :  { %46 = dma.hbm_to_vmem [thread:$0]  %s3277_s1, 256, %s41_s20, [#allocation7], %s2960_s28, %s2960_s28, %s2961_s29  }
  0x1a   :  { %s2962_s13 = smov [#allocation9]   ;;  %s2725_s17 = scalar_lea.hbm %s3279_s3, 12288 }
  0x1b   :  { %s62_s14 = sshll.u32 %s2962_s13, 4  ;;  %p2726_p8 = scmp.ne.s32.totalorder %s3279_s3, %s2725_s17  ;;  %s63_s14 = int_to_ptr.vmem [resolvable:$true] %s62_s14 }
  0x1c   :  { %p2729_p9 = scmp.lt.u32.totalorder %s2725_s17, %s3279_s3 }
  0x1e   :  { %p2731_p10 = pnand %p2729_p9, %p2726_p8 }
  0x20   :  { %2734 = shalt.err (!%p2731_p10)
}
  0x21   :  { %s2735_s23 = scalar_lea.vmem %s63_s14, 12288  ;;  %p2740_p12 = scmp.lt.s32.totalorder %s63_s14, %s63_s14 }
  0x22   :  { %p2736_p11 = scmp.ne.s32.totalorder %s63_s14, %s2735_s23  ;;  %p2741_p13 = scmp.lt.s32.totalorder %s2735_s23, %s2735_s23 }
  0x24   :  { %p2742_p0 = por %p2741_p13, %p2740_p12 }
  0x26   :  { %p2743_p1 = pnand %p2742_p0, %p2736_p11 }
  0x28   :  { %2746 = shalt.err (!%p2743_p1)
}
  0x29   :  { %s2963_s1 = smov 1536   ;;  %s2964_s20 = smov 96  }
  0x2a   :  { %68 = dma.hbm_to_vmem [thread:$0]  %s3279_s3, 12288, %s63_s14, [#allocation10], %s2963_s1, %s2963_s1, %s2964_s20  }
  0x2b   :  { %s2965_s10 = smov [#allocation12]   ;;  %s2747_s12 = scalar_lea.hbm %s3281_s5, 49152 }
  0x2c   :  { %s84_s26 = sshll.u32 %s2965_s10, 4  ;;  %p2748_p2 = scmp.ne.s32.totalorder %s3281_s5, %s2747_s12  ;;  %s85_s26 = int_to_ptr.vmem [resolvable:$true] %s84_s26 }
  0x2d   :  { %p2751_p3 = scmp.lt.u32.totalorder %s2747_s12, %s3281_s5 }
  0x2f   :  { %p2753_p4 = pnand %p2751_p3, %p2748_p2 }
  0x31   :  { %2756 = shalt.err (!%p2753_p4)
}
  0x32   :  { %s2757_s18 = scalar_lea.vmem %s85_s26, 49152  ;;  %p2762_p6 = scmp.lt.s32.totalorder %s85_s26, %s85_s26 }
  0x33   :  { %p2758_p5 = scmp.ne.s32.totalorder %s85_s26, %s2757_s18  ;;  %p2763_p7 = scmp.lt.s32.totalorder %s2757_s18, %s2757_s18 }
  0x35   :  { %p2764_p8 = por %p2763_p7, %p2762_p6 }
  0x37   :  { %p2765_p9 = pnand %p2764_p8, %p2758_p5 }
  0x39   :  { %2768 = shalt.err (!%p2765_p9)
}
  0x3a   :  { %s2966_s3 = smov 768   ;;  %s2967_s14 = smov 48  }
  0x3b   :  { %90 = dma.hbm_to_vmem [thread:$0]  %s3281_s5, 49152, %s85_s26, [#allocation13], %s2966_s3, %s2966_s3, %s2967_s14  }
  0x3c   :  { %s2968_s22 = smov [#allocation15]   ;;  %s2969_s1 = smov [#allocation3]  }
  0x3d   :  { %s106_s23 = sshll.u32 %s2968_s22, 4  ;;  %s31_s20 = sshll.u32 %s2969_s1, 4  ;;  %s107_s23 = int_to_ptr.vmem [resolvable:$true] %s106_s23  ;;  %s32_s20 = int_to_ptr.vmem [resolvable:$true] %s31_s20 }
  0x3e   :  { %s2769_s10 = scalar_lea.hbm %s3283_s7, 4096 }
  0x3f   :  { %p2770_p10 = scmp.ne.s32.totalorder %s3283_s7, %s2769_s10  ;;  %p2773_p11 = scmp.lt.u32.totalorder %s2769_s10, %s3283_s7 }
  0x41   :  { %p2775_p12 = pnand %p2773_p11, %p2770_p10 }
  0x43   :  { %2778 = shalt.err (!%p2775_p12)
}
  0x44   :  { %s2779_s5 = scalar_lea.vmem %s107_s23, 4096  ;;  %p2784_p0 = scmp.lt.s32.totalorder %s107_s23, %s107_s23 }
  0x45   :  { %p2780_p13 = scmp.ne.s32.totalorder %s107_s23, %s2779_s5  ;;  %p2785_p1 = scmp.lt.s32.totalorder %s2779_s5, %s2779_s5 }
  0x47   :  { %p2786_p2 = por %p2785_p1, %p2784_p0 }
  0x49   :  { %p2787_p3 = pnand %p2786_p2, %p2780_p13 }
  0x4b   :  { %2790 = shalt.err (!%p2787_p3)
}
  0x4c   :  { %112 = dma.hbm_to_vmem [thread:$0]  %s3283_s7, 4096, %s107_s23, [#allocation16], %s2960_s28, %s2960_s28, %s2961_s29  }
  0x4d   :  { %s2791_s18 = scalar_lea.hbm %s3276_s0, 128 }
  0x4e   :  { %p2792_p4 = scmp.ne.s32.totalorder %s3276_s0, %s2791_s18  ;;  %p2795_p5 = scmp.lt.u32.totalorder %s2791_s18, %s3276_s0 }
  0x50   :  { %p2797_p6 = pnand %p2795_p5, %p2792_p4 }
  0x52   :  { %2800 = shalt.err (!%p2797_p6)
}
  0x53   :  { %s2801_s22 = scalar_lea.vmem %s32_s20, 128  ;;  %p2806_p8 = scmp.lt.s32.totalorder %s32_s20, %s32_s20 }
  0x54   :  { %p2802_p7 = scmp.ne.s32.totalorder %s32_s20, %s2801_s22  ;;  %p2807_p9 = scmp.lt.s32.totalorder %s2801_s22, %s2801_s22 }
  0x56   :  { %p2808_p10 = por %p2807_p9, %p2806_p8 }
  0x58   :  { %p2809_p11 = pnand %p2808_p10, %p2802_p7 }
  0x5a   :  { %2812 = shalt.err (!%p2809_p11)
}
  0x5b   :  { %34 = dma.hbm_to_vmem [thread:$0]  %s3276_s0, 128, %s32_s20, [#allocation4]  }
  0x5c   :  { %s2970_s29 = smov [#allocation8]   ;;  %s2971_s1 = smov [#allocation11]  }
  0x5d   :  { %s53_s23 = sshll.u32 %s2970_s29, 4  ;;  %s75_s24 = sshll.u32 %s2971_s1, 4  ;;  %s54_s23 = int_to_ptr.vmem [resolvable:$true] %s53_s23  ;;  %s76_s24 = int_to_ptr.vmem [resolvable:$true] %s75_s24 }
  0x5e   :  { %s2813_s27 = scalar_lea.hbm %s3278_s2, 16 }
  0x5f   :  { %p2814_p12 = scmp.ne.s32.totalorder %s3278_s2, %s2813_s27  ;;  %p2817_p13 = scmp.lt.u32.totalorder %s2813_s27, %s3278_s2 }
  0x61   :  { %p2819_p0 = pnand %p2817_p13, %p2814_p12 }
  0x63   :  { %2822 = shalt.err (!%p2819_p0)
}
  0x64   :  { %s2823_s0 = scalar_lea.vmem %s54_s23, 16  ;;  %s2827_s20 = scalar_lea.vmem %s54_s23, 32 }
  0x65   :  { %p2824_p1 = scmp.ne.s32.totalorder %s54_s23, %s2823_s0  ;;  %p2828_p2 = scmp.lt.s32.totalorder %s54_s23, %s54_s23 }
  0x66   :  { %p2829_p3 = scmp.lt.s32.totalorder %s2827_s20, %s2823_s0 }
  0x68   :  { %p2830_p4 = por %p2829_p3, %p2828_p2 }
  0x6a   :  { %p2831_p5 = pnand %p2830_p4, %p2824_p1 }
  0x6c   :  { %2834 = shalt.err (!%p2831_p5)
}
  0x6d   :  { %56 = dma.hbm_to_vmem [thread:$0]  %s3278_s2, 16, %s54_s23, [#allocation7]  }
  0x6e   :  { %s2835_s18 = scalar_lea.hbm %s3280_s4, 192 }
  0x6f   :  { %p2836_p6 = scmp.ne.s32.totalorder %s3280_s4, %s2835_s18  ;;  %p2839_p7 = scmp.lt.u32.totalorder %s2835_s18, %s3280_s4 }
  0x71   :  { %p2841_p8 = pnand %p2839_p7, %p2836_p6 }
  0x73   :  { %2844 = shalt.err (!%p2841_p8)
}
  0x74   :  { %s2845_s22 = scalar_lea.vmem %s76_s24, 192  ;;  %p2850_p10 = scmp.lt.s32.totalorder %s76_s24, %s76_s24 }
  0x75   :  { %p2846_p9 = scmp.ne.s32.totalorder %s76_s24, %s2845_s22  ;;  %p2851_p11 = scmp.lt.s32.totalorder %s2845_s22, %s2845_s22 }
  0x77   :  { %p2852_p12 = por %p2851_p11, %p2850_p10 }
  0x79   :  { %p2853_p13 = pnand %p2852_p12, %p2846_p9 }
  0x7b   :  { %2856 = shalt.err (!%p2853_p13)
}
  0x7c   :  { %78 = dma.hbm_to_vmem [thread:$0]  %s3280_s4, 192, %s76_s24, [#allocation10]  }
  0x7d   :  { %s2972_s28 = smov [#allocation14]   ;;  %s2973_s23 = smov [#allocation17]  }
  0x7e   :  { %s97_s29 = sshll.u32 %s2972_s28, 4  ;;  %s119_s1 = sshll.u32 %s2973_s23, 4  ;;  %s98_s29 = int_to_ptr.vmem [resolvable:$true] %s97_s29  ;;  %s120_s1 = int_to_ptr.vmem [resolvable:$true] %s119_s1 }
  0x7f   :  { %s2857_s27 = scalar_lea.hbm %s3282_s6, 96 }
  0x80   :  { %p2858_p0 = scmp.ne.s32.totalorder %s3282_s6, %s2857_s27  ;;  %p2861_p1 = scmp.lt.u32.totalorder %s2857_s27, %s3282_s6 }
  0x82   :  { %p2863_p2 = pnand %p2861_p1, %p2858_p0 }
  0x84   :  { %2866 = shalt.err (!%p2863_p2)
}
  0x85   :  { %s2867_s4 = scalar_lea.vmem %s98_s29, 96  ;;  %p2872_p4 = scmp.lt.s32.totalorder %s98_s29, %s98_s29 }
  0x86   :  { %p2868_p3 = scmp.ne.s32.totalorder %s98_s29, %s2867_s4  ;;  %p2873_p5 = scmp.lt.s32.totalorder %s2867_s4, %s2867_s4 }
  0x88   :  { %p2874_p6 = por %p2873_p5, %p2872_p4 }
  0x8a   :  { %p2875_p7 = pnand %p2874_p6, %p2868_p3 }
  0x8c   :  { %2878 = shalt.err (!%p2875_p7)
}
  0x8d   :  { %100 = dma.hbm_to_vmem [thread:$0]  %s3282_s6, 96, %s98_s29, [#allocation13]  }
  0x8e   :  { %s2879_s15 = scalar_lea.hbm %s3284_s8, 16 }
  0x8f   :  { %p2880_p8 = scmp.ne.s32.totalorder %s3284_s8, %s2879_s15  ;;  %p2883_p9 = scmp.lt.u32.totalorder %s2879_s15, %s3284_s8 }
  0x91   :  { %p2885_p10 = pnand %p2883_p9, %p2880_p8 }
  0x93   :  { %2888 = shalt.err (!%p2885_p10)
}
  0x94   :  { %s2889_s14 = scalar_lea.vmem %s120_s1, 16  ;;  %s2893_s19 = scalar_lea.vmem %s120_s1, 32 }
  0x95   :  { %p2890_p11 = scmp.ne.s32.totalorder %s120_s1, %s2889_s14  ;;  %p2894_p12 = scmp.lt.s32.totalorder %s120_s1, %s120_s1 }
  0x96   :  { %p2895_p13 = scmp.lt.s32.totalorder %s2893_s19, %s2889_s14 }
  0x98   :  { %p2896_p0 = por %p2895_p13, %p2894_p12 }
  0x9a   :  { %p2897_p1 = pnand %p2896_p0, %p2890_p11 }
  0x9c   :  { %2900 = shalt.err (!%p2897_p1)
}
  0x9d   :  { %122 = dma.hbm_to_vmem [thread:$0]  %s3284_s8, 16, %s120_s1, [#allocation16]  }
  0x9e   :  { %s2974_s22 = smov [#allocation18]   ;;  %s2901_s29 = scalar_lea.hbm %s3285_s9, 16 }
  0x9f   :  { %s129_s2 = sshll.u32 %s2974_s22, 4  ;;  %p2902_p2 = scmp.ne.s32.totalorder %s3285_s9, %s2901_s29  ;;  %s130_s2 = int_to_ptr.vmem [resolvable:$true] %s129_s2 }
  0xa0   :  { %p2905_p3 = scmp.lt.u32.totalorder %s2901_s29, %s3285_s9 }
  0xa2   :  { %p2907_p4 = pnand %p2905_p3, %p2902_p2 }
  0xa4   :  { %2910 = shalt.err (!%p2907_p4)
}
  0xa5   :  { %s2911_s30 = scalar_lea.vmem %s130_s2, 16  ;;  %s2915_s8 = scalar_lea.vmem %s130_s2, 32 }
  0xa6   :  { %p2912_p5 = scmp.ne.s32.totalorder %s130_s2, %s2911_s30  ;;  %p2916_p6 = scmp.lt.s32.totalorder %s130_s2, %s130_s2 }
  0xa7   :  { %p2917_p7 = scmp.lt.s32.totalorder %s2915_s8, %s2911_s30 }
  0xa9   :  { %p2918_p8 = por %p2917_p7, %p2916_p6 }
  0xab   :  { %p2919_p9 = pnand %p2918_p8, %p2912_p5 }
  0xad   :  { %2922 = shalt.err (!%p2919_p9)
}
  0xae   :  { %132 = dma.hbm_to_vmem [thread:$0]  %s3285_s9, 16, %s130_s2, [#allocation19]  }
  0xaf   :  { %2945 = dma.done.wait [#allocation4], 128  }
  0xb0   :  { %2946 = vsyncadd [#allocation4], 4294967168 }
  0xb1   :  { %2947 = dma.done.wait [#allocation7], 272  }
  0xb2   :  { %2948 = vsyncadd [#allocation7], 4294967024 }
  0xb3   :  { %2949 = dma.done.wait [#allocation10], 12480  }
  0xb4   :  { %2950 = vsyncadd [#allocation10], 4294954816 }
  0xb5   :  { %2951 = dma.done.wait [#allocation13], 49248  }
  0xb6   :  { %2952 = vsyncadd [#allocation13], 4294918048 }
  0xb7   :  { %2953 = dma.done.wait [#allocation16], 4112  }
  0xb8   :  { %2954 = vsyncadd [#allocation16], 4294963184 }
  0xb9   :  { %2955 = dma.done.wait [#allocation19], 16  }
  0xba   :  { %2956 = vsyncadd [#allocation19], 4294967280  ;;  %v2975_v1 = vmov 0.0|0.0   ;;  %vm2976_vm0 = vmmov 0   ;;  %v2977_v2 = vmov 0.0   ;;  %vm179_vm1 = vcmask 1045504  }
  0xbb   :  { %2076 = vmatprep.subr.bf16.mxu1 %v2975_v1  ;;  %2068 = vmatprep.mubr.msk.f32.mxu1 %vm2976_vm0, %v2977_v2  ;;  %v166_v3 = vld [vmem:[#allocation6] sm:$0xff]  ;;  %v167_v4 = vld [vmem:[#allocation6 + $0x8] sm:$0x3f]  ;;  %vm2978_vm2 = vmmov 1   ;;  %v165_v6 = vld [vmem:[#allocation3] sm:$0xff]  ;;  %vm175_vm4 = vcmask 113664  }
  0xbc   :  { %695 = vmatprep.mubr.f32.mxu0 %v2977_v2  ;;  %vm2078_vm3 = vmpackc.low %vm179_vm1, %vm2978_vm2  ;;  %v2077_v5 = vpack.c.bf16 %v167_v4, %v166_v3  ;;  %v255_v7 = vld [vmem:[#allocation9 + $0x8] sm:$0xff]  ;;  %v261_v9 = vld [vmem:[#allocation9 + $0x38] sm:$0xff]  ;;  %vm414_vm5 = vcmask 523264   ;;  %s2980_s9 = smov [#allocation20]   ;;  %vm1979_vm6 = vcmask 57344  }
  0xbd   :  { %v267_v8 = vld [vmem:[#allocation9 + $0x68] sm:$0xff]  ;;  %v273_v11 = vld [vmem:[#allocation9 + $0x98] sm:$0xff]  ;;  %v254_v12 = vld [vmem:[#allocation9] sm:$0xff]  ;;  %s1987_s13 = sshll.u32 %s2980_s9, 4  ;;  %s1988_s13 = int_to_ptr.vmem [resolvable:$true] %s1987_s13 }
  0xbe   :  { %v2080_v10 = vpack.c.bf16 %v267_v8, %v255_v7  ;;  %v266_v13 = vld [vmem:[#allocation9 + $0x60] sm:$0xff]  ;;  %2079 = vmatpush3.bf16.msk.msra.mxu1 %vm2078_vm3, %v2077_v5  ;;  %v2128_v14 = vpack.c.bf16 %v273_v11, %v261_v9  ;;  %v260_v16 = vld [vmem:[#allocation9 + $0x30] sm:$0xff]  ;;  %v279_v18 = vld [vmem:[#allocation9 + $0xc8] sm:$0xff]  ;;  %s2923_s5 = scalar_lea.vmem %s1988_s13, 16  ;;  %s2927_s4 = scalar_lea.vmem %s1988_s13, 32 }
  0xbf   :  { %v2082_v15 = vpack.c.bf16 %v266_v13, %v254_v12  ;;  %v272_v17 = vld [vmem:[#allocation9 + $0x90] sm:$0xff]  ;;  %v291_v20 = vld [vmem:[#allocation9 + $0x128] sm:$0xff]  ;;  %v285_v21 = vld [vmem:[#allocation9 + $0xf8] sm:$0xff]  ;;  %p2924_p10 = scmp.ne.s32.totalorder %s1988_s13, %s2923_s5  ;;  %p2928_p11 = scmp.lt.s32.totalorder %s1988_s13, %s1988_s13 }
  0xc0   :  { %2081 = vmatprep.subr.bf16.mxu1 %v2080_v10  ;;  %v2130_v19 = vpack.c.bf16 %v272_v17, %v260_v16  ;;  %v297_v22 = vld [vmem:[#allocation9 + $0x158] sm:$0xff]  ;;  %2129 = vmatprep.subr.bf16.mxu0 %v2128_v14  ;;  %v2084_v23 = vpack.c.bf16 %v291_v20, %v279_v18  ;;  %v278_v25 = vld [vmem:[#allocation9 + $0xc0] sm:$0xff]  ;;  %v284_v27 = vld [vmem:[#allocation9 + $0xf0] sm:$0xff]  ;;  %p2929_p12 = scmp.lt.s32.totalorder %s2927_s4, %s2923_s5 }
  0xc1   :  { %v2132_v24 = vpack.c.bf16 %v297_v22, %v285_v21  ;;  %v290_v26 = vld [vmem:[#allocation9 + $0x120] sm:$0xff]  ;;  %2069 = vmatmul.mubr.msk.f32.vlgmr.msra.gmra.mrb[0].mxu1 %vm175_vm4, %v165_v6  ;;  %v296_v28 = vld [vmem:[#allocation9 + $0x150] sm:$0xff]  ;;  %v303_v29 = vld [vmem:[#allocation9 + $0x188] sm:$0xff] }
  0xc2   :  { %2131 = vmatpush1.bf16.msra.mxu0 %v2130_v19  ;;  %v315_v30 = vld [vmem:[#allocation9 + $0x1e8] sm:$0xff]  ;;  %2083 = vmatpush1.bf16.msra.mxu1 %v2082_v15  ;;  %v2086_v31 = vpack.c.bf16 %v290_v26, %v278_v25  ;;  %v2134_v32 = vpack.c.bf16 %v296_v28, %v284_v27  ;;  %v309_v33 = vld [vmem:[#allocation9 + $0x1b8] sm:$0xff]  ;;  %v302_v35 = vld [vmem:[#allocation9 + $0x180] sm:$0xff]  ;;  %p2930_p13 = por %p2929_p12, %p2928_p11 }
  0xc3   :  { %2133 = vmatprep.subr.bf16.mxu0 %v2132_v24  ;;  %v321_v34 = vld [vmem:[#allocation9 + $0x218] sm:$0xff]  ;;  %2085 = vmatprep.subr.bf16.mxu1 %v2084_v23  ;;  %v2088_v36 = vpack.c.bf16 %v315_v30, %v303_v29  ;;  %v314_v38 = vld [vmem:[#allocation9 + $0x1e0] sm:$0xff]  ;;  %v308_v39 = vld [vmem:[#allocation9 + $0x1b0] sm:$0xff] }
  0xc4   :  { %v2136_v37 = vpack.c.bf16 %v321_v34, %v309_v33  ;;  %v320_v40 = vld [vmem:[#allocation9 + $0x210] sm:$0xff]  ;;  %482 = vmatprep.mubr.f32.mxu1 %v2977_v2  ;;  %v2090_v42 = vpack.c.bf16 %v314_v38, %v302_v35  ;;  %v327_v43 = vld [vmem:[#allocation9 + $0x248] sm:$0xff]  ;;  %v333_v45 = vld [vmem:[#allocation9 + $0x278] sm:$0xff]  ;;  %p2931_p0 = pnand %p2930_p13, %p2924_p10 }
  0xc5   :  { %v2138_v41 = vpack.c.bf16 %v320_v40, %v308_v39  ;;  %v339_v44 = vld [vmem:[#allocation9 + $0x2a8] sm:$0xff]  ;;  %v345_v47 = vld [vmem:[#allocation9 + $0x2d8] sm:$0xff]  ;;  %v326_v48 = vld [vmem:[#allocation9 + $0x240] sm:$0xff] }
  0xc6   :  { %2135 = vmatpush1.bf16.msra.mxu0 %v2134_v32  ;;  %2087 = vmatpush1.bf16.msra.mxu1 %v2086_v31  ;;  %v2092_v46 = vpack.c.bf16 %v339_v44, %v327_v43  ;;  %v338_v49 = vld [vmem:[#allocation9 + $0x2a0] sm:$0xff]  ;;  %v2140_v50 = vpack.c.bf16 %v345_v47, %v333_v45  ;;  %v332_v52 = vld [vmem:[#allocation9 + $0x270] sm:$0xff]  ;;  %v257_v55 = vld [vmem:[#allocation9 + $0x18] sm:$0xff] }
  0xc7   :  { %2137 = vmatprep.subr.bf16.mxu0 %v2136_v37  ;;  %2089 = vmatprep.subr.bf16.mxu1 %v2088_v36  ;;  %v2094_v51 = vpack.c.bf16 %v338_v49, %v326_v48  ;;  %v344_v53 = vld [vmem:[#allocation9 + $0x2d0] sm:$0xff]  ;;  %v269_v56 = vld [vmem:[#allocation9 + $0x78] sm:$0xff]  ;;  %v259_v43 = vld [vmem:[#allocation9 + $0x28] sm:$0xff] }
  0xc8   :  { %v2142_v54 = vpack.c.bf16 %v344_v53, %v332_v52  ;;  %v265_v57 = vld [vmem:[#allocation9 + $0x58] sm:$0xff]  ;;  %v2096_v58 = vpack.c.bf16 %v269_v56, %v257_v55  ;;  %v256_v62 = vld [vmem:[#allocation9 + $0x10] sm:$0xff]  ;;  %v271_v44 = vld [vmem:[#allocation9 + $0x88] sm:$0xff] }
  0xc9   :  { %v277_v59 = vld [vmem:[#allocation9 + $0xb8] sm:$0xff]  ;;  %v268_v63 = vld [vmem:[#allocation9 + $0x70] sm:$0xff]  ;;  %v2112_v47 = vpack.c.bf16 %v271_v44, %v259_v43  ;;  %v258_v48 = vld [vmem:[#allocation9 + $0x20] sm:$0xff] }
  0xca   :  { %2139 = vmatpush1.bf16.msra.mxu0 %v2138_v41  ;;  %2091 = vmatpush1.bf16.msra.mxu1 %v2090_v42  ;;  %v2160_v60 = vpack.c.bf16 %v277_v59, %v265_v57  ;;  %v2001_v61 = vld [vmem:[#allocation8] ss:$0 sm:$0xff]  ;;  %v264_v0 = vld [vmem:[#allocation9 + $0x50] sm:$0xff]  ;;  %v2098_v10 = vpack.c.bf16 %v268_v63, %v256_v62  ;;  %v270_v49 = vld [vmem:[#allocation9 + $0x80] sm:$0xff] }
  0xcb   :  { %2093 = vmatprep.subr.bf16.mxu1 %v2092_v46  ;;  %2141 = vmatprep.subr.bf16.mxu0 %v2140_v50  ;;  %v276_v1 = vld [vmem:[#allocation9 + $0xb0] sm:$0xff]  ;;  %v281_v3 = vld [vmem:[#allocation9 + $0xd8] sm:$0xff]  ;;  %v283_v50 = vld [vmem:[#allocation9 + $0xe8] sm:$0xff]  ;;  %v2114_v52 = vpack.c.bf16 %v270_v49, %v258_v48 }
  0xcc   :  { %v293_v5 = vld [vmem:[#allocation9 + $0x138] sm:$0xff]  ;;  %v2162_v11 = vpack.c.bf16 %v276_v1, %v264_v0  ;;  %v280_v12 = vld [vmem:[#allocation9 + $0xd0] sm:$0xff]  ;;  %v294_v55 = vld [vmem:[#allocation9 + $0x140] sm:$0xff] }
  0xcd   :  { %v289_v6 = vld [vmem:[#allocation9 + $0x118] sm:$0xff]  ;;  %v292_v13 = vld [vmem:[#allocation9 + $0x130] sm:$0xff]  ;;  %v2100_v15 = vpack.c.bf16 %v293_v5, %v281_v3  ;;  %v307_v56 = vld [vmem:[#allocation9 + $0x1a8] sm:$0xff] }
  0xce   :  { %2095 = vmatpush1.bf16.msra.mxu1 %v2094_v51  ;;  %2143 = vmatpush1.bf16.msra.mxu0 %v2142_v54  ;;  %v301_v7 = vld [vmem:[#allocation9 + $0x178] sm:$0xff]  ;;  %v288_v17 = vld [vmem:[#allocation9 + $0x110] sm:$0xff]  ;;  %v2102_v23 = vpack.c.bf16 %v292_v13, %v280_v12  ;;  %v295_v51 = vld [vmem:[#allocation9 + $0x148] sm:$0xff] }
  0xcf   :  { %2097 = vmatprep.subr.bf16.mxu1 %v2096_v58  ;;  %2161 = vmatprep.subr.bf16.mxu0 %v2160_v60  ;;  %v2164_v16 = vpack.c.bf16 %v301_v7, %v289_v6  ;;  %v300_v18 = vld [vmem:[#allocation9 + $0x170] sm:$0xff]  ;;  %v305_v19 = vld [vmem:[#allocation9 + $0x198] sm:$0xff]  ;;  %v2116_v53 = vpack.c.bf16 %v295_v51, %v283_v50  ;;  %v282_v54 = vld [vmem:[#allocation9 + $0xe0] sm:$0xff] }
  0xd0   :  { %v317_v20 = vld [vmem:[#allocation9 + $0x1f8] sm:$0xff]  ;;  %v2166_v24 = vpack.c.bf16 %v300_v18, %v288_v17  ;;  %v304_v25 = vld [vmem:[#allocation9 + $0x190] sm:$0xff]  ;;  %v319_v57 = vld [vmem:[#allocation9 + $0x208] sm:$0xff]  ;;  %v2118_v58 = vpack.c.bf16 %v294_v55, %v282_v54 }
  0xd1   :  { %v313_v21 = vld [vmem:[#allocation9 + $0x1d8] sm:$0xff]  ;;  %v316_v26 = vld [vmem:[#allocation9 + $0x1f0] sm:$0xff]  ;;  %v2104_v27 = vpack.c.bf16 %v317_v20, %v305_v19  ;;  %v2120_v59 = vpack.c.bf16 %v319_v57, %v307_v56  ;;  %v306_v60 = vld [vmem:[#allocation9 + $0x1a0] sm:$0xff] }
  0xd2   :  { %v325_v22 = vld [vmem:[#allocation9 + $0x238] sm:$0xff]  ;;  %v312_v29 = vld [vmem:[#allocation9 + $0x1d0] sm:$0xff]  ;;  %v2106_v35 = vpack.c.bf16 %v316_v26, %v304_v25  ;;  %v331_v62 = vld [vmem:[#allocation9 + $0x268] sm:$0xff] }
  0xd3   :  { %v2168_v28 = vpack.c.bf16 %v325_v22, %v313_v21  ;;  %v324_v30 = vld [vmem:[#allocation9 + $0x230] sm:$0xff]  ;;  %v329_v31 = vld [vmem:[#allocation9 + $0x258] sm:$0xff]  ;;  %v343_v63 = vld [vmem:[#allocation9 + $0x2c8] sm:$0xff] }
  0xd4   :  { %v341_v32 = vld [vmem:[#allocation9 + $0x2b8] sm:$0xff]  ;;  %v2170_v36 = vpack.c.bf16 %v324_v30, %v312_v29  ;;  %v328_v37 = vld [vmem:[#allocation9 + $0x250] sm:$0xff]  ;;  %v2124_v1 = vpack.c.bf16 %v343_v63, %v331_v62  ;;  %v330_v3 = vld [vmem:[#allocation9 + $0x260] sm:$0xff] }
  0xd5   :  { %v337_v33 = vld [vmem:[#allocation9 + $0x298] sm:$0xff]  ;;  %v2108_v38 = vpack.c.bf16 %v341_v32, %v329_v31  ;;  %v340_v40 = vld [vmem:[#allocation9 + $0x2b0] sm:$0xff]  ;;  %v263_v5 = vld [vmem:[#allocation9 + $0x48] sm:$0xff] }
  0xd6   :  { %v349_v34 = vld [vmem:[#allocation9 + $0x2f8] sm:$0xff]  ;;  %v336_v41 = vld [vmem:[#allocation9 + $0x290] sm:$0xff]  ;;  %v2110_v45 = vpack.c.bf16 %v340_v40, %v328_v37  ;;  %v275_v6 = vld [vmem:[#allocation9 + $0xa8] sm:$0xff] }
  0xd7   :  { %v2172_v39 = vpack.c.bf16 %v349_v34, %v337_v33  ;;  %v348_v42 = vld [vmem:[#allocation9 + $0x2f0] sm:$0xff]  ;;  %v299_v12 = vld [vmem:[#allocation9 + $0x168] sm:$0xff]  ;;  %v298_v17 = vld [vmem:[#allocation9 + $0x160] sm:$0xff] }
  0xd8   :  { %v2174_v46 = vpack.c.bf16 %v348_v42, %v336_v41  ;;  %v311_v18 = vld [vmem:[#allocation9 + $0x1c8] sm:$0xff]  ;;  %v310_v22 = vld [vmem:[#allocation9 + $0x1c0] sm:$0xff]  ;;  %v1101_v30 = vld [vmem:[#allocation12 + $0x608] sm:$0xff] }
  0xd9   :  { %v323_v19 = vld [vmem:[#allocation9 + $0x228] sm:$0xff]  ;;  %v346_v29 = vld [vmem:[#allocation9 + $0x2e0] sm:$0xff]  ;;  %v1113_v37 = vld [vmem:[#allocation12 + $0x668] sm:$0xff] }
  0xda   :  { %v2152_v21 = vpack.c.bf16 %v323_v19, %v311_v18  ;;  %v347_v25 = vld [vmem:[#allocation9 + $0x2e8] sm:$0xff]  ;;  %v1118_v41 = vld [vmem:[#allocation12 + $0x690] sm:$0xff]  ;;  %v1125_v43 = vld [vmem:[#allocation12 + $0x6c8] sm:$0xff] }
  0xdb   :  { %v1107_v31 = vld [vmem:[#allocation12 + $0x638] sm:$0xff]  ;;  %v1100_v34 = vld [vmem:[#allocation12 + $0x600] sm:$0xff]  ;;  %v1137_v49 = vld [vmem:[#allocation12 + $0x728] sm:$0xff] }
  0xdc   :  { %v2240_v33 = vpack.c.bf16 %v1107_v31, %v1101_v30  ;;  %v1112_v40 = vld [vmem:[#allocation12 + $0x660] sm:$0xff]  ;;  %v1131_v44 = vld [vmem:[#allocation12 + $0x6f8] sm:$0xff]  ;;  %v1149_v54 = vld [vmem:[#allocation12 + $0x788] sm:$0xff] }
  0xdd   :  { %v2246_v42 = vpack.c.bf16 %v1118_v41, %v1112_v40  ;;  %v1143_v50 = vld [vmem:[#allocation12 + $0x758] sm:$0xff]  ;;  %v1136_v51 = vld [vmem:[#allocation12 + $0x720] sm:$0xff]  ;;  %v1178_v19 = vld [vmem:[#allocation12 + $0x870] sm:$0xff] }
  0xde   :  { %v1155_v55 = vld [vmem:[#allocation12 + $0x7b8] sm:$0xff]  ;;  %v1148_v57 = vld [vmem:[#allocation12 + $0x780] sm:$0xff]  ;;  %v1190_v31 = vld [vmem:[#allocation12 + $0x8d0] sm:$0xff] }
  0xdf   :  { %v2256_v56 = vpack.c.bf16 %v1155_v55, %v1149_v54  ;;  %v908_v63 = vld [vmem:[#allocation12] sm:$0xff]  ;;  %v1203_v41 = vld [vmem:[#allocation12 + $0x938] sm:$0xff]  ;;  %v1214_v54 = vld [vmem:[#allocation12 + $0x990] sm:$0xff] }
  0xe0   :  { %v1172_v18 = vld [vmem:[#allocation12 + $0x840] sm:$0xff] }
  0xe1   :  { %v1184_v30 = vld [vmem:[#allocation12 + $0x8a0] sm:$0xff] }
 0x194   :  { %v249_v4 = vpop.f32.mrb[0].mxu1 }
 0x195   :  { %v250_v8 = vadd.f32 %v2001_v61, %v249_v4  ;;  %v2070_v9 = vpop.f32.mrb[1].mxu1  ;;  %v318_v61 = vld [vmem:[#allocation9 + $0x200] sm:$0xff] }
 0x196   :  { %v2122_v0 = vpack.c.bf16 %v318_v61, %v306_v60  ;;  %v342_v4 = vld [vmem:[#allocation9 + $0x2c0] sm:$0xff]  ;;  %v909_v60 = vld [vmem:[#allocation12 + $0x8] sm:$0xff] }
 0x197   :  { %v3175_v14 = vmax.f32 %v250_v8, 0.0  ;;  %v2126_v7 = vpack.c.bf16 %v342_v4, %v330_v3  ;;  %v2144_v8 = vpack.c.bf16 %v275_v6, %v263_v5  ;;  %v262_v9 = vld [vmem:[#allocation9 + $0x40] sm:$0xff]  ;;  %v1160_v5 = vld [vmem:[#allocation12 + $0x7e0] sm:$0xff] }
 0x198   :  { %v915_v61 = vld [vmem:[#allocation12 + $0x38] sm:$0xff]  ;;  %v1166_v6 = vld [vmem:[#allocation12 + $0x810] sm:$0xff] }
 0x199   :  { %2004 = vmatmul.mubr.msk.f32.vlgmr.msra.gmra.mrb[2].mxu1 %vm414_vm5, %v3175_v14  ;;  %2007 = vmatmul.mubr.msk.f32.vlgmr.msra.gmra.mrb[0].mxu0 %vm414_vm5, %v3175_v14  ;;  %v2176_v62 = vpack.c.bf16 %v915_v61, %v909_v60  ;;  %v1167_v4 = vld [vmem:[#allocation12 + $0x818] sm:$0xff]  ;;  %v968_v60 = vld [vmem:[#allocation12 + $0x1e0] sm:$0xff]  ;;  %v974_v61 = vld [vmem:[#allocation12 + $0x210] sm:$0xff] }
 0x19a   :  { %2099 = vmatpush1.bf16.msra.mxu1 %v2098_v10  ;;  %2163 = vmatpush1.bf16.msra.mxu0 %v2162_v11  ;;  %v274_v10 = vld [vmem:[#allocation9 + $0xa0] sm:$0xff]  ;;  %v287_v11 = vld [vmem:[#allocation9 + $0x108] sm:$0xff] }
 0x19b   :  { %2101 = vmatprep.subr.bf16.mxu1 %v2100_v15  ;;  %2165 = vmatprep.subr.bf16.mxu0 %v2164_v16  ;;  %v2146_v13 = vpack.c.bf16 %v274_v10, %v262_v9  ;;  %v2148_v15 = vpack.c.bf16 %v299_v12, %v287_v11  ;;  %v286_v16 = vld [vmem:[#allocation9 + $0x100] sm:$0xff]  ;;  %v921_v9 = vld [vmem:[#allocation12 + $0x68] sm:$0xff]  ;;  %v920_v12 = vld [vmem:[#allocation12 + $0x60] sm:$0xff] }
 0x19c   :  { %553 = vmatprep.mubr.f32.mxu1 %v2977_v2  ;;  %837 = vmatprep.mubr.f32.mxu0 %v2977_v2  ;;  %v2150_v20 = vpack.c.bf16 %v298_v17, %v286_v16  ;;  %v927_v10 = vld [vmem:[#allocation12 + $0x98] sm:$0xff] }
 0x19d   :  { %v2180_v11 = vpack.c.bf16 %v927_v10, %v921_v9  ;;  %v1179_v17 = vld [vmem:[#allocation12 + $0x878] sm:$0xff]  ;;  %v980_v9 = vld [vmem:[#allocation12 + $0x240] sm:$0xff]  ;;  %v986_v10 = vld [vmem:[#allocation12 + $0x270] sm:$0xff] }
 0x19e   :  { %2103 = vmatpush1.bf16.msra.mxu1 %v2102_v23  ;;  %2167 = vmatpush1.bf16.msra.mxu0 %v2166_v24  ;;  %v322_v23 = vld [vmem:[#allocation9 + $0x220] sm:$0xff]  ;;  %v335_v24 = vld [vmem:[#allocation9 + $0x288] sm:$0xff] }
 0x19f   :  { %2105 = vmatprep.subr.bf16.mxu1 %v2104_v27  ;;  %2169 = vmatprep.subr.bf16.mxu0 %v2168_v28  ;;  %v2154_v26 = vpack.c.bf16 %v322_v23, %v310_v22  ;;  %v2156_v27 = vpack.c.bf16 %v347_v25, %v335_v24  ;;  %v334_v28 = vld [vmem:[#allocation9 + $0x280] sm:$0xff]  ;;  %v933_v22 = vld [vmem:[#allocation12 + $0xc8] sm:$0xff]  ;;  %v932_v25 = vld [vmem:[#allocation12 + $0xc0] sm:$0xff] }
 0x1a0   :  { %v2158_v32 = vpack.c.bf16 %v346_v29, %v334_v28  ;;  %v939_v23 = vld [vmem:[#allocation12 + $0xf8] sm:$0xff] }
 0x1a1   :  { %v2184_v24 = vpack.c.bf16 %v939_v23, %v933_v22  ;;  %v1191_v29 = vld [vmem:[#allocation12 + $0x8d8] sm:$0xff]  ;;  %v992_v22 = vld [vmem:[#allocation12 + $0x2a0] sm:$0xff]  ;;  %v998_v23 = vld [vmem:[#allocation12 + $0x2d0] sm:$0xff] }
 0x1a2   :  { %2107 = vmatpush1.bf16.msra.mxu1 %v2106_v35  ;;  %2171 = vmatpush1.bf16.msra.mxu0 %v2170_v36  ;;  %v1106_v35 = vld [vmem:[#allocation12 + $0x630] sm:$0xff] }
 0x1a3   :  { %2109 = vmatprep.subr.bf16.mxu1 %v2108_v38  ;;  %2173 = vmatprep.subr.bf16.mxu0 %v2172_v39  ;;  %v2242_v36 = vpack.c.bf16 %v1106_v35, %v1100_v34  ;;  %v1119_v38 = vld [vmem:[#allocation12 + $0x698] sm:$0xff]  ;;  %v945_v34 = vld [vmem:[#allocation12 + $0x128] sm:$0xff] }
 0x1a4   :  { %v2244_v39 = vpack.c.bf16 %v1119_v38, %v1113_v37  ;;  %v951_v35 = vld [vmem:[#allocation12 + $0x158] sm:$0xff]  ;;  %v944_v37 = vld [vmem:[#allocation12 + $0x120] sm:$0xff]  ;;  %v950_v38 = vld [vmem:[#allocation12 + $0x150] sm:$0xff] }
 0x1a5   :  { %v2190_v40 = vpack.c.bf16 %v950_v38, %v944_v37  ;;  %v1263_v38 = vld [vmem:[#allocation12 + $0xb18] sm:$0xff] }
 0x1a6   :  { %2111 = vmatpush1.bf16.msra.mxu1 %v2110_v45  ;;  %2175 = vmatpush1.bf16.msra.mxu0 %v2174_v46  ;;  %v2248_v45 = vpack.c.bf16 %v1131_v44, %v1125_v43  ;;  %v1124_v46 = vld [vmem:[#allocation12 + $0x6c0] sm:$0xff]  ;;  %v1202_v43 = vld [vmem:[#allocation12 + $0x930] sm:$0xff] }
 0x1a7   :  { %2113 = vmatprep.subr.bf16.mxu1 %v2112_v47  ;;  %v1130_v47 = vld [vmem:[#allocation12 + $0x6f0] sm:$0xff]  ;;  %2177 = vmatprep.subr.bf16.mxu0 %v2176_v62  ;;  %v1221_v62 = vld [vmem:[#allocation12 + $0x9c8] sm:$0xff] }
 0x1a8   :  { %v2250_v48 = vpack.c.bf16 %v1130_v47, %v1124_v46  ;;  %v957_v46 = vld [vmem:[#allocation12 + $0x188] sm:$0xff]  ;;  %v963_v47 = vld [vmem:[#allocation12 + $0x1b8] sm:$0xff] }
 0x1a9   :  { %2005 = vmatmul.mubr.msk.f32.vlgmr.msra.gmra.mrb[4].mxu1 %vm414_vm5, %v3175_v14  ;;  %2009 = vmatmul.mubr.msk.f32.vlgmr.msra.gmra.mrb[2].mxu0 %vm414_vm5, %v3175_v14 }
 0x1aa   :  { %2115 = vmatpush1.bf16.msra.mxu1 %v2114_v52  ;;  %624 = vmatprep.mubr.f32.mxu1 %v2977_v2  ;;  %v1142_v52 = vld [vmem:[#allocation12 + $0x750] sm:$0xff] }
 0x1ab   :  { %2117 = vmatprep.subr.bf16.mxu1 %v2116_v53  ;;  %v2254_v53 = vpack.c.bf16 %v1142_v52, %v1136_v51  ;;  %v1215_v52 = vld [vmem:[#allocation12 + $0x998] sm:$0xff] }
 0x1ae   :  { %2119 = vmatpush1.bf16.msra.mxu1 %v2118_v58  ;;  %v1154_v58 = vld [vmem:[#allocation12 + $0x7b0] sm:$0xff] }
 0x1af   :  { %2121 = vmatprep.subr.bf16.mxu1 %v2120_v59  ;;  %v2258_v59 = vpack.c.bf16 %v1154_v58, %v1148_v57  ;;  %v969_v57 = vld [vmem:[#allocation12 + $0x1e8] sm:$0xff]  ;;  %v975_v58 = vld [vmem:[#allocation12 + $0x218] sm:$0xff] }
 0x1b2   :  { %2123 = vmatpush1.bf16.msra.mxu1 %v2122_v0  ;;  %v914_v0 = vld [vmem:[#allocation12 + $0x30] sm:$0xff] }
 0x1b3   :  { %2125 = vmatprep.subr.bf16.mxu1 %v2124_v1  ;;  %v1161_v1 = vld [vmem:[#allocation12 + $0x7e8] sm:$0xff]  ;;  %v2178_v3 = vpack.c.bf16 %v914_v0, %v908_v63  ;;  %v2198_v63 = vpack.c.bf16 %v974_v61, %v968_v60  ;;  %v1227_v0 = vld [vmem:[#allocation12 + $0x9f8] sm:$0xff] }
 0x1b4   :  { %v1287_v61 = vld [vmem:[#allocation12 + $0xbd8] sm:$0xff] }
 0x1b5   :  { %2179 = vmatpush1.bf16.msra.mxu0 %v2178_v3  ;;  %v1226_v3 = vld [vmem:[#allocation12 + $0x9f0] sm:$0xff] }
 0x1b6   :  { %2127 = vmatpush1.bf16.msra.mxu1 %v2126_v7  ;;  %v2260_v7 = vpack.c.bf16 %v1167_v4, %v1161_v1  ;;  %2181 = vmatprep.subr.bf16.mxu0 %v2180_v11  ;;  %v1220_v1 = vld [vmem:[#allocation12 + $0x9c0] sm:$0xff]  ;;  %v2280_v4 = vpack.c.bf16 %v1227_v0, %v1221_v62  ;;  %v1233_v11 = vld [vmem:[#allocation12 + $0xa28] sm:$0xff] }
 0x1b7   :  { %2145 = vmatprep.subr.bf16.mxu1 %v2144_v8  ;;  %v2262_v8 = vpack.c.bf16 %v1166_v6, %v1160_v5  ;;  %v2282_v5 = vpack.c.bf16 %v1226_v3, %v1220_v1  ;;  %v981_v6 = vld [vmem:[#allocation12 + $0x248] sm:$0xff]  ;;  %v1280_v62 = vld [vmem:[#allocation12 + $0xba0] sm:$0xff] }
 0x1b8   :  { %v1041_v3 = vld [vmem:[#allocation12 + $0x428] sm:$0xff] }
 0x1b9   :  { %2006 = vmatmul.mubr.msk.f32.vlgmr.msra.gmra.mrb[6].mxu1 %vm414_vm5, %v3175_v14 }
 0x1ba   :  { %2147 = vmatpush1.bf16.msra.mxu1 %v2146_v13  ;;  %766 = vmatprep.mubr.f32.mxu1 %v2977_v2  ;;  %v926_v13 = vld [vmem:[#allocation12 + $0x90] sm:$0xff] }
 0x1bb   :  { %2149 = vmatprep.subr.bf16.mxu1 %v2148_v15  ;;  %v1173_v15 = vld [vmem:[#allocation12 + $0x848] sm:$0xff]  ;;  %v2182_v16 = vpack.c.bf16 %v926_v13, %v920_v12  ;;  %v2202_v12 = vpack.c.bf16 %v986_v10, %v980_v9  ;;  %v1239_v13 = vld [vmem:[#allocation12 + $0xa58] sm:$0xff] }
 0x1bc   :  { %v919_v10 = vld [vmem:[#allocation12 + $0x58] sm:$0xff] }
 0x1bd   :  { %2183 = vmatpush1.bf16.msra.mxu0 %v2182_v16  ;;  %v1238_v16 = vld [vmem:[#allocation12 + $0xa50] sm:$0xff] }
 0x1be   :  { %2151 = vmatpush1.bf16.msra.mxu1 %v2150_v20  ;;  %v2264_v20 = vpack.c.bf16 %v1179_v17, %v1173_v15  ;;  %2185 = vmatprep.subr.bf16.mxu0 %v2184_v24  ;;  %v1232_v15 = vld [vmem:[#allocation12 + $0xa20] sm:$0xff]  ;;  %v2284_v17 = vpack.c.bf16 %v1239_v13, %v1233_v11  ;;  %v1245_v24 = vld [vmem:[#allocation12 + $0xa88] sm:$0xff]  ;;  %v1059_v13 = vld [vmem:[#allocation12 + $0x4b8] sm:$0xff] }
 0x1bf   :  { %2153 = vmatprep.subr.bf16.mxu1 %v2152_v21  ;;  %v2266_v21 = vpack.c.bf16 %v1178_v19, %v1172_v18  ;;  %v2286_v18 = vpack.c.bf16 %v1238_v16, %v1232_v15  ;;  %v993_v19 = vld [vmem:[#allocation12 + $0x2a8] sm:$0xff]  ;;  %v1052_v16 = vld [vmem:[#allocation12 + $0x480] sm:$0xff] }
 0x1c2   :  { %2155 = vmatpush1.bf16.msra.mxu1 %v2154_v26  ;;  %v938_v26 = vld [vmem:[#allocation12 + $0xf0] sm:$0xff] }
 0x1c3   :  { %2157 = vmatprep.subr.bf16.mxu1 %v2156_v27  ;;  %v1185_v27 = vld [vmem:[#allocation12 + $0x8a8] sm:$0xff]  ;;  %v2186_v28 = vpack.c.bf16 %v938_v26, %v932_v25  ;;  %v2206_v25 = vpack.c.bf16 %v998_v23, %v992_v22  ;;  %v1251_v26 = vld [vmem:[#allocation12 + $0xab8] sm:$0xff]  ;;  %v1070_v23 = vld [vmem:[#allocation12 + $0x510] sm:$0xff] }
 0x1c5   :  { %2187 = vmatpush1.bf16.msra.mxu0 %v2186_v28  ;;  %v1250_v28 = vld [vmem:[#allocation12 + $0xab0] sm:$0xff] }
 0x1c6   :  { %2159 = vmatpush1.bf16.msra.mxu1 %v2158_v32  ;;  %v2268_v32 = vpack.c.bf16 %v1191_v29, %v1185_v27  ;;  %v1244_v27 = vld [vmem:[#allocation12 + $0xa80] sm:$0xff]  ;;  %v2288_v29 = vpack.c.bf16 %v1251_v26, %v1245_v24  ;;  %v1083_v26 = vld [vmem:[#allocation12 + $0x578] sm:$0xff] }
 0x1c7   :  { %2241 = vmatprep.subr.bf16.mxu1 %v2240_v33  ;;  %v2270_v33 = vpack.c.bf16 %v1190_v31, %v1184_v30  ;;  %v2290_v30 = vpack.c.bf16 %v1250_v28, %v1244_v27  ;;  %v1005_v31 = vld [vmem:[#allocation12 + $0x308] sm:$0xff]  ;;  %v1076_v27 = vld [vmem:[#allocation12 + $0x540] sm:$0xff] }
 0x1c9   :  { %2008 = vmatmul.mubr.msk.f32.vlgmr.msra.gmra.mrb[8].mxu1 %vm414_vm5, %v3175_v14  ;;  %v2252_v14 = vpack.c.bf16 %v1143_v50, %v1137_v49  ;;  %v956_v49 = vld [vmem:[#allocation12 + $0x180] sm:$0xff]  ;;  %v962_v50 = vld [vmem:[#allocation12 + $0x1b0] sm:$0xff] }
 0x1ca   :  { %2243 = vmatpush1.bf16.msra.mxu1 %v2242_v36  ;;  %v2188_v36 = vpack.c.bf16 %v951_v35, %v945_v34  ;;  %v2194_v51 = vpack.c.bf16 %v962_v50, %v956_v49  ;;  %v1004_v34 = vld [vmem:[#allocation12 + $0x300] sm:$0xff]  ;;  %v1010_v35 = vld [vmem:[#allocation12 + $0x330] sm:$0xff]  ;;  %v1275_v50 = vld [vmem:[#allocation12 + $0xb78] sm:$0xff] }
 0x1cb   :  { %2245 = vmatprep.subr.bf16.mxu1 %v2244_v39  ;;  %v1197_v39 = vld [vmem:[#allocation12 + $0x908] sm:$0xff]  ;;  %v2210_v37 = vpack.c.bf16 %v1010_v35, %v1004_v34  ;;  %v1094_v35 = vld [vmem:[#allocation12 + $0x5d0] sm:$0xff] }
 0x1cc   :  { %2189 = vmatprep.subr.bf16.mxu0 %v2188_v36  ;;  %v2272_v44 = vpack.c.bf16 %v1203_v41, %v1197_v39  ;;  %v1257_v36 = vld [vmem:[#allocation12 + $0xae8] sm:$0xff]  ;;  %v1256_v39 = vld [vmem:[#allocation12 + $0xae0] sm:$0xff] }
 0x1cd   :  { %2191 = vmatpush1.bf16.msra.mxu0 %v2190_v40  ;;  %v1262_v40 = vld [vmem:[#allocation12 + $0xb10] sm:$0xff]  ;;  %v2292_v41 = vpack.c.bf16 %v1263_v38, %v1257_v36  ;;  %v917_v38 = vld [vmem:[#allocation12 + $0x48] sm:$0xff] }
 0x1ce   :  { %2247 = vmatpush1.bf16.msra.mxu1 %v2246_v42  ;;  %v1196_v42 = vld [vmem:[#allocation12 + $0x900] sm:$0xff] }
 0x1cf   :  { %2249 = vmatprep.subr.bf16.mxu1 %v2248_v45  ;;  %v2274_v45 = vpack.c.bf16 %v1202_v43, %v1196_v42  ;;  %v2294_v42 = vpack.c.bf16 %v1262_v40, %v1256_v39  ;;  %v1017_v43 = vld [vmem:[#allocation12 + $0x368] sm:$0xff]  ;;  %v354_v40 = vlaneseq }
 0x1d2   :  { %2251 = vmatpush1.bf16.msra.mxu1 %v2250_v48  ;;  %v2192_v48 = vpack.c.bf16 %v963_v47, %v957_v46  ;;  %v1016_v46 = vld [vmem:[#allocation12 + $0x360] sm:$0xff]  ;;  %v1022_v47 = vld [vmem:[#allocation12 + $0x390] sm:$0xff] }
 0x1d3   :  { %2253 = vmatprep.subr.bf16.mxu1 %v2252_v14  ;;  %v1209_v14 = vld [vmem:[#allocation12 + $0x968] sm:$0xff]  ;;  %v2214_v49 = vpack.c.bf16 %v1022_v47, %v1016_v46  ;;  %v350_v47 = vld [vmem:[#allocation11] sm:$0xff] }
 0x1d4   :  { %2193 = vmatprep.subr.bf16.mxu0 %v2192_v48  ;;  %v2276_v55 = vpack.c.bf16 %v1215_v52, %v1209_v14  ;;  %v1269_v48 = vld [vmem:[#allocation12 + $0xb48] sm:$0xff]  ;;  %v1268_v14 = vld [vmem:[#allocation12 + $0xb40] sm:$0xff] }
 0x1d5   :  { %2195 = vmatpush1.bf16.msra.mxu0 %v2194_v51  ;;  %v1274_v51 = vld [vmem:[#allocation12 + $0xb70] sm:$0xff]  ;;  %v2296_v52 = vpack.c.bf16 %v1275_v50, %v1269_v48 }
 0x1d6   :  { %2255 = vmatpush1.bf16.msra.mxu1 %v2254_v53  ;;  %v1208_v53 = vld [vmem:[#allocation12 + $0x960] sm:$0xff] }
 0x1d7   :  { %2257 = vmatprep.subr.bf16.mxu1 %v2256_v56  ;;  %v2278_v56 = vpack.c.bf16 %v1214_v54, %v1208_v53  ;;  %v2298_v53 = vpack.c.bf16 %v1274_v51, %v1268_v14  ;;  %v1029_v54 = vld [vmem:[#allocation12 + $0x3c8] sm:$0xff] }
 0x1da   :  { %2259 = vmatpush1.bf16.msra.mxu1 %v2258_v59  ;;  %v2196_v59 = vpack.c.bf16 %v975_v58, %v969_v57  ;;  %v1028_v57 = vld [vmem:[#allocation12 + $0x3c0] sm:$0xff]  ;;  %v1034_v58 = vld [vmem:[#allocation12 + $0x3f0] sm:$0xff] }
 0x1db   :  { %2261 = vmatprep.subr.bf16.mxu1 %v2260_v7  ;;  %v987_v7 = vld [vmem:[#allocation12 + $0x278] sm:$0xff]  ;;  %v2218_v60 = vpack.c.bf16 %v1034_v58, %v1028_v57 }
 0x1dc   :  { %2197 = vmatprep.subr.bf16.mxu0 %v2196_v59  ;;  %v1281_v59 = vld [vmem:[#allocation12 + $0xba8] sm:$0xff] }
 0x1dd   :  { %2199 = vmatpush1.bf16.msra.mxu0 %v2198_v63  ;;  %v1286_v63 = vld [vmem:[#allocation12 + $0xbd0] sm:$0xff]  ;;  %v2300_v0 = vpack.c.bf16 %v1287_v61, %v1281_v59 }
 0x1de   :  { %2263 = vmatpush1.bf16.msra.mxu1 %v2262_v8  ;;  %v2200_v8 = vpack.c.bf16 %v987_v7, %v981_v6  ;;  %v2302_v1 = vpack.c.bf16 %v1286_v63, %v1280_v62  ;;  %v1040_v6 = vld [vmem:[#allocation12 + $0x420] sm:$0xff]  ;;  %v1046_v7 = vld [vmem:[#allocation12 + $0x450] sm:$0xff] }
 0x1df   :  { %2265 = vmatprep.subr.bf16.mxu1 %v2264_v20  ;;  %v999_v20 = vld [vmem:[#allocation12 + $0x2d8] sm:$0xff]  ;;  %v2222_v9 = vpack.c.bf16 %v1046_v7, %v1040_v6 }
 0x1e0   :  { %2201 = vmatprep.subr.bf16.mxu0 %v2200_v8  ;;  %v913_v8 = vld [vmem:[#allocation12 + $0x28] sm:$0xff] }
 0x1e1   :  { %2203 = vmatpush1.bf16.msra.mxu0 %v2202_v12  ;;  %v2432_v11 = vpack.c.bf16 %v919_v10, %v913_v8  ;;  %v1053_v12 = vld [vmem:[#allocation12 + $0x488] sm:$0xff] }
 0x1e2   :  { %2267 = vmatpush1.bf16.msra.mxu1 %v2266_v21  ;;  %v2204_v21 = vpack.c.bf16 %v999_v20, %v993_v19  ;;  %v2224_v15 = vpack.c.bf16 %v1059_v13, %v1053_v12  ;;  %v1065_v19 = vld [vmem:[#allocation12 + $0x4e8] sm:$0xff]  ;;  %v1071_v20 = vld [vmem:[#allocation12 + $0x518] sm:$0xff] }
 0x1e3   :  { %2269 = vmatprep.subr.bf16.mxu1 %v2268_v32  ;;  %v1011_v32 = vld [vmem:[#allocation12 + $0x338] sm:$0xff]  ;;  %v2228_v22 = vpack.c.bf16 %v1071_v20, %v1065_v19 }
 0x1e4   :  { %2205 = vmatprep.subr.bf16.mxu0 %v2204_v21  ;;  %v1064_v21 = vld [vmem:[#allocation12 + $0x4e0] sm:$0xff] }
 0x1e5   :  { %2207 = vmatpush1.bf16.msra.mxu0 %v2206_v25  ;;  %v2230_v24 = vpack.c.bf16 %v1070_v23, %v1064_v21  ;;  %v1077_v25 = vld [vmem:[#allocation12 + $0x548] sm:$0xff] }
 0x1e6   :  { %2271 = vmatpush1.bf16.msra.mxu1 %v2270_v33  ;;  %v2208_v33 = vpack.c.bf16 %v1011_v32, %v1005_v31  ;;  %v2232_v28 = vpack.c.bf16 %v1083_v26, %v1077_v25  ;;  %v1089_v31 = vld [vmem:[#allocation12 + $0x5a8] sm:$0xff]  ;;  %v1095_v32 = vld [vmem:[#allocation12 + $0x5d8] sm:$0xff] }
 0x1e7   :  { %2273 = vmatprep.subr.bf16.mxu1 %v2272_v44  ;;  %v1023_v44 = vld [vmem:[#allocation12 + $0x398] sm:$0xff]  ;;  %v2236_v34 = vpack.c.bf16 %v1095_v32, %v1089_v31 }
 0x1e8   :  { %2209 = vmatprep.subr.bf16.mxu0 %v2208_v33  ;;  %v1088_v33 = vld [vmem:[#allocation12 + $0x5a0] sm:$0xff] }
 0x1e9   :  { %2211 = vmatpush1.bf16.msra.mxu0 %v2210_v37  ;;  %v2238_v36 = vpack.c.bf16 %v1094_v35, %v1088_v33  ;;  %v911_v37 = vld [vmem:[#allocation12 + $0x18] sm:$0xff] }
 0x1ea   :  { %2275 = vmatpush1.bf16.msra.mxu1 %v2274_v45  ;;  %v2212_v45 = vpack.c.bf16 %v1023_v44, %v1017_v43  ;;  %v2304_v39 = vpack.c.bf16 %v917_v38, %v911_v37 }
 0x1eb   :  { %2277 = vmatprep.subr.bf16.mxu1 %v2276_v55  ;;  %v1035_v55 = vld [vmem:[#allocation12 + $0x3f8] sm:$0xff] }
 0x1ec   :  { %2213 = vmatprep.subr.bf16.mxu0 %v2212_v45 }
 0x1ed   :  { %2215 = vmatpush1.bf16.msra.mxu0 %v2214_v49 }
 0x1ee   :  { %2279 = vmatpush1.bf16.msra.mxu1 %v2278_v56  ;;  %v2216_v56 = vpack.c.bf16 %v1035_v55, %v1029_v54 }
 0x1ef   :  { %2281 = vmatprep.subr.bf16.mxu1 %v2280_v4  ;;  %v1047_v4 = vld [vmem:[#allocation12 + $0x458] sm:$0xff] }
 0x1f0   :  { %2217 = vmatprep.subr.bf16.mxu0 %v2216_v56  ;;  %v3210_v56 = vld [vmem:[#allocation11 + $0x8] sm:$0xf] }
 0x1f1   :  { %2219 = vmatpush1.bf16.msra.mxu0 %v2218_v60 }
 0x1f2   :  { %2283 = vmatpush1.bf16.msra.mxu1 %v2282_v5  ;;  %v2220_v5 = vpack.c.bf16 %v1047_v4, %v1041_v3 }
 0x1f3   :  { %2285 = vmatprep.subr.bf16.mxu1 %v2284_v17  ;;  %v1058_v17 = vld [vmem:[#allocation12 + $0x4b0] sm:$0xff] }
 0x1f4   :  { %2221 = vmatprep.subr.bf16.mxu0 %v2220_v5 }
 0x1f5   :  { %2223 = vmatpush1.bf16.msra.mxu0 %v2222_v9 }
 0x1f6   :  { %2287 = vmatpush1.bf16.msra.mxu1 %v2286_v18  ;;  %v2226_v18 = vpack.c.bf16 %v1058_v17, %v1052_v16  ;;  %2225 = vmatprep.subr.bf16.mxu0 %v2224_v15 }
 0x1f7   :  { %2289 = vmatprep.subr.bf16.mxu1 %v2288_v29  ;;  %v1082_v29 = vld [vmem:[#allocation12 + $0x570] sm:$0xff] }
 0x1f9   :  { %2227 = vmatpush1.bf16.msra.mxu0 %v2226_v18 }
 0x1fa   :  { %2291 = vmatpush1.bf16.msra.mxu1 %v2290_v30  ;;  %2229 = vmatprep.subr.bf16.mxu0 %v2228_v22  ;;  %v2234_v30 = vpack.c.bf16 %v1082_v29, %v1076_v27 }
 0x1fb   :  { %2293 = vmatprep.subr.bf16.mxu1 %v2292_v41  ;;  %v3193_v41 = vshrl.u32 %v354_v40, 7 }
 0x1fd   :  { %2231 = vmatpush1.bf16.msra.mxu0 %v2230_v24  ;;  %v3196_v46 = vsub.s32 0, %v3193_v41  ;;  %v3199_v48 = vsub.s32 1, %v3193_v41  ;;  %v3204_v14 = vsub.s32 2, %v3193_v41  ;;  %v380_v5 = vsub.s32 6, %v3193_v41 }
 0x1fe   :  { %2295 = vmatpush1.bf16.msra.mxu1 %v2294_v42  ;;  %2233 = vmatprep.subr.bf16.mxu0 %v2232_v28  ;;  %v384_v7 = vsub.s32 7, %v3193_v41  ;;  %v372_v13 = vsub.s32 4, %v3193_v41  ;;  %v376_v16 = vsub.s32 5, %v3193_v41 }
 0x1ff   :  { %2297 = vmatprep.subr.bf16.mxu1 %v2296_v52  ;;  %v357_v49 = vrot.slane %v350_v47, %v3196_v46  ;;  %v361_v50 = vrot.slane %v350_v47, %v3199_v48  ;;  %v3207_v52 = vsub.s32 3, %v3193_v41  ;;  %v365_v54 = vrot.slane %v350_v47, %v3204_v14 }
 0x200   :  { %v397_v62 = vrot.slane %v3210_v56, %v3204_v14  ;;  %v381_v10 = vrot.slane %v350_v47, %v380_v5  ;;  %v373_v21 = vrot.slane %v350_v47, %v372_v13  ;;  %v377_v24 = vrot.slane %v350_v47, %v376_v16  ;;  %v931_v5 = vld [vmem:[#allocation12 + $0xb8] sm:$0xff] }
 0x201   :  { %2235 = vmatpush1.bf16.msra.mxu0 %v2234_v30  ;;  %v369_v57 = vrot.slane %v350_v47, %v3207_v52  ;;  %v401_v4 = vrot.slane %v3210_v56, %v3207_v52 }
 0x202   :  { %2299 = vmatpush1.bf16.msra.mxu1 %v2298_v53  ;;  %2237 = vmatprep.subr.bf16.mxu0 %v2236_v34 }
 0x203   :  { %2301 = vmatprep.subr.bf16.mxu1 %v2300_v0 }
 0x205   :  { %2239 = vmatpush1.bf16.msra.mxu0 %v2238_v36 }
 0x206   :  { %2303 = vmatpush1.bf16.msra.mxu1 %v2302_v1  ;;  %2305 = vmatprep.subr.bf16.mxu0 %v2304_v39 }
 0x207   :  { %2433 = vmatprep.subr.bf16.mxu1 %v2432_v11  ;;  %v385_v11 = vrot.slane %v350_v47, %v384_v7 }
 0x26c   :  { %v484_v42 = vpop.f32.mrb[2].mxu1  ;;  %v697_v43 = vpop.f32.mrb[0].mxu0 }
 0x26d   :  { %v486_v44 = vpop.f32.mrb[3].mxu1  ;;  %v699_v45 = vpop.f32.mrb[1].mxu0  ;;  %v485_v51 = vadd.f32 %v484_v42, %v357_v49  ;;  %v698_v18 = vadd.f32 %v697_v43, %v381_v10  ;;  %v389_v43 = vrot.slane %v3210_v56, %v3196_v46  ;;  %v924_v10 = vld [vmem:[#allocation12 + $0x80] sm:$0xff] }
 0x26e   :  { %v487_v53 = vadd.f32 %v486_v44, %v361_v50  ;;  %v700_v19 = vadd.f32 %v699_v45, %v385_v11  ;;  %v393_v45 = vrot.slane %v3210_v56, %v3199_v48  ;;  %v912_v56 = vld [vmem:[#allocation12 + $0x20] sm:$0xff]  ;;  %v930_v11 = vld [vmem:[#allocation12 + $0xb0] sm:$0xff] }
 0x26f   :  { %v2010_v55 = vmul.f32 -1.442695, %v485_v51 }
 0x270   :  { %v2011_v58 = vmul.f32 -1.442695, %v487_v53 }
 0x271   :  { %2627 = vpow2.f32 %v2010_v55 }
 0x272   :  { %2629 = vpow2.f32 %v2011_v58 }
 0x27b   :  { %v2628_v17 = vpop.eup %2627 }
 0x27c   :  { %v555_v59 = vpop.f32.mrb[4].mxu1  ;;  %v839_v60 = vpop.f32.mrb[2].mxu0  ;;  %v856_v23 = vadd.f32 1.0, %v2628_v17 }
 0x27d   :  { %v556_v61 = vadd.f32 %v555_v59, %v365_v54  ;;  %v557_v63 = vpop.f32.mrb[5].mxu1  ;;  %v841_v0 = vpop.f32.mrb[3].mxu0  ;;  %v840_v8 = vadd.f32 %v839_v60, %v397_v62 }
 0x27e   :  { %v558_v1 = vadd.f32 %v557_v63, %v369_v57  ;;  %v842_v9 = vadd.f32 %v841_v0, %v401_v4  ;;  %v2630_v20 = vpop.eup %2629  ;;  %v918_v0 = vld [vmem:[#allocation12 + $0x50] sm:$0xff]  ;;  %v925_v4 = vld [vmem:[#allocation12 + $0x88] sm:$0xff] }
 0x27f   :  { %v2012_v3 = vmul.f32 -1.442695, %v556_v61  ;;  %v2016_v12 = vmul.f32 -1.442695, %v840_v8  ;;  %v857_v28 = vadd.f32 1.0, %v2630_v20  ;;  %v2434_v8 = vpack.c.bf16 %v918_v0, %v912_v56  ;;  %v935_v0 = vld [vmem:[#allocation12 + $0xd8] sm:$0xff] }
 0x280   :  { %v2013_v6 = vmul.f32 -1.442695, %v558_v1  ;;  %v2017_v15 = vmul.f32 -1.442695, %v842_v9  ;;  %v2436_v9 = vpack.c.bf16 %v931_v5, %v925_v4  ;;  %v2438_v20 = vpack.c.bf16 %v930_v11, %v924_v10  ;;  %v984_v5 = vld [vmem:[#allocation12 + $0x260] sm:$0xff]  ;;  %v1003_v10 = vld [vmem:[#allocation12 + $0x2f8] sm:$0xff] }
 0x281   :  { %2631 = vpow2.f32 %v2012_v3 }
 0x282   :  { %2633 = vpow2.f32 %v2013_v6 }
 0x283   :  { %2635 = vpow2.f32 %v2016_v12  ;;  %v937_v12 = vld [vmem:[#allocation12 + $0xe8] sm:$0xff] }
 0x284   :  { %2637 = vpow2.f32 %v2017_v15  ;;  %v943_v15 = vld [vmem:[#allocation12 + $0x118] sm:$0xff] }
 0x285   :  { %2639 = vtanh.f32 %v698_v18 }
 0x286   :  { %2641 = vtanh.f32 %v700_v19 }
 0x28b   :  { %v2632_v22 = vpop.eup %2631 }
 0x28c   :  { %v858_v25 = vadd.f32 1.0, %v2632_v22  ;;  %v626_v26 = vpop.f32.mrb[6].mxu1  ;;  %v2634_v27 = vpop.eup %2633  ;;  %v2440_v22 = vpack.c.bf16 %v943_v15, %v937_v12  ;;  %v934_v12 = vld [vmem:[#allocation12 + $0xd0] sm:$0xff]  ;;  %v940_v15 = vld [vmem:[#allocation12 + $0x100] sm:$0xff] }
 0x28d   :  { %v628_v29 = vpop.f32.mrb[7].mxu1  ;;  %v859_v30 = vadd.f32 1.0, %v2634_v27  ;;  %v627_v31 = vadd.f32 %v626_v26, %v373_v21  ;;  %v2636_v33 = vpop.eup %2635  ;;  %v955_v26 = vld [vmem:[#allocation12 + $0x178] sm:$0xff] }
 0x28e   :  { %2643 = vrcp.f32 %v858_v25  ;;  %v629_v32 = vadd.f32 %v628_v29, %v377_v24  ;;  %v2638_v34 = vpop.eup %2637  ;;  %v886_v36 = vadd.f32 1.0, %v2636_v33  ;;  %v942_v24 = vld [vmem:[#allocation12 + $0x110] sm:$0xff]  ;;  %v949_v25 = vld [vmem:[#allocation12 + $0x148] sm:$0xff]  ;;  %v948_v29 = vld [vmem:[#allocation12 + $0x140] sm:$0xff] }
 0x28f   :  { %2645 = vrcp.f32 %v856_v23  ;;  %v2640_v35 = vpop.eup %2639  ;;  %v887_v39 = vadd.f32 1.0, %v2638_v34  ;;  %v936_v23 = vld [vmem:[#allocation12 + $0xe0] sm:$0xff] }
 0x290   :  { %2647 = vrcp.f32 %v859_v30  ;;  %v2642_v37 = vpop.eup %2641  ;;  %v2442_v27 = vpack.c.bf16 %v942_v24, %v936_v23  ;;  %v954_v30 = vld [vmem:[#allocation12 + $0x170] sm:$0xff]  ;;  %v2314_v23 = vpack.c.bf16 %v940_v15, %v934_v12  ;;  %v1009_v24 = vld [vmem:[#allocation12 + $0x328] sm:$0xff]  ;;  %v1044_v15 = vld [vmem:[#allocation12 + $0x440] sm:$0xff] }
 0x291   :  { %2649 = vrcp.f32 %v857_v28  ;;  %v2444_v28 = vpack.c.bf16 %v955_v26, %v949_v25  ;;  %v2446_v33 = vpack.c.bf16 %v954_v30, %v948_v29  ;;  %v1015_v25 = vld [vmem:[#allocation12 + $0x358] sm:$0xff] }
 0x292   :  { %2651 = vtanh.f32 %v627_v31  ;;  %v961_v31 = vld [vmem:[#allocation12 + $0x1a8] sm:$0xff]  ;;  %v959_v30 = vld [vmem:[#allocation12 + $0x198] sm:$0xff] }
 0x293   :  { %2653 = vtanh.f32 %v629_v32  ;;  %v967_v32 = vld [vmem:[#allocation12 + $0x1d8] sm:$0xff] }
 0x294   :  { %2655 = vrcp.f32 %v886_v36  ;;  %v2448_v34 = vpack.c.bf16 %v967_v32, %v961_v31  ;;  %v966_v36 = vld [vmem:[#allocation12 + $0x1d0] sm:$0xff]  ;;  %v965_v31 = vld [vmem:[#allocation12 + $0x1c8] sm:$0xff]  ;;  %v2464_v32 = vpack.c.bf16 %v1015_v25, %v1009_v24  ;;  %v1007_v25 = vld [vmem:[#allocation12 + $0x318] sm:$0xff] }
 0x298   :  { %v2644_v38 = vpop.eup %2643 }
 0x299   :  { %v2646_v40 = vpop.eup %2645  ;;  %v898_v42 = vmul.f32 %v2644_v38, %v2640_v35  ;;  %v960_v35 = vld [vmem:[#allocation12 + $0x1a0] sm:$0xff]  ;;  %v910_v38 = vld [vmem:[#allocation12 + $0x10] sm:$0xff] }
 0x29a   :  { %v2648_v44 = vpop.eup %2647 }
 0x29b   :  { %v2650_v47 = vpop.eup %2649  ;;  %2657 = vtanh.f32 %v898_v42  ;;  %v899_v49 = vmul.f32 %v2648_v44, %v2642_v37  ;;  %v973_v42 = vld [vmem:[#allocation12 + $0x208] sm:$0xff] }
 0x29c   :  { %v2652_v50 = vpop.eup %2651  ;;  %2659 = vrcp.f32 %v887_v39  ;;  %v768_v51 = vpop.f32.mrb[8].mxu1 }
 0x29d   :  { %v2654_v53 = vpop.eup %2653  ;;  %v896_v54 = vmul.f32 %v2652_v50, %v2646_v40  ;;  %v769_v55 = vadd.f32 %v768_v51, %v389_v43  ;;  %v770_v57 = vpop.f32.mrb[9].mxu1  ;;  %2661 = vtanh.f32 %v899_v49  ;;  %v916_v40 = vld [vmem:[#allocation12 + $0x40] sm:$0xff]  ;;  %v979_v43 = vld [vmem:[#allocation12 + $0x238] sm:$0xff]  ;;  %v929_v49 = vld [vmem:[#allocation12 + $0xa8] sm:$0xff] }
 0x29e   :  { %v897_v58 = vmul.f32 %v2654_v53, %v2650_v47  ;;  %v771_v59 = vadd.f32 %v770_v57, %v393_v45  ;;  %v2656_v62 = vpop.eup %2655  ;;  %v2450_v45 = vpack.c.bf16 %v966_v36, %v960_v35  ;;  %v923_v47 = vld [vmem:[#allocation12 + $0x78] sm:$0xff]  ;;  %v972_v53 = vld [vmem:[#allocation12 + $0x200] sm:$0xff]  ;;  %v2306_v57 = vpack.c.bf16 %v916_v40, %v910_v38  ;;  %v1021_v36 = vld [vmem:[#allocation12 + $0x388] sm:$0xff] }
 0x29f   :  { %v2014_v60 = vmul.f32 -1.442695, %v769_v55  ;;  %v2320_v38 = vpack.c.bf16 %v965_v31, %v959_v30  ;;  %v964_v40 = vld [vmem:[#allocation12 + $0x1c0] sm:$0xff]  ;;  %v1069_v31 = vld [vmem:[#allocation12 + $0x508] sm:$0xff] }
 0x2a0   :  { %v2015_v61 = vmul.f32 -1.442695, %v771_v59  ;;  %v985_v59 = vld [vmem:[#allocation12 + $0x268] sm:$0xff] }
 0x2a1   :  { %2663 = vpow2.f32 %v2014_v60  ;;  %v991_v60 = vld [vmem:[#allocation12 + $0x298] sm:$0xff] }
 0x2a2   :  { %2665 = vpow2.f32 %v2015_v61  ;;  %v2308_v61 = vpack.c.bf16 %v929_v49, %v923_v47  ;;  %v2456_v4 = vpack.c.bf16 %v991_v60, %v985_v59  ;;  %v1020_v47 = vld [vmem:[#allocation12 + $0x380] sm:$0xff]  ;;  %v1026_v49 = vld [vmem:[#allocation12 + $0x3b0] sm:$0xff]  ;;  %v983_v60 = vld [vmem:[#allocation12 + $0x258] sm:$0xff] }
 0x2a3   :  { %2667 = vtanh.f32 %v896_v54  ;;  %v978_v54 = vld [vmem:[#allocation12 + $0x230] sm:$0xff]  ;;  %v2470_v59 = vpack.c.bf16 %v1026_v49, %v1020_v47 }
 0x2a4   :  { %2669 = vtanh.f32 %v897_v58  ;;  %v2452_v58 = vpack.c.bf16 %v979_v43, %v973_v42  ;;  %v2454_v56 = vpack.c.bf16 %v978_v54, %v972_v53  ;;  %v971_v43 = vld [vmem:[#allocation12 + $0x1f8] sm:$0xff]  ;;  %v1033_v53 = vld [vmem:[#allocation12 + $0x3e8] sm:$0xff]  ;;  %v1018_v49 = vld [vmem:[#allocation12 + $0x370] sm:$0xff] }
 0x2a5   :  { %v2658_v63 = vpop.eup %2657  ;;  %v1039_v54 = vld [vmem:[#allocation12 + $0x418] sm:$0xff] }
 0x2a6   :  { %v2660_v1 = vpop.eup %2659  ;;  %v3229_v3 = vmul.f32 %v2658_v63, %v2656_v62  ;;  %v922_v62 = vld [vmem:[#allocation12 + $0x70] sm:$0xff]  ;;  %v928_v63 = vld [vmem:[#allocation12 + $0xa0] sm:$0xff] }
 0x2a7   :  { %v2662_v6 = vpop.eup %2661 }
 0x2a8   :  { %v3231_v7 = vmul.f32 %v2662_v6, %v2660_v1  ;;  %v941_v1 = vld [vmem:[#allocation12 + $0x108] sm:$0xff]  ;;  %v990_v6 = vld [vmem:[#allocation12 + $0x290] sm:$0xff] }
 0x2a9   :  { %v2312_v11 = vpack.c.bf16 %v941_v1, %v935_v0  ;;  %v1045_v1 = vld [vmem:[#allocation12 + $0x448] sm:$0xff] }
 0x2aa   :  { %1459 = vmatprep.mubr.f32.mxu1 %v3231_v7 }
 0x2ab   :  { %v2664_v17 = vpop.eup %2663  ;;  %1460 = vmatmul.mubr.f32.vlgmr.msra.gmra.mrb[10].mxu1 %v3229_v3 }
 0x2ac   :  { %v2666_v18 = vpop.eup %2665  ;;  %v884_v19 = vadd.f32 1.0, %v2664_v17  ;;  %2435 = vmatpush1.bf16.msra.mxu1 %v2434_v8  ;;  %v2310_v8 = vpack.c.bf16 %v928_v63, %v922_v62  ;;  %v2458_v17 = vpack.c.bf16 %v990_v6, %v984_v5  ;;  %v2472_v62 = vpack.c.bf16 %v1039_v54, %v1033_v53  ;;  %v1032_v63 = vld [vmem:[#allocation12 + $0x3e0] sm:$0xff]  ;;  %v982_v6 = vld [vmem:[#allocation12 + $0x250] sm:$0xff]  ;;  %v1031_v54 = vld [vmem:[#allocation12 + $0x3d8] sm:$0xff] }
 0x2ad   :  { %v885_v21 = vadd.f32 1.0, %v2666_v18  ;;  %2437 = vmatprep.subr.bf16.mxu1 %v2436_v9  ;;  %v2668_v37 = vpop.eup %2667  ;;  %v997_v9 = vld [vmem:[#allocation12 + $0x2c8] sm:$0xff]  ;;  %v947_v18 = vld [vmem:[#allocation12 + $0x138] sm:$0xff] }
 0x2ae   :  { %2671 = vrcp.f32 %v884_v19  ;;  %v2670_v39 = vpop.eup %2669  ;;  %v953_v19 = vld [vmem:[#allocation12 + $0x168] sm:$0xff] }
 0x2af   :  { %2673 = vrcp.f32 %v885_v21  ;;  %v996_v21 = vld [vmem:[#allocation12 + $0x2c0] sm:$0xff]  ;;  %v2316_v26 = vpack.c.bf16 %v953_v19, %v947_v18  ;;  %v1057_v19 = vld [vmem:[#allocation12 + $0x4a8] sm:$0xff] }
 0x2b0   :  { %2439 = vmatpush1.bf16.msra.mxu1 %v2438_v20  ;;  %v2460_v20 = vpack.c.bf16 %v1003_v10, %v997_v9  ;;  %v995_v10 = vld [vmem:[#allocation12 + $0x2b8] sm:$0xff] }
 0x2b1   :  { %2441 = vmatprep.subr.bf16.mxu1 %v2440_v22  ;;  %v1002_v22 = vld [vmem:[#allocation12 + $0x2f0] sm:$0xff] }
 0x2b2   :  { %v2462_v29 = vpack.c.bf16 %v1002_v22, %v996_v21  ;;  %v994_v22 = vld [vmem:[#allocation12 + $0x2b0] sm:$0xff] }
 0x2b4   :  { %2443 = vmatpush1.bf16.msra.mxu1 %v2442_v27  ;;  %v946_v27 = vld [vmem:[#allocation12 + $0x130] sm:$0xff] }
 0x2b5   :  { %2445 = vmatprep.subr.bf16.mxu1 %v2444_v28  ;;  %v952_v28 = vld [vmem:[#allocation12 + $0x160] sm:$0xff] }
 0x2b6   :  { %v2318_v35 = vpack.c.bf16 %v952_v28, %v946_v27  ;;  %v1056_v28 = vld [vmem:[#allocation12 + $0x4a0] sm:$0xff] }
 0x2b8   :  { %v2672_v44 = vpop.eup %2671  ;;  %2447 = vmatpush1.bf16.msra.mxu1 %v2446_v33  ;;  %v1008_v33 = vld [vmem:[#allocation12 + $0x320] sm:$0xff] }
 0x2b9   :  { %v2674_v50 = vpop.eup %2673  ;;  %2449 = vmatprep.subr.bf16.mxu1 %v2448_v34  ;;  %v3235_v51 = vmul.f32 %v2672_v44, %v2668_v37  ;;  %v1014_v34 = vld [vmem:[#allocation12 + $0x350] sm:$0xff]  ;;  %v1027_v37 = vld [vmem:[#allocation12 + $0x3b8] sm:$0xff]  ;;  %v977_v44 = vld [vmem:[#allocation12 + $0x228] sm:$0xff] }
 0x2ba   :  { %v905_v55 = vmul.f32 %v2674_v50, %v2670_v39  ;;  %v958_v39 = vld [vmem:[#allocation12 + $0x190] sm:$0xff]  ;;  %v2466_v42 = vpack.c.bf16 %v1014_v34, %v1008_v33 }
 0x2bb   :  { %v2322_v50 = vpack.c.bf16 %v964_v40, %v958_v39  ;;  %v1006_v34 = vld [vmem:[#allocation12 + $0x310] sm:$0xff]  ;;  %v1068_v40 = vld [vmem:[#allocation12 + $0x500] sm:$0xff] }
 0x2bc   :  { %2451 = vmatpush1.bf16.msra.mxu1 %v2450_v45  ;;  %1388 = vmatprep.mubr.f32.mxu0 %v905_v55  ;;  %v2468_v45 = vpack.c.bf16 %v1027_v37, %v1021_v36  ;;  %v1019_v37 = vld [vmem:[#allocation12 + $0x378] sm:$0xff] }
 0x2bd   :  { %1672 = vmatprep.mubr.f32.mxu1 %v905_v55  ;;  %1389 = vmatmul.mubr.f32.vlgmr.msra.gmra.mrb[4].mxu0 %v3235_v51 }
 0x2be   :  { %2307 = vmatpush1.bf16.msra.mxu0 %v2306_v57  ;;  %2453 = vmatprep.subr.bf16.mxu1 %v2452_v58  ;;  %v970_v57 = vld [vmem:[#allocation12 + $0x1f0] sm:$0xff]  ;;  %v976_v58 = vld [vmem:[#allocation12 + $0x220] sm:$0xff] }
 0x2bf   :  { %1530 = vmatprep.mubr.f32.mxu0 %v905_v55  ;;  %2309 = vmatprep.subr.bf16.mxu0 %v2308_v61  ;;  %v2324_v55 = vpack.c.bf16 %v977_v44, %v971_v43  ;;  %v989_v61 = vld [vmem:[#allocation12 + $0x288] sm:$0xff]  ;;  %v2326_v0 = vpack.c.bf16 %v976_v58, %v970_v57  ;;  %v1080_v58 = vld [vmem:[#allocation12 + $0x560] sm:$0xff] }
 0x2c0   :  { %2455 = vmatpush1.bf16.msra.mxu1 %v2454_v56  ;;  %v1038_v56 = vld [vmem:[#allocation12 + $0x410] sm:$0xff]  ;;  %v2328_v5 = vpack.c.bf16 %v989_v61, %v983_v60  ;;  %v1081_v44 = vld [vmem:[#allocation12 + $0x568] sm:$0xff] }
 0x2c1   :  { %2457 = vmatprep.subr.bf16.mxu1 %v2456_v4  ;;  %v1051_v4 = vld [vmem:[#allocation12 + $0x478] sm:$0xff]  ;;  %v2474_v9 = vpack.c.bf16 %v1038_v56, %v1032_v63  ;;  %v1093_v61 = vld [vmem:[#allocation12 + $0x5c8] sm:$0xff]  ;;  %v1030_v56 = vld [vmem:[#allocation12 + $0x3d0] sm:$0xff] }
 0x2c2   :  { %2311 = vmatpush1.bf16.msra.mxu0 %v2310_v8  ;;  %v988_v8 = vld [vmem:[#allocation12 + $0x280] sm:$0xff]  ;;  %v2476_v12 = vpack.c.bf16 %v1051_v4, %v1045_v1  ;;  %v1043_v4 = vld [vmem:[#allocation12 + $0x438] sm:$0xff] }
 0x2c3   :  { %2313 = vmatprep.subr.bf16.mxu0 %v2312_v11  ;;  %v1001_v11 = vld [vmem:[#allocation12 + $0x2e8] sm:$0xff]  ;;  %v2330_v18 = vpack.c.bf16 %v988_v8, %v982_v6  ;;  %v1092_v8 = vld [vmem:[#allocation12 + $0x5c0] sm:$0xff] }
 0x2c4   :  { %2459 = vmatpush1.bf16.msra.mxu1 %v2458_v17  ;;  %v1050_v17 = vld [vmem:[#allocation12 + $0x470] sm:$0xff]  ;;  %v2332_v21 = vpack.c.bf16 %v1001_v11, %v995_v10  ;;  %v1105_v11 = vld [vmem:[#allocation12 + $0x628] sm:$0xff] }
 0x2c5   :  { %2461 = vmatprep.subr.bf16.mxu1 %v2460_v20  ;;  %v1063_v20 = vld [vmem:[#allocation12 + $0x4d8] sm:$0xff]  ;;  %v2478_v24 = vpack.c.bf16 %v1050_v17, %v1044_v15  ;;  %v1042_v17 = vld [vmem:[#allocation12 + $0x430] sm:$0xff] }
 0x2c6   :  { %2315 = vmatpush1.bf16.msra.mxu0 %v2314_v23  ;;  %v1000_v23 = vld [vmem:[#allocation12 + $0x2e0] sm:$0xff]  ;;  %v2480_v27 = vpack.c.bf16 %v1063_v20, %v1057_v19  ;;  %v1055_v20 = vld [vmem:[#allocation12 + $0x498] sm:$0xff] }
 0x2c7   :  { %2317 = vmatprep.subr.bf16.mxu0 %v2316_v26  ;;  %v1013_v26 = vld [vmem:[#allocation12 + $0x348] sm:$0xff]  ;;  %v2334_v30 = vpack.c.bf16 %v1000_v23, %v994_v22  ;;  %v1104_v23 = vld [vmem:[#allocation12 + $0x620] sm:$0xff] }
 0x2c8   :  { %2463 = vmatpush1.bf16.msra.mxu1 %v2462_v29  ;;  %v1062_v29 = vld [vmem:[#allocation12 + $0x4d0] sm:$0xff]  ;;  %v2336_v33 = vpack.c.bf16 %v1013_v26, %v1007_v25  ;;  %v1117_v26 = vld [vmem:[#allocation12 + $0x688] sm:$0xff] }
 0x2c9   :  { %2465 = vmatprep.subr.bf16.mxu1 %v2464_v32  ;;  %v1075_v32 = vld [vmem:[#allocation12 + $0x538] sm:$0xff]  ;;  %v2482_v36 = vpack.c.bf16 %v1062_v29, %v1056_v28  ;;  %v1054_v29 = vld [vmem:[#allocation12 + $0x490] sm:$0xff] }
 0x2ca   :  { %2319 = vmatpush1.bf16.msra.mxu0 %v2318_v35  ;;  %v1012_v35 = vld [vmem:[#allocation12 + $0x340] sm:$0xff]  ;;  %v2484_v39 = vpack.c.bf16 %v1075_v32, %v1069_v31  ;;  %v1067_v32 = vld [vmem:[#allocation12 + $0x4f8] sm:$0xff] }
 0x2cb   :  { %2321 = vmatprep.subr.bf16.mxu0 %v2320_v38  ;;  %v1025_v38 = vld [vmem:[#allocation12 + $0x3a8] sm:$0xff]  ;;  %v2338_v43 = vpack.c.bf16 %v1012_v35, %v1006_v34  ;;  %v1116_v35 = vld [vmem:[#allocation12 + $0x680] sm:$0xff] }
 0x2cc   :  { %2467 = vmatpush1.bf16.msra.mxu1 %v2466_v42  ;;  %v1074_v42 = vld [vmem:[#allocation12 + $0x530] sm:$0xff]  ;;  %v2340_v47 = vpack.c.bf16 %v1025_v38, %v1019_v37  ;;  %v1129_v38 = vld [vmem:[#allocation12 + $0x6e8] sm:$0xff] }
 0x2cd   :  { %2469 = vmatprep.subr.bf16.mxu1 %v2468_v45  ;;  %v1087_v45 = vld [vmem:[#allocation12 + $0x598] sm:$0xff]  ;;  %v2486_v53 = vpack.c.bf16 %v1074_v42, %v1068_v40  ;;  %v1066_v42 = vld [vmem:[#allocation12 + $0x4f0] sm:$0xff] }
 0x2ce   :  { %2323 = vmatpush1.bf16.msra.mxu0 %v2322_v50  ;;  %v1024_v50 = vld [vmem:[#allocation12 + $0x3a0] sm:$0xff]  ;;  %v2488_v57 = vpack.c.bf16 %v1087_v45, %v1081_v44  ;;  %v1079_v45 = vld [vmem:[#allocation12 + $0x558] sm:$0xff] }
 0x2cf   :  { %2325 = vmatprep.subr.bf16.mxu0 %v2324_v55  ;;  %v1037_v55 = vld [vmem:[#allocation12 + $0x408] sm:$0xff]  ;;  %v2342_v60 = vpack.c.bf16 %v1024_v50, %v1018_v49  ;;  %v1128_v50 = vld [vmem:[#allocation12 + $0x6e0] sm:$0xff] }
 0x2d0   :  { %2471 = vmatpush1.bf16.msra.mxu1 %v2470_v59  ;;  %v1086_v59 = vld [vmem:[#allocation12 + $0x590] sm:$0xff]  ;;  %v2344_v63 = vpack.c.bf16 %v1037_v55, %v1031_v54  ;;  %v1141_v55 = vld [vmem:[#allocation12 + $0x748] sm:$0xff] }
 0x2d1   :  { %2473 = vmatprep.subr.bf16.mxu1 %v2472_v62  ;;  %v1099_v62 = vld [vmem:[#allocation12 + $0x5f8] sm:$0xff]  ;;  %v2490_v1 = vpack.c.bf16 %v1086_v59, %v1080_v58  ;;  %v1078_v59 = vld [vmem:[#allocation12 + $0x550] sm:$0xff] }
 0x2d2   :  { %2327 = vmatpush1.bf16.msra.mxu0 %v2326_v0  ;;  %v1036_v0 = vld [vmem:[#allocation12 + $0x400] sm:$0xff]  ;;  %v2492_v6 = vpack.c.bf16 %v1099_v62, %v1093_v61  ;;  %v1091_v62 = vld [vmem:[#allocation12 + $0x5b8] sm:$0xff] }
 0x2d3   :  { %2329 = vmatprep.subr.bf16.mxu0 %v2328_v5  ;;  %v1049_v5 = vld [vmem:[#allocation12 + $0x468] sm:$0xff]  ;;  %v2346_v10 = vpack.c.bf16 %v1036_v0, %v1030_v56  ;;  %v1140_v0 = vld [vmem:[#allocation12 + $0x740] sm:$0xff] }
 0x2d4   :  { %2475 = vmatpush1.bf16.msra.mxu1 %v2474_v9  ;;  %v1098_v9 = vld [vmem:[#allocation12 + $0x5f0] sm:$0xff]  ;;  %v2348_v15 = vpack.c.bf16 %v1049_v5, %v1043_v4  ;;  %v1153_v5 = vld [vmem:[#allocation12 + $0x7a8] sm:$0xff] }
 0x2d5   :  { %2477 = vmatprep.subr.bf16.mxu1 %v2476_v12  ;;  %v1111_v12 = vld [vmem:[#allocation12 + $0x658] sm:$0xff]  ;;  %v2494_v19 = vpack.c.bf16 %v1098_v9, %v1092_v8  ;;  %v1090_v9 = vld [vmem:[#allocation12 + $0x5b0] sm:$0xff] }
 0x2d6   :  { %2331 = vmatpush1.bf16.msra.mxu0 %v2330_v18  ;;  %v1048_v18 = vld [vmem:[#allocation12 + $0x460] sm:$0xff]  ;;  %v2496_v22 = vpack.c.bf16 %v1111_v12, %v1105_v11  ;;  %v1103_v12 = vld [vmem:[#allocation12 + $0x618] sm:$0xff] }
 0x2d7   :  { %2333 = vmatprep.subr.bf16.mxu0 %v2332_v21  ;;  %v1061_v21 = vld [vmem:[#allocation12 + $0x4c8] sm:$0xff]  ;;  %v2350_v25 = vpack.c.bf16 %v1048_v18, %v1042_v17  ;;  %v1152_v18 = vld [vmem:[#allocation12 + $0x7a0] sm:$0xff] }
 0x2d8   :  { %2479 = vmatpush1.bf16.msra.mxu1 %v2478_v24  ;;  %v1110_v24 = vld [vmem:[#allocation12 + $0x650] sm:$0xff]  ;;  %v2352_v28 = vpack.c.bf16 %v1061_v21, %v1055_v20  ;;  %v1165_v21 = vld [vmem:[#allocation12 + $0x808] sm:$0xff] }
 0x2d9   :  { %2481 = vmatprep.subr.bf16.mxu1 %v2480_v27  ;;  %v1123_v27 = vld [vmem:[#allocation12 + $0x6b8] sm:$0xff]  ;;  %v2498_v31 = vpack.c.bf16 %v1110_v24, %v1104_v23  ;;  %v1102_v24 = vld [vmem:[#allocation12 + $0x610] sm:$0xff] }
 0x2da   :  { %2335 = vmatpush1.bf16.msra.mxu0 %v2334_v30  ;;  %v1060_v30 = vld [vmem:[#allocation12 + $0x4c0] sm:$0xff]  ;;  %v2500_v34 = vpack.c.bf16 %v1123_v27, %v1117_v26  ;;  %v1115_v27 = vld [vmem:[#allocation12 + $0x678] sm:$0xff] }
 0x2db   :  { %2337 = vmatprep.subr.bf16.mxu0 %v2336_v33  ;;  %v1073_v33 = vld [vmem:[#allocation12 + $0x528] sm:$0xff]  ;;  %v2354_v37 = vpack.c.bf16 %v1060_v30, %v1054_v29  ;;  %v1164_v30 = vld [vmem:[#allocation12 + $0x800] sm:$0xff] }
 0x2dc   :  { %2483 = vmatpush1.bf16.msra.mxu1 %v2482_v36  ;;  %v1122_v36 = vld [vmem:[#allocation12 + $0x6b0] sm:$0xff]  ;;  %v2356_v40 = vpack.c.bf16 %v1073_v33, %v1067_v32  ;;  %v1177_v33 = vld [vmem:[#allocation12 + $0x868] sm:$0xff] }
 0x2dd   :  { %2485 = vmatprep.subr.bf16.mxu1 %v2484_v39  ;;  %v1135_v39 = vld [vmem:[#allocation12 + $0x718] sm:$0xff]  ;;  %v2502_v44 = vpack.c.bf16 %v1122_v36, %v1116_v35  ;;  %v1114_v36 = vld [vmem:[#allocation12 + $0x670] sm:$0xff] }
 0x2de   :  { %2339 = vmatpush1.bf16.msra.mxu0 %v2338_v43  ;;  %v1072_v43 = vld [vmem:[#allocation12 + $0x520] sm:$0xff]  ;;  %v2504_v49 = vpack.c.bf16 %v1135_v39, %v1129_v38  ;;  %v1127_v39 = vld [vmem:[#allocation12 + $0x6d8] sm:$0xff] }
 0x2df   :  { %2341 = vmatprep.subr.bf16.mxu0 %v2340_v47  ;;  %v1085_v47 = vld [vmem:[#allocation12 + $0x588] sm:$0xff]  ;;  %v2358_v54 = vpack.c.bf16 %v1072_v43, %v1066_v42  ;;  %v1176_v43 = vld [vmem:[#allocation12 + $0x860] sm:$0xff] }
 0x2e0   :  { %2487 = vmatpush1.bf16.msra.mxu1 %v2486_v53  ;;  %v1134_v53 = vld [vmem:[#allocation12 + $0x710] sm:$0xff]  ;;  %v2360_v58 = vpack.c.bf16 %v1085_v47, %v1079_v45  ;;  %v1189_v47 = vld [vmem:[#allocation12 + $0x8c8] sm:$0xff] }
 0x2e1   :  { %2489 = vmatprep.subr.bf16.mxu1 %v2488_v57  ;;  %v1147_v57 = vld [vmem:[#allocation12 + $0x778] sm:$0xff]  ;;  %v2506_v61 = vpack.c.bf16 %v1134_v53, %v1128_v50  ;;  %v1126_v53 = vld [vmem:[#allocation12 + $0x6d0] sm:$0xff] }
 0x2e2   :  { %2343 = vmatpush1.bf16.msra.mxu0 %v2342_v60  ;;  %v1084_v60 = vld [vmem:[#allocation12 + $0x580] sm:$0xff]  ;;  %v2508_v56 = vpack.c.bf16 %v1147_v57, %v1141_v55  ;;  %v1139_v57 = vld [vmem:[#allocation12 + $0x738] sm:$0xff] }
 0x2e3   :  { %2345 = vmatprep.subr.bf16.mxu0 %v2344_v63  ;;  %v1097_v63 = vld [vmem:[#allocation12 + $0x5e8] sm:$0xff]  ;;  %v2362_v4 = vpack.c.bf16 %v1084_v60, %v1078_v59  ;;  %v1188_v59 = vld [vmem:[#allocation12 + $0x8c0] sm:$0xff]  ;;  %v1194_v60 = vld [vmem:[#allocation12 + $0x8f0] sm:$0xff] }
 0x2e4   :  { %2491 = vmatpush1.bf16.msra.mxu1 %v2490_v1  ;;  %v1146_v1 = vld [vmem:[#allocation12 + $0x770] sm:$0xff]  ;;  %v2364_v8 = vpack.c.bf16 %v1097_v63, %v1091_v62  ;;  %v1201_v62 = vld [vmem:[#allocation12 + $0x928] sm:$0xff]  ;;  %v1207_v63 = vld [vmem:[#allocation12 + $0x958] sm:$0xff] }
 0x2e5   :  { %2493 = vmatprep.subr.bf16.mxu1 %v2492_v6  ;;  %v1159_v6 = vld [vmem:[#allocation12 + $0x7d8] sm:$0xff]  ;;  %v2510_v11 = vpack.c.bf16 %v1146_v1, %v1140_v0  ;;  %v1144_v0 = vld [vmem:[#allocation12 + $0x760] sm:$0xff]  ;;  %v2526_v1 = vpack.c.bf16 %v1194_v60, %v1188_v59 }
 0x2e6   :  { %2347 = vmatpush1.bf16.msra.mxu0 %v2346_v10  ;;  %v1096_v10 = vld [vmem:[#allocation12 + $0x5e0] sm:$0xff]  ;;  %v2512_v17 = vpack.c.bf16 %v1159_v6, %v1153_v5  ;;  %v1157_v5 = vld [vmem:[#allocation12 + $0x7c8] sm:$0xff]  ;;  %v2528_v6 = vpack.c.bf16 %v1207_v63, %v1201_v62 }
 0x2e7   :  { %2349 = vmatprep.subr.bf16.mxu0 %v2348_v15  ;;  %v1109_v15 = vld [vmem:[#allocation12 + $0x648] sm:$0xff]  ;;  %v2366_v20 = vpack.c.bf16 %v1096_v10, %v1090_v9  ;;  %v1206_v9 = vld [vmem:[#allocation12 + $0x950] sm:$0xff]  ;;  %v1192_v59 = vld [vmem:[#allocation12 + $0x8e0] sm:$0xff] }
 0x2e8   :  { %2495 = vmatpush1.bf16.msra.mxu1 %v2494_v19  ;;  %v1158_v19 = vld [vmem:[#allocation12 + $0x7d0] sm:$0xff]  ;;  %v2368_v23 = vpack.c.bf16 %v1109_v15, %v1103_v12  ;;  %v1219_v12 = vld [vmem:[#allocation12 + $0x9b8] sm:$0xff]  ;;  %v1205_v62 = vld [vmem:[#allocation12 + $0x948] sm:$0xff] }
 0x2e9   :  { %2497 = vmatprep.subr.bf16.mxu1 %v2496_v22  ;;  %v1171_v22 = vld [vmem:[#allocation12 + $0x838] sm:$0xff]  ;;  %v2514_v26 = vpack.c.bf16 %v1158_v19, %v1152_v18  ;;  %v1156_v18 = vld [vmem:[#allocation12 + $0x7c0] sm:$0xff] }
 0x2ea   :  { %2351 = vmatpush1.bf16.msra.mxu0 %v2350_v25  ;;  %v1108_v25 = vld [vmem:[#allocation12 + $0x640] sm:$0xff]  ;;  %v2516_v29 = vpack.c.bf16 %v1171_v22, %v1165_v21  ;;  %v1169_v21 = vld [vmem:[#allocation12 + $0x828] sm:$0xff] }
 0x2eb   :  { %1673 = vmatmul.mubr.f32.vlgmr.msra.gmra.mrb[12].mxu1 %v3235_v51  ;;  %2353 = vmatprep.subr.bf16.mxu0 %v2352_v28  ;;  %v1121_v28 = vld [vmem:[#allocation12 + $0x6a8] sm:$0xff]  ;;  %v2370_v32 = vpack.c.bf16 %v1108_v25, %v1102_v24  ;;  %v1218_v24 = vld [vmem:[#allocation12 + $0x9b0] sm:$0xff] }
 0x2ec   :  { %2499 = vmatpush1.bf16.msra.mxu1 %v2498_v31  ;;  %1743 = vmatprep.mubr.f32.mxu1 %v3231_v7  ;;  %v1170_v31 = vld [vmem:[#allocation12 + $0x830] sm:$0xff]  ;;  %v2372_v35 = vpack.c.bf16 %v1121_v28, %v1115_v27  ;;  %v1231_v27 = vld [vmem:[#allocation12 + $0xa18] sm:$0xff] }
 0x2ed   :  { %2501 = vmatprep.subr.bf16.mxu1 %v2500_v34  ;;  %v1183_v34 = vld [vmem:[#allocation12 + $0x898] sm:$0xff]  ;;  %v2518_v38 = vpack.c.bf16 %v1170_v31, %v1164_v30  ;;  %v1168_v30 = vld [vmem:[#allocation12 + $0x820] sm:$0xff] }
 0x2ee   :  { %2355 = vmatpush1.bf16.msra.mxu0 %v2354_v37  ;;  %v1120_v37 = vld [vmem:[#allocation12 + $0x6a0] sm:$0xff]  ;;  %v2520_v42 = vpack.c.bf16 %v1183_v34, %v1177_v33  ;;  %v1181_v33 = vld [vmem:[#allocation12 + $0x888] sm:$0xff] }
 0x2ef   :  { %2357 = vmatprep.subr.bf16.mxu0 %v2356_v40  ;;  %v1133_v40 = vld [vmem:[#allocation12 + $0x708] sm:$0xff]  ;;  %v2374_v45 = vpack.c.bf16 %v1120_v37, %v1114_v36  ;;  %v1230_v36 = vld [vmem:[#allocation12 + $0xa10] sm:$0xff] }
 0x2f0   :  { %2503 = vmatpush1.bf16.msra.mxu1 %v2502_v44  ;;  %v1182_v44 = vld [vmem:[#allocation12 + $0x890] sm:$0xff]  ;;  %v2376_v50 = vpack.c.bf16 %v1133_v40, %v1127_v39  ;;  %v1243_v39 = vld [vmem:[#allocation12 + $0xa78] sm:$0xff] }
 0x2f1   :  { %2505 = vmatprep.subr.bf16.mxu1 %v2504_v49  ;;  %v1195_v49 = vld [vmem:[#allocation12 + $0x8f8] sm:$0xff]  ;;  %v2522_v55 = vpack.c.bf16 %v1182_v44, %v1176_v43  ;;  %v1180_v43 = vld [vmem:[#allocation12 + $0x880] sm:$0xff] }
 0x2f2   :  { %2359 = vmatpush1.bf16.msra.mxu0 %v2358_v54  ;;  %v1132_v54 = vld [vmem:[#allocation12 + $0x700] sm:$0xff] }
 0x2f3   :  { %2361 = vmatprep.subr.bf16.mxu0 %v2360_v58  ;;  %v1145_v58 = vld [vmem:[#allocation12 + $0x768] sm:$0xff] }
 0x2f4   :  { %2507 = vmatpush1.bf16.msra.mxu1 %v2506_v61  ;;  %v2378_v61 = vpack.c.bf16 %v1132_v54, %v1126_v53  ;;  %v1242_v53 = vld [vmem:[#allocation12 + $0xa70] sm:$0xff] }
 0x2f5   :  { %2509 = vmatprep.subr.bf16.mxu1 %v2508_v56  ;;  %v1138_v56 = vld [vmem:[#allocation12 + $0x730] sm:$0xff] }
 0x2f6   :  { %2363 = vmatpush1.bf16.msra.mxu0 %v2362_v4  ;;  %v1151_v4 = vld [vmem:[#allocation12 + $0x798] sm:$0xff]  ;;  %v2382_v10 = vpack.c.bf16 %v1144_v0, %v1138_v56  ;;  %v1254_v56 = vld [vmem:[#allocation12 + $0xad0] sm:$0xff] }
 0x2f7   :  { %2365 = vmatprep.subr.bf16.mxu0 %v2364_v8  ;;  %v1200_v8 = vld [vmem:[#allocation12 + $0x920] sm:$0xff]  ;;  %v2384_v15 = vpack.c.bf16 %v1157_v5, %v1151_v4  ;;  %v1267_v4 = vld [vmem:[#allocation12 + $0xb38] sm:$0xff] }
 0x2f8   :  { %2511 = vmatpush1.bf16.msra.mxu1 %v2510_v11  ;;  %v1213_v11 = vld [vmem:[#allocation12 + $0x988] sm:$0xff]  ;;  %v2530_v19 = vpack.c.bf16 %v1206_v9, %v1200_v8  ;;  %v1204_v8 = vld [vmem:[#allocation12 + $0x940] sm:$0xff] }
 0x2f9   :  { %2513 = vmatprep.subr.bf16.mxu1 %v2512_v17  ;;  %v1150_v17 = vld [vmem:[#allocation12 + $0x790] sm:$0xff]  ;;  %v2532_v22 = vpack.c.bf16 %v1219_v12, %v1213_v11  ;;  %v1217_v11 = vld [vmem:[#allocation12 + $0x9a8] sm:$0xff] }
 0x2fa   :  { %2367 = vmatpush1.bf16.msra.mxu0 %v2366_v20  ;;  %v1163_v20 = vld [vmem:[#allocation12 + $0x7f8] sm:$0xff]  ;;  %v2386_v25 = vpack.c.bf16 %v1156_v18, %v1150_v17  ;;  %v1266_v17 = vld [vmem:[#allocation12 + $0xb30] sm:$0xff] }
 0x2fb   :  { %2369 = vmatprep.subr.bf16.mxu0 %v2368_v23  ;;  %v1212_v23 = vld [vmem:[#allocation12 + $0x980] sm:$0xff]  ;;  %v2388_v28 = vpack.c.bf16 %v1169_v21, %v1163_v20  ;;  %v1279_v20 = vld [vmem:[#allocation12 + $0xb98] sm:$0xff] }
 0x2fc   :  { %2515 = vmatpush1.bf16.msra.mxu1 %v2514_v26  ;;  %v1225_v26 = vld [vmem:[#allocation12 + $0x9e8] sm:$0xff]  ;;  %v2534_v31 = vpack.c.bf16 %v1218_v24, %v1212_v23  ;;  %v1216_v23 = vld [vmem:[#allocation12 + $0x9a0] sm:$0xff] }
 0x2fd   :  { %1531 = vmatmul.mubr.f32.vlgmr.msra.gmra.mrb[6].mxu0 %v3235_v51  ;;  %2517 = vmatprep.subr.bf16.mxu1 %v2516_v29  ;;  %v2524_v51 = vpack.c.bf16 %v1195_v49, %v1189_v47  ;;  %v1162_v29 = vld [vmem:[#allocation12 + $0x7f0] sm:$0xff]  ;;  %v2536_v34 = vpack.c.bf16 %v1231_v27, %v1225_v26  ;;  %v1193_v47 = vld [vmem:[#allocation12 + $0x8e8] sm:$0xff] }
 0x2fe   :  { %2371 = vmatpush1.bf16.msra.mxu0 %v2370_v32  ;;  %1601 = vmatprep.mubr.f32.mxu0 %v3231_v7  ;;  %v2380_v7 = vpack.c.bf16 %v1145_v58, %v1139_v57  ;;  %v1175_v32 = vld [vmem:[#allocation12 + $0x858] sm:$0xff]  ;;  %v2390_v37 = vpack.c.bf16 %v1168_v30, %v1162_v29  ;;  %v1229_v26 = vld [vmem:[#allocation12 + $0xa08] sm:$0xff]  ;;  %v1278_v29 = vld [vmem:[#allocation12 + $0xb90] sm:$0xff] }
 0x2ff   :  { %2373 = vmatprep.subr.bf16.mxu0 %v2372_v35  ;;  %v1224_v35 = vld [vmem:[#allocation12 + $0x9e0] sm:$0xff]  ;;  %v2392_v40 = vpack.c.bf16 %v1181_v33, %v1175_v32  ;;  %v1255_v57 = vld [vmem:[#allocation12 + $0xad8] sm:$0xff] }
 0x300   :  { %2519 = vmatpush1.bf16.msra.mxu1 %v2518_v38  ;;  %v1237_v38 = vld [vmem:[#allocation12 + $0xa48] sm:$0xff]  ;;  %v2538_v44 = vpack.c.bf16 %v1230_v36, %v1224_v35  ;;  %v1291_v32 = vld [vmem:[#allocation12 + $0xbf8] sm:$0xff]  ;;  %v1228_v35 = vld [vmem:[#allocation12 + $0xa00] sm:$0xff] }
 0x301   :  { %2521 = vmatprep.subr.bf16.mxu1 %v2520_v42  ;;  %v1174_v42 = vld [vmem:[#allocation12 + $0x850] sm:$0xff]  ;;  %v2540_v49 = vpack.c.bf16 %v1243_v39, %v1237_v38  ;;  %v1241_v38 = vld [vmem:[#allocation12 + $0xa68] sm:$0xff] }
 0x302   :  { %2375 = vmatpush1.bf16.msra.mxu0 %v2374_v45  ;;  %v1187_v45 = vld [vmem:[#allocation12 + $0x8b8] sm:$0xff]  ;;  %v2394_v54 = vpack.c.bf16 %v1180_v43, %v1174_v42  ;;  %v1290_v42 = vld [vmem:[#allocation12 + $0xbf0] sm:$0xff] }
 0x303   :  { %2377 = vmatprep.subr.bf16.mxu0 %v2376_v50  ;;  %v1236_v50 = vld [vmem:[#allocation12 + $0xa40] sm:$0xff]  ;;  %v2396_v58 = vpack.c.bf16 %v1193_v47, %v1187_v45  ;;  %v1234_v45 = vld [vmem:[#allocation12 + $0xa30] sm:$0xff] }
 0x304   :  { %2523 = vmatpush1.bf16.msra.mxu1 %v2522_v55  ;;  %v1249_v55 = vld [vmem:[#allocation12 + $0xaa8] sm:$0xff]  ;;  %v2542_v60 = vpack.c.bf16 %v1242_v53, %v1236_v50  ;;  %v1240_v47 = vld [vmem:[#allocation12 + $0xa60] sm:$0xff]  ;;  %v1247_v50 = vld [vmem:[#allocation12 + $0xa98] sm:$0xff] }
 0x305   :  { %2525 = vmatprep.subr.bf16.mxu1 %v2524_v51  ;;  %v1186_v51 = vld [vmem:[#allocation12 + $0x8b0] sm:$0xff]  ;;  %v2544_v63 = vpack.c.bf16 %v1255_v57, %v1249_v55  ;;  %v1253_v53 = vld [vmem:[#allocation12 + $0xac8] sm:$0xff] }
 0x306   :  { %2379 = vmatpush1.bf16.msra.mxu0 %v2378_v61  ;;  %v1199_v61 = vld [vmem:[#allocation12 + $0x918] sm:$0xff]  ;;  %v2398_v0 = vpack.c.bf16 %v1192_v59, %v1186_v51  ;;  %v2416_v55 = vpack.c.bf16 %v1253_v53, %v1247_v50  ;;  %v1246_v57 = vld [vmem:[#allocation12 + $0xa90] sm:$0xff]  ;;  %v1265_v59 = vld [vmem:[#allocation12 + $0xb28] sm:$0xff] }
 0x307   :  { %2381 = vmatprep.subr.bf16.mxu0 %v2380_v7  ;;  %v1248_v7 = vld [vmem:[#allocation12 + $0xaa0] sm:$0xff]  ;;  %v2400_v5 = vpack.c.bf16 %v1205_v62, %v1199_v61  ;;  %v1259_v51 = vld [vmem:[#allocation12 + $0xaf8] sm:$0xff]  ;;  %v1258_v62 = vld [vmem:[#allocation12 + $0xaf0] sm:$0xff] }
 0x308   :  { %2527 = vmatpush1.bf16.msra.mxu1 %v2526_v1  ;;  %v1261_v1 = vld [vmem:[#allocation12 + $0xb08] sm:$0xff]  ;;  %v2546_v9 = vpack.c.bf16 %v1254_v56, %v1248_v7  ;;  %v2420_v61 = vpack.c.bf16 %v1265_v59, %v1259_v51  ;;  %v1271_v7 = vld [vmem:[#allocation12 + $0xb58] sm:$0xff] }
 0x309   :  { %2529 = vmatprep.subr.bf16.mxu1 %v2528_v6  ;;  %v1198_v6 = vld [vmem:[#allocation12 + $0x910] sm:$0xff]  ;;  %v2548_v12 = vpack.c.bf16 %v1267_v4, %v1261_v1  ;;  %v1277_v56 = vld [vmem:[#allocation12 + $0xb88] sm:$0xff]  ;;  %v1789_v53 = vld [vmem:[#allocation15 + $0x38] sm:$0xff] }
 0x30a   :  { %2383 = vmatpush1.bf16.msra.mxu0 %v2382_v10  ;;  %v1211_v10 = vld [vmem:[#allocation12 + $0x978] sm:$0xff]  ;;  %v2402_v18 = vpack.c.bf16 %v1204_v8, %v1198_v6  ;;  %v2424_v1 = vpack.c.bf16 %v1277_v56, %v1271_v7  ;;  %v1270_v4 = vld [vmem:[#allocation12 + $0xb50] sm:$0xff]  ;;  %v1289_v8 = vld [vmem:[#allocation12 + $0xbe8] sm:$0xff] }
 0x30b   :  { %2385 = vmatprep.subr.bf16.mxu0 %v2384_v15  ;;  %v1260_v15 = vld [vmem:[#allocation12 + $0xb00] sm:$0xff]  ;;  %v2404_v21 = vpack.c.bf16 %v1217_v11, %v1211_v10  ;;  %v1283_v6 = vld [vmem:[#allocation12 + $0xbb8] sm:$0xff]  ;;  %v1282_v11 = vld [vmem:[#allocation12 + $0xbb0] sm:$0xff] }
 0x30c   :  { %2531 = vmatpush1.bf16.msra.mxu1 %v2530_v19  ;;  %v1273_v19 = vld [vmem:[#allocation12 + $0xb68] sm:$0xff]  ;;  %v2550_v24 = vpack.c.bf16 %v1266_v17, %v1260_v15  ;;  %v2428_v10 = vpack.c.bf16 %v1289_v8, %v1283_v6  ;;  %v1788_v50 = vld [vmem:[#allocation15 + $0x30] sm:$0xff]  ;;  %v1793_v56 = vld [vmem:[#allocation15 + $0x58] sm:$0xff] }
 0x30d   :  { %2533 = vmatprep.subr.bf16.mxu1 %v2532_v22  ;;  %v1210_v22 = vld [vmem:[#allocation12 + $0x970] sm:$0xff]  ;;  %v2552_v27 = vpack.c.bf16 %v1279_v20, %v1273_v19  ;;  %v3244_v19 = vld [vmem:[#allocation14] sm:$0x3f]  ;;  %v1790_v51 = vld [vmem:[#allocation15 + $0x40] sm:$0xff] }
 0x30e   :  { %2387 = vmatpush1.bf16.msra.mxu0 %v2386_v25  ;;  %v1223_v25 = vld [vmem:[#allocation12 + $0x9d8] sm:$0xff]  ;;  %v2406_v30 = vpack.c.bf16 %v1216_v23, %v1210_v22  ;;  %v1297_v20 = vrot.slane %v3244_v19, %v3196_v46  ;;  %v1798_v22 = vld [vmem:[#allocation15 + $0x80] sm:$0xff]  ;;  %v1799_v23 = vld [vmem:[#allocation15 + $0x88] sm:$0xff] }
 0x30f   :  { %2389 = vmatprep.subr.bf16.mxu0 %v2388_v28  ;;  %v1272_v28 = vld [vmem:[#allocation12 + $0xb60] sm:$0xff]  ;;  %v2408_v33 = vpack.c.bf16 %v1229_v26, %v1223_v25  ;;  %v1783_v26 = vld [vmem:[#allocation15 + $0x8] sm:$0xff] }
 0x310   :  { %2535 = vmatpush1.bf16.msra.mxu1 %v2534_v31  ;;  %v1285_v31 = vld [vmem:[#allocation12 + $0xbc8] sm:$0xff]  ;;  %v2554_v36 = vpack.c.bf16 %v1278_v29, %v1272_v28 }
 0x311   :  { %2537 = vmatprep.subr.bf16.mxu1 %v2536_v34  ;;  %v1222_v34 = vld [vmem:[#allocation12 + $0x9d0] sm:$0xff]  ;;  %v2556_v39 = vpack.c.bf16 %v1291_v32, %v1285_v31  ;;  %v1782_v25 = vld [vmem:[#allocation15] sm:$0xff]  ;;  %v1801_v32 = vld [vmem:[#allocation15 + $0x98] sm:$0xff] }
 0x312   :  { %2391 = vmatpush1.bf16.msra.mxu0 %v2390_v37  ;;  %v1235_v37 = vld [vmem:[#allocation12 + $0xa38] sm:$0xff]  ;;  %v2410_v43 = vpack.c.bf16 %v1228_v35, %v1222_v34  ;;  %v2562_v28 = vpack.c.bf16 %v1783_v26, %v1782_v25  ;;  %v1791_v59 = vld [vmem:[#allocation15 + $0x48] sm:$0xff]  ;;  %v1794_v6 = vld [vmem:[#allocation15 + $0x60] sm:$0xff]  ;;  %v1317_v25 = vrot.slane %v3244_v19, %v376_v16 }
 0x313   :  { %2393 = vmatprep.subr.bf16.mxu0 %v2392_v40  ;;  %v1284_v40 = vld [vmem:[#allocation12 + $0xbc0] sm:$0xff]  ;;  %v1800_v31 = vld [vmem:[#allocation15 + $0x90] sm:$0xff]  ;;  %v1795_v8 = vld [vmem:[#allocation15 + $0x68] sm:$0xff] }
 0x314   :  { %2539 = vmatpush1.bf16.msra.mxu1 %v2538_v44  ;;  %v2412_v44 = vpack.c.bf16 %v1241_v38, %v1235_v37  ;;  %v2564_v34 = vpack.c.bf16 %v1801_v32, %v1800_v31  ;;  %v1784_v35 = vld [vmem:[#allocation15 + $0x10] sm:$0xff]  ;;  %v1802_v38 = vld [vmem:[#allocation15 + $0xa0] sm:$0xff]  ;;  %v1305_v32 = vrot.slane %v3244_v19, %v3204_v14 }
 0x315   :  { %2541 = vmatprep.subr.bf16.mxu1 %v2540_v49  ;;  %v2558_v49 = vpack.c.bf16 %v1290_v42, %v1284_v40  ;;  %v1786_v42 = vld [vmem:[#allocation15 + $0x20] sm:$0xff] }
 0x316   :  { %2395 = vmatpush1.bf16.msra.mxu0 %v2394_v54  ;;  %v2414_v54 = vpack.c.bf16 %v1240_v47, %v1234_v45  ;;  %v1804_v45 = vld [vmem:[#allocation15 + $0xb0] sm:$0xff]  ;;  %v1805_v47 = vld [vmem:[#allocation15 + $0xb8] sm:$0xff] }
 0x317   :  { %2397 = vmatprep.subr.bf16.mxu0 %v2396_v58  ;;  %v1252_v58 = vld [vmem:[#allocation12 + $0xac0] sm:$0xff] }
 0x318   :  { %2543 = vmatpush1.bf16.msra.mxu1 %v2542_v60  ;;  %v2418_v60 = vpack.c.bf16 %v1252_v58, %v1246_v57  ;;  %v1807_v57 = vld [vmem:[#allocation15 + $0xc8] sm:$0xff] }
 0x319   :  { %2545 = vmatprep.subr.bf16.mxu1 %v2544_v63  ;;  %v1264_v63 = vld [vmem:[#allocation12 + $0xb20] sm:$0xff] }
 0x31a   :  { %2399 = vmatpush1.bf16.msra.mxu0 %v2398_v0  ;;  %v2422_v0 = vpack.c.bf16 %v1264_v63, %v1258_v62  ;;  %v1809_v62 = vld [vmem:[#allocation15 + $0xd8] sm:$0xff]  ;;  %v1792_v63 = vld [vmem:[#allocation15 + $0x50] sm:$0xff] }
 0x31b   :  { %2401 = vmatprep.subr.bf16.mxu0 %v2400_v5  ;;  %v1276_v5 = vld [vmem:[#allocation12 + $0xb80] sm:$0xff] }
 0x31c   :  { %2547 = vmatpush1.bf16.msra.mxu1 %v2546_v9  ;;  %v2426_v9 = vpack.c.bf16 %v1276_v5, %v1270_v4  ;;  %v2582_v4 = vpack.c.bf16 %v1793_v56, %v1792_v63 }
 0x31d   :  { %2549 = vmatprep.subr.bf16.mxu1 %v2548_v12  ;;  %v1288_v12 = vld [vmem:[#allocation12 + $0xbe0] sm:$0xff] }
 0x31e   :  { %2403 = vmatpush1.bf16.msra.mxu0 %v2402_v18  ;;  %v2430_v15 = vpack.c.bf16 %v1288_v12, %v1282_v11  ;;  %v2586_v11 = vpack.c.bf16 %v1795_v8, %v1794_v6 }
 0x31f   :  { %2405 = vmatprep.subr.bf16.mxu0 %v2404_v21  ;;  %v1301_v21 = vrot.slane %v3244_v19, %v3199_v48 }
 0x320   :  { %2551 = vmatpush1.bf16.msra.mxu1 %v2550_v24  ;;  %v2560_v24 = vpack.c.bf16 %v1799_v23, %v1798_v22 }
 0x321   :  { %2553 = vmatprep.subr.bf16.mxu1 %v2552_v27 }
 0x322   :  { %2407 = vmatpush1.bf16.msra.mxu0 %v2406_v30 }
 0x323   :  { %2409 = vmatprep.subr.bf16.mxu0 %v2408_v33 }
 0x324   :  { %2555 = vmatpush1.bf16.msra.mxu1 %v2554_v36  ;;  %v1785_v36 = vld [vmem:[#allocation15 + $0x18] sm:$0xff] }
 0x325   :  { %2557 = vmatprep.subr.bf16.mxu1 %v2556_v39  ;;  %v2566_v48 = vpack.c.bf16 %v1785_v36, %v1784_v35  ;;  %v1803_v39 = vld [vmem:[#allocation15 + $0xa8] sm:$0xff] }
 0x326   :  { %2411 = vmatpush1.bf16.msra.mxu0 %v2410_v43  ;;  %v2568_v40 = vpack.c.bf16 %v1803_v39, %v1802_v38  ;;  %v1787_v43 = vld [vmem:[#allocation15 + $0x28] sm:$0xff] }
 0x327   :  { %2413 = vmatprep.subr.bf16.mxu0 %v2412_v44  ;;  %v2570_v44 = vpack.c.bf16 %v1787_v43, %v1786_v42 }
 0x328   :  { %2559 = vmatpush1.bf16.msra.mxu1 %v2558_v49  ;;  %v2572_v49 = vpack.c.bf16 %v1805_v47, %v1804_v45 }
 0x32a   :  { %2415 = vmatpush1.bf16.msra.mxu0 %v2414_v54  ;;  %v2574_v54 = vpack.c.bf16 %v1789_v53, %v1788_v50  ;;  %v1893_v53 = vld [vmem:[#allocation2] sm:$0x1] }
 0x32b   :  { %1744 = vmatmul.mubr.f32.vlgmr.msra.gmra.mrb[12].mxu1 %v3229_v3  ;;  %2417 = vmatprep.subr.bf16.mxu0 %v2416_v55  ;;  %v1806_v55 = vld [vmem:[#allocation15 + $0xc0] sm:$0xff] }
 0x32c   :  { %v2576_v58 = vpack.c.bf16 %v1807_v57, %v1806_v55  ;;  %v2022_v57 = vld [vmem:[#allocation17] ss:$0 sm:$0xff] }
 0x32e   :  { %2419 = vmatpush1.bf16.msra.mxu0 %v2418_v60  ;;  %v2578_v60 = vpack.c.bf16 %v1791_v59, %v1790_v51 }
 0x32f   :  { %2421 = vmatprep.subr.bf16.mxu0 %v2420_v61  ;;  %v1808_v61 = vld [vmem:[#allocation15 + $0xd0] sm:$0xff] }
 0x330   :  { %v2580_v7 = vpack.c.bf16 %v1809_v62, %v1808_v61  ;;  %v1892_v61 = vld [vmem:[#allocation18] sm:$0x1] }
 0x332   :  { %2423 = vmatpush1.bf16.msra.mxu0 %v2422_v0  ;;  %v1810_v0 = vld [vmem:[#allocation15 + $0xe0] sm:$0xff] }
 0x333   :  { %2425 = vmatprep.subr.bf16.mxu0 %v2424_v1  ;;  %v1811_v1 = vld [vmem:[#allocation15 + $0xe8] sm:$0xff] }
 0x334   :  { %v2584_v5 = vpack.c.bf16 %v1811_v1, %v1810_v0 }
 0x336   :  { %2427 = vmatpush1.bf16.msra.mxu0 %v2426_v9  ;;  %v1812_v9 = vld [vmem:[#allocation15 + $0xf0] sm:$0xff] }
 0x337   :  { %2429 = vmatprep.subr.bf16.mxu0 %v2428_v10  ;;  %v1813_v10 = vld [vmem:[#allocation15 + $0xf8] sm:$0xff] }
 0x338   :  { %v2588_v12 = vpack.c.bf16 %v1813_v10, %v1812_v9 }
 0x33a   :  { %2431 = vmatpush1.bf16.msra.mxu0 %v2430_v15  ;;  %v1796_v15 = vld [vmem:[#allocation15 + $0x70] sm:$0xff] }
 0x33b   :  { %2561 = vmatprep.subr.bf16.mxu0 %v2560_v24  ;;  %v1313_v24 = vrot.slane %v3244_v19, %v372_v13  ;;  %v1309_v13 = vrot.slane %v3244_v19, %v3207_v52 }
 0x33d   :  { %1602 = vmatmul.mubr.f32.vlgmr.msra.gmra.mrb[6].mxu0 %v3229_v3 }
 0x33e   :  { %2563 = vmatpush3.bf16.msra.mxu0 %v2562_v28 }
 0x33f   :  { %2565 = vmatprep.subr.bf16.mxu0 %v2564_v34 }
 0x342   :  { %2567 = vmatpush3.bf16.msra.mxu0 %v2566_v48 }
 0x343   :  { %2569 = vmatprep.subr.bf16.mxu0 %v2568_v40 }
 0x346   :  { %2571 = vmatpush3.bf16.msra.mxu0 %v2570_v44 }
 0x347   :  { %2573 = vmatprep.subr.bf16.mxu0 %v2572_v49 }
 0x34a   :  { %2575 = vmatpush3.bf16.msra.mxu0 %v2574_v54  ;;  %v2979_v54 = vmov 0  }
 0x34b   :  { %2577 = vmatprep.subr.bf16.mxu0 %v2576_v58  ;;  %2626 = vset.pattern.permute.xlu0 %v2979_v54 }
 0x34c   :  { %1896 = vperm.xlu0 %2626, %v1893_v53  }
 0x34e   :  { %2579 = vmatpush3.bf16.msra.mxu0 %v2578_v60 }
 0x34f   :  { %2581 = vmatprep.subr.bf16.mxu0 %v2580_v7 }
 0x352   :  { %2583 = vmatpush3.bf16.msra.mxu0 %v2582_v4 }
 0x353   :  { %2585 = vmatprep.subr.bf16.mxu0 %v2584_v5 }
 0x356   :  { %2587 = vmatpush3.bf16.msra.mxu0 %v2586_v11 }
 0x357   :  { %2589 = vmatprep.subr.bf16.mxu0 %v2588_v12 }
 0x37e   :  { %v1461_v17 = vpop.f32.mrb[10].mxu1 }
 0x37f   :  { %v1463_v18 = vpop.f32.mrb[11].mxu1 }
 0x390   :  { %v1390_v27 = vpop.f32.mrb[4].mxu0 }
 0x391   :  { %v1391_v29 = vadd.f32 %v1390_v27, %v1297_v20  ;;  %v1392_v30 = vpop.f32.mrb[5].mxu0 }
 0x392   :  { %v1393_v3 = vadd.f32 %v1392_v30, %v1301_v21 }
 0x393   :  { %v1462_v33 = vadd.f32 %v1461_v17, %v1391_v29  ;;  %v1797_v17 = vld [vmem:[#allocation15 + $0x78] sm:$0xff] }
 0x394   :  { %v1464_v37 = vadd.f32 %v1463_v18, %v1393_v3  ;;  %v2590_v18 = vpack.c.bf16 %v1797_v17, %v1796_v15 }
 0x395   :  { %v2018_v20 = vmul.f32 -1.442695, %v1462_v33 }
 0x396   :  { %2591 = vmatpush3.bf16.msra.mxu0 %v2590_v18  ;;  %v2019_v21 = vmul.f32 -1.442695, %v1464_v37 }
 0x397   :  { %2071 = vmatprep.subr.mxu0 %v2977_v2  ;;  %2675 = vpow2.f32 %v2018_v20 }
 0x398   :  { %2677 = vpow2.f32 %v2019_v21 }
 0x3a1   :  { %v2676_v29 = vpop.eup %2675 }
 0x3a2   :  { %v2678_v3 = vpop.eup %2677  ;;  %v1756_v31 = vadd.f32 1.0, %v2676_v29 }
 0x3a3   :  { %v1757_v33 = vadd.f32 1.0, %v2678_v3 }
 0x3cb   :  { %v1897_v62 = vpop.permute.xlu0 %1896 }
 0x3cc   :  { %v1902_v63 = vrot.slane %v1897_v62, %v3196_v46 }
 0x3fe   :  { %v1745_v22 = vpop.f32.mrb[12].mxu1 }
 0x3ff   :  { %v1747_v23 = vpop.f32.mrb[13].mxu1  ;;  %v2598_v26 = vadd.f32 %v1745_v22, %v1313_v24 }
 0x400   :  { %v2599_v27 = vadd.f32 %v1747_v23, %v1317_v25 }
 0x401   :  { %v2020_v28 = vmul.f32 -1.442695, %v2598_v26 }
 0x402   :  { %v2021_v30 = vmul.f32 -1.442695, %v2599_v27 }
 0x403   :  { %2679 = vpow2.f32 %v2020_v28 }
 0x404   :  { %2681 = vpow2.f32 %v2021_v30 }
 0x405   :  { %2683 = vrcp.f32 %v1756_v31 }
 0x406   :  { %2685 = vrcp.f32 %v1757_v33 }
 0x40d   :  { %v2680_v36 = vpop.eup %2679 }
 0x40e   :  { %v2682_v37 = vpop.eup %2681  ;;  %v1770_v48 = vadd.f32 1.0, %v2680_v36 }
 0x40f   :  { %v2684_v38 = vpop.eup %2683  ;;  %v1771_v39 = vadd.f32 1.0, %v2682_v37 }
 0x410   :  { %v1603_v34 = vpop.f32.mrb[6].mxu0  ;;  %v2686_v40 = vpop.eup %2685 }
 0x411   :  { %v2596_v41 = vadd.f32 %v1603_v34, %v1305_v32  ;;  %v1605_v16 = vpop.f32.mrb[7].mxu0 }
 0x412   :  { %v2597_v35 = vadd.f32 %v1605_v16, %v1309_v13 }
 0x413   :  { %2687 = vtanh.f32 %v2596_v41 }
 0x414   :  { %2689 = vtanh.f32 %v2597_v35 }
 0x415   :  { %2691 = vrcp.f32 %v1770_v48 }
 0x416   :  { %2693 = vrcp.f32 %v1771_v39 }
 0x41d   :  { %v2688_v14 = vpop.eup %2687 }
 0x41e   :  { %v2690_v42 = vpop.eup %2689  ;;  %v1776_v43 = vmul.f32 %v2688_v14, %v2684_v38 }
 0x41f   :  { %v1777_v52 = vmul.f32 %v2690_v42, %v2686_v40  ;;  %v2692_v19 = vpop.eup %2691 }
 0x420   :  { %2695 = vtanh.f32 %v1776_v43  ;;  %v2694_v44 = vpop.eup %2693 }
 0x421   :  { %2697 = vtanh.f32 %v1777_v52 }
 0x42a   :  { %v2696_v45 = vpop.eup %2695 }
 0x42b   :  { %v2698_v47 = vpop.eup %2697  ;;  %v1780_v49 = vmul.f32 %v2696_v45, %v2692_v19 }
 0x42c   :  { %v1781_v50 = vmul.f32 %v2698_v47, %v2694_v44 }
 0x42e   :  { %1885 = vmatprep.mubr.f32.mxu0 %v1781_v50 }
 0x42f   :  { %1886 = vmatmul.mubr.f32.vlgmr.msra.gmra.mrb[8].mxu0 %v1780_v49 }
 0x430   :  { %2073 = vmatprep.mubr.msk.f32.mxu0 %vm2976_vm0, %v2977_v2 }
 0x502   :  { %v2059_v55 = vpop.f32.mrb[8].mxu0 }
 0x503   :  { %v2060_v58 = vpop.f32.mrb[9].mxu0 }
 0x504   :  { %v2061_v51 = vadd.f32 %v2060_v58, %v2059_v55 }
 0x506   :  { %v1888_v59 = vadd.f32 %v2061_v51, %v2022_v57 }
 0x508   :  { %v1891_v60 = vmax.f32 %v1888_v59, 0.0 }
 0x50a   :  { %2072 = vmatpush3.xpose.msra.mxu0 %v1891_v60 }
 0x50d   :  { %2074 = vmatmul.mubr.f32.vlgmr.msra.gmra.mrb[10].mxu0 %v1892_v61 }
 0x5e0   :  { %v1969_v7 = vpop.f32.mrb[10].mxu0 }
 0x5e1   :  { %v1970_v56 = vadd.f32 %v1969_v7, %v1902_v63  ;;  %v2075_v0 = vpop.f32.mrb[11].mxu0 }
 0x5e3   :  { %v2023_v2 = vmul.f32 -1.442695, %v1970_v56 }
 0x5e5   :  { %2699 = vpow2.f32 %v2023_v2 }
 0x5ef   :  { %v2700_v1 = vpop.eup %2699 }
 0x5f0   :  { %v1976_v4 = vadd.f32 1.0, %v2700_v1 }
 0x5f2   :  { %2701 = vrcp.f32 %v1976_v4 }
 0x5fc   :  { %v2702_v5 = vpop.eup %2701 }
 0x5fd   :  { %1980 = vst.msk [vmem:[#allocation20] sm:$0x1] %vm1979_vm6, %v2702_v5 }
 0x5fe   :  { %2934 = shalt.err (!%p2931_p0)
}
 0x5ff   :  { %s2935_s20 = scalar_lea.hbm %s3287_s11, 16 }
 0x600   :  { %p2936_p1 = scmp.ne.s32.totalorder %s3287_s11, %s2935_s20  ;;  %p2939_p2 = scmp.lt.u32.totalorder %s2935_s20, %s3287_s11 }
 0x602   :  { %p2941_p3 = pnand %p2939_p2, %p2936_p1 }
 0x604   :  { %2944 = shalt.err (!%p2941_p3)
}
 0x605   :  { %1990 = dma.vmem_to_hbm [thread:$0]  %s1988_s13, 16, %s3287_s11, [#allocation5]  }
 0x606   :  { %2957 = dma.done.wait [#allocation5], 16  }
 0x607   :  { %2958 = vsyncadd [#allocation5], 4294967280 }
 0x608   :  { %1994 = vsyncpa [#allocation4], 1 }
 0x609   :  { %1995 = vsyncpa [#allocation7], 1 }
 0x60a   :  { %1996 = vsyncpa [#allocation10], 1 }
 0x60b   :  { %1997 = vsyncpa [#allocation13], 1 }
 0x60c   :  { %1998 = vsyncpa [#allocation16], 1 }
 0x60d   :  { %1999 = vsyncpa [#allocation19], 1 }
 0x60e   :  { %2000 = vsyncpa [#allocation5], 1 }

</bundles_post_ra>
